<compile_context>
chip_gen: v7x
topology: tpu7x:2x2x1
jax: 0.10.0
libtpu: 0.0.40
codegen_flags: <defaults>
</compile_context>

<pallas_src>
import jax
import jax.numpy as jnp
from jax.experimental import pallas as pl
from jax.experimental.pallas import tpu as pltpu


# --------------------------------------------------------------------------- #
# helpers
# --------------------------------------------------------------------------- #
def _round_up(x, m):
    return ((x + m - 1) // m) * m


def _pick_tile(dim, candidates):
    for c in candidates:
        if c <= dim and dim % c == 0:
            return c
    return dim  # full extent is always a legal block dim


def _largest_divisor_tile(dim, cap):
    """Largest multiple of 128 that divides `dim` and is <= cap (else dim)."""
    best = None
    t = 128
    limit = min(dim, max(cap, 128))
    while t <= limit:
        if dim % t == 0:
            best = t
        t += 128
    return best if best is not None else dim


def _tpu_info():
    """(vmem_capacity_bytes, device_kind lowercase) with safe fallbacks."""
    kind = ""
    try:
        kind = jax.local_devices()[0].device_kind.lower()
    except Exception:
        pass
    cap = None
    try:
        cap = int(pltpu.get_tpu_info().vmem_capacity_bytes)
    except Exception:
        cap = None
    if cap is None or cap <= 0:
        # v7x has 64 MiB per TC; earlier generations 128 MiB.
        cap = 64 * 2**20 if "v7" in kind else 128 * 2**20
    return cap, kind


def _const_spec(shape, index_map, single_buffer):
    """BlockSpec for a grid-invariant operand; single-buffer it if supported."""
    if single_buffer:
        try:
            return pl.BlockSpec(shape, index_map, pipeline_mode=pl.Buffered(1))
        except (TypeError, AttributeError):
            pass
    return pl.BlockSpec(shape, index_map)


# --------------------------------------------------------------------------- #
# fused forward
# --------------------------------------------------------------------------- #
def linear_classifier_forward(x, params, *, tb=None, tk=None, th=None,
                              compute_dtype=jnp.bfloat16,
                              grad_at_output=None, network_output=None):
    """Fused AlexNet classifier head.

    x:      (B, IN) float activations.
    params: dict of w1 (IN,HID), b1 (HID,), w2 (HID,HID), b2 (HID,),
            w3 (HID,C), b3 (C,) -- weights pre-transposed to (in, out).
    Returns (B, C) float32 logits.  grad_at_output / network_output only feed
    the DFA *backward* hook in the original module and are ignored here.
    """
    del grad_at_output, network_output  # identity in the forward pass

    w1, b1 = params["w1"], params["b1"]
    w2, b2 = params["w2"], params["b2"]
    w3, b3 = params["w3"], params["b3"]

    B, IN = x.shape
    HID = w1.shape[1]
    C = w3.shape[1]
    assert w2.shape == (HID, HID) and w3.shape[0] == HID
    assert HID % 128 == 0, "hidden width must be a multiple of 128"

    vmem_cap, kind = _tpu_info()
    budget = max((vmem_cap * 3) // 4, 32 * 2**20)
    is_v5 = "v5" in kind
    is_v7 = "v7" in kind

    C_pad = _round_up(C, 128)  # lane-dense output slab

    # ---- tiling choices ----------------------------------------------------
    if th is None:
        # 256x256 MXU on v6e/v7x wants >=256-wide layer-2/3 chunks; v5e is 128.
        th = _pick_tile(HID, (128,) if is_v5 else (512, 256, 128))
    assert HID % th == 0
    n_h = HID // th

    if tk is None:
        # double-buffered (tk, HID) bf16 W1 tile should take <= ~1/3 of budget
        tk_cap = max(128, budget // (3 * 2 * HID * 2))
        tk = _largest_divisor_tile(IN, tk_cap)
    assert IN % tk == 0
    n_k = IN // tk

    if tb is None:
        # Cover the batch with 1 tile (v5e/v6e) or 2 tiles (v7x: one per TC),
        # bounded by VMEM; every extra batch tile re-streams all weight HBM
        # traffic, which dominates at small batch.
        n_tiles_target = 2 if is_v7 else 1
        fixed = (2 * tk * HID * 2        # W1 tile, double-buffered bf16
                 + 2 * HID * th * 2      # W2 chunk, double-buffered bf16
                 + 2 * th * C_pad * 2    # W3 chunk
                 + 8 * (HID + th + C_pad) + (1 << 20))  # biases + slack
        per_row = (HID * 4 + HID * 2     # h_acc (f32) + staged h (bf16)
                   + 2 * tk * 2          # x tile (double-buffered bf16)
                   + 2 * C_pad * 4)      # output block (f32)
        tb_max = max(16, ((budget - fixed) // per_row) // 16 * 16)
        tb = _round_up(max(1, -(-B // n_tiles_target)), 16)
        tb = max(16, min(tb, tb_max, 1024))
    else:
        tb = max(16, min(_round_up(tb, 16), _round_up(B, 16)))

    B_pad = _round_up(B, tb)
    n_bt = B_pad // tb
    n_steps = n_k + n_h

    # ---- operand prep: bf16 weights/activations, f32 biases -----------------
    cd = compute_dtype
    xp = x.astype(cd)
    if B_pad != B:
        xp = jnp.pad(xp, ((0, B_pad - B), (0, 0)))
    w1c = w1.astype(cd)
    w2c = w2.astype(cd)
    w3c = w3.astype(cd)
    b3f = b3.astype(jnp.float32)
    if C_pad != C:
        w3c = jnp.pad(w3c, ((0, 0), (0, C_pad - C)))
        b3f = jnp.pad(b3f, (0, C_pad - C))
    b1r = b1.astype(jnp.float32).reshape(1, HID)
    b2r = b2.astype(jnp.float32).reshape(1, HID)
    b3r = b3f.reshape(1, C_pad)

    # ---- kernel --------------------------------------------------------------
    def kernel(x_ref, w1_ref, b1_ref, w2_ref, b2_ref, w3_ref, b3_ref,
               o_ref, h_acc, h_ref):
        s = pl.program_id(1)

        # phase 1: layer-1, K-streamed accumulation into persistent f32 scratch
        @pl.when(s < n_k)
        def _layer1():
            @pl.when(s == 0)
            def _init():
                h_acc[...] = jnp.zeros_like(h_acc)
            h_acc[...] += jnp.dot(x_ref[...], w1_ref[...],
                                  preferred_element_type=jnp.float32)

        # phase 2: layer-1 epilogue, then layers 2+3 one HID chunk per step
        @pl.when(s >= n_k)
        def _layers23():
            @pl.when(s == n_k)
            def _epilogue_init():
                # bias + ReLU (dropout / DFA hook are identity in eval forward);
                # stage h once in bf16 scratch, init logits with b3 broadcast.
                h_ref[...] = jnp.maximum(h_acc[...] + b1_ref[...], 0.0
                                         ).astype(h_ref.dtype)
                o_ref[...] = jnp.broadcast_to(b3_ref[...], o_ref.shape
                                              ).astype(o_ref.dtype)
            h2 = jnp.dot(h_ref[...], w2_ref[...],
                         preferred_element_type=jnp.float32)
            h2 = jnp.maximum(h2 + b2_ref[...], 0.0).astype(h_ref.dtype)
            o_ref[...] += jnp.dot(h2, w3_ref[...],
                                  preferred_element_type=jnp.float32)

    # ---- index maps (phase-clamped; no refetch across the phase boundary) ---
    def x_map(i, s):
        return (i, jnp.minimum(s, n_k - 1))

    def w1_map(i, s):
        return (jnp.minimum(s, n_k - 1), 0)

    def _chunk(s):
        return jnp.clip(s - n_k, 0, n_h - 1)

    def w2_map(i, s):
        return (0, _chunk(s))

    def b2_map(i, s):
        return (0, _chunk(s))

    def w3_map(i, s):
        return (_chunk(s), 0)

    def b1_map(i, s):
        return (0, 0)

    def b3_map(i, s):
        return (0, 0)

    def o_map(i, s):
        return (i, 0)

    # ---- cost estimate (weights re-streamed once per batch tile) ------------
    wbytes_per_pass = (IN * HID + HID * HID + HID * C_pad) * jnp.dtype(cd).itemsize
    flops = 2 * B_pad * (IN * HID + HID * HID + HID * C_pad)
    bytes_accessed = (xp.size * jnp.dtype(cd).itemsize
                      + n_bt * wbytes_per_pass
                      + (b1r.size + b2r.size + b3r.size) * 4
                      + B_pad * C_pad * 4)
    cost = pl.CostEstimate(flops=flops, transcendentals=0,
                           bytes_accessed=bytes_accessed)

    def build(single_buffer_bias):
        in_specs = [
            pl.BlockSpec((tb, tk), x_map),                       # x (K-streamed)
            pl.BlockSpec((tk, HID), w1_map),                     # W1 (K-streamed)
            _const_spec((1, HID), b1_map, single_buffer_bias),   # b1 (constant)
            pl.BlockSpec((HID, th), w2_map),                     # W2 column chunk
            pl.BlockSpec((1, th), b2_map),                       # b2 chunk
            pl.BlockSpec((th, C_pad), w3_map),                   # W3 row chunk
            _const_spec((1, C_pad), b3_map, single_buffer_bias), # b3 (constant)
        ]
        return pl.pallas_call(
            kernel,
            out_shape=jax.ShapeDtypeStruct((B_pad, C_pad), jnp.float32),
            grid_spec=pltpu.PrefetchScalarGridSpec(
                num_scalar_prefetch=0,
                grid=(n_bt, n_steps),                  # (batch, K-stream + HID chunks)
                in_specs=in_specs,
                out_specs=pl.BlockSpec((tb, C_pad), o_map),
                scratch_shapes=[pltpu.VMEM((tb, HID), jnp.float32),  # layer-1 acc
                                pltpu.VMEM((tb, HID), cd)],          # staged h (bf16)
            ),
            compiler_params=pltpu.CompilerParams(
                dimension_semantics=("parallel", "arbitrary"),
                vmem_limit_bytes=int(budget),
            ),
            cost_estimate=cost,
        )

    operands = (xp, w1c, b1r, w2c, b2r, w3c, b3r)
    try:
        out = build(single_buffer_bias=True)(*operands)
    except Exception:
        # Fallback if this jax build rejects pipeline_mode=pl.Buffered(1);
        # the biases are tiny, so the cost of default double-buffering is nil.
        out = build(single_buffer_bias=False)(*operands)

    return out[:B, :C]


# --------------------------------------------------------------------------- #
# reference / init
# --------------------------------------------------------------------------- #
def init_params(key, in_features, hidden, num_classes, dtype=jnp.float32):
    """Deterministic init mimicking torch.nn.Linear's U(-1/sqrt(fan_in), ...).
    Weights are returned already transposed to (in, out) for the kernel."""
    ks = jax.random.split(key, 6)

    def lin(kw, kb, fan_in, fan_out):
        bound = 1.0 / jnp.sqrt(fan_in)
        w = jax.random.uniform(kw, (fan_in, fan_out), dtype, -bound, bound)
        b = jax.random.uniform(kb, (fan_out,), dtype, -bound, bound)
        return w, b

    w1, b1 = lin(ks[0], ks[1], in_features, hidden)
    w2, b2 = lin(ks[2], ks[3], hidden, hidden)
    w3, b3 = lin(ks[4], ks[5], hidden, num_classes)
    return {"w1": w1, "b1": b1, "w2": w2, "b2": b2, "w3": w3, "b3": b3}


def reference_forward(x, params, compute_dtype=jnp.bfloat16):
    """Pure-JAX reference with the same bf16-compute / f32-accumulate numerics."""
    cd = compute_dtype
    h = jnp.dot(x.astype(cd), params["w1"].astype(cd),
                preferred_element_type=jnp.float32) + params["b1"]
    h = jnp.maximum(h, 0.0)
    h = jnp.dot(h.astype(cd), params["w2"].astype(cd),
                preferred_element_type=jnp.float32) + params["b2"]
    h = jnp.maximum(h, 0.0)
    return jnp.dot(h.astype(cd), params["w3"].astype(cd),
                   preferred_element_type=jnp.float32) + params["b3"]


if __name__ == "__main__":
    # Small shapes consistent with the module (real head: IN=256*6*6=9216,
    # HID=4096, C=num_classes).  Chosen so the grid exercises both phases with
    # multiple steps.
    B, IN, HID, C = 256, 512, 512, 10

    key = jax.random.PRNGKey(0)
    kx, kp = jax.random.split(key)
    x = jax.random.normal(kx, (B, IN), jnp.float32)
    params = init_params(kp, IN, HID, C)

    ref = reference_forward(x, params)

    # (a) explicit small tiles: 2 batch tiles x (2 K steps + 4 HID chunks)
    out_a = jax.block_until_ready(
        linear_classifier_forward(x, params, tb=128, tk=256, th=128))
    # (b) auto-selected tiles (the path used at production sizes)
    out_b = jax.block_until_ready(linear_classifier_forward(x, params))

    for out in (out_a, out_b):
        assert out.shape == (B, C)
        err = float(jnp.max(jnp.abs(out - ref)))
        assert jnp.allclose(out, ref, atol=2e-2, rtol=2e-2), \
            f"mismatch vs reference (max err {err})"
    print("KERNEL_OK")
</pallas_src>

<mosaic_0001>
module attributes {stable_mosaic.version = 11 : i64} {
  func.func @kernel(%arg0: i32, %arg1: i32, %arg2: memref<128x256xbf16, #tpu.memory_space<vmem>>, %arg3: memref<256x512xbf16, #tpu.memory_space<vmem>>, %arg4: memref<1x512xf32, #tpu.memory_space<vmem>>, %arg5: memref<512x128xbf16, #tpu.memory_space<vmem>>, %arg6: memref<1x128xf32, #tpu.memory_space<vmem>>, %arg7: memref<128x128xbf16, #tpu.memory_space<vmem>>, %arg8: memref<1x128xf32, #tpu.memory_space<vmem>>, %arg9: memref<128x128xf32, #tpu.memory_space<vmem>>, %arg10: memref<128x512xf32, #tpu.memory_space<vmem>>, %arg11: memref<128x512xbf16, #tpu.memory_space<vmem>>) attributes {dimension_semantics = [#tpu.dimension_semantics<parallel>, #tpu.dimension_semantics<arbitrary>], iteration_bounds = array<i64: 2, 6>, scalar_prefetch = 0 : i64, scratch_operands = 2 : i64, tpu.core_type = #tpu.core_type<tc>, window_params = [{transform_indices = @transform_0, window_bounds = array<i64: 128, 256>}, {transform_indices = @transform_1, window_bounds = array<i64: 256, 512>}, {pipeline_mode = #tpu.pipeline_mode<synchronous>, transform_indices = @transform_2, window_bounds = array<i64: 1, 512>}, {transform_indices = @transform_3, window_bounds = array<i64: 512, 128>}, {transform_indices = @transform_4, window_bounds = array<i64: 1, 128>}, {transform_indices = @transform_5, window_bounds = array<i64: 128, 128>}, {pipeline_mode = #tpu.pipeline_mode<synchronous>, transform_indices = @transform_6, window_bounds = array<i64: 1, 128>}, {transform_indices = @transform_7, window_bounds = array<i64: 128, 128>}]} {
    %c2_i32 = arith.constant 2 : i32
    %0 = arith.cmpi slt, %arg1, %c2_i32 : i32
    %1 = arith.extui %0 : i1 to i32
    %c0_i32 = arith.constant 0 : i32
    %2 = arith.cmpi ne, %1, %c0_i32 : i32
    scf.if %2 {
      %c0_i32_2 = arith.constant 0 : i32
      %6 = arith.cmpi eq, %arg1, %c0_i32_2 : i32
      %7 = arith.extui %6 : i1 to i32
      %c0_i32_3 = arith.constant 0 : i32
      %8 = arith.cmpi ne, %7, %c0_i32_3 : i32
      scf.if %8 {
        %cst_11 = arith.constant 0.000000e+00 : f32
        %15 = vector.broadcast %cst_11 : f32 to vector<128x512xf32>
        %c0_12 = arith.constant 0 : index
        %c0_13 = arith.constant 0 : index
        %16 = vector.load %arg10[%c0_12, %c0_13] : memref<128x512xf32, #tpu.memory_space<vmem>>, vector<128x512xf32>
        tpu.vector_store %arg10[%c0_12, %c0_13], %15 {strides = array<i32>} : memref<128x512xf32, #tpu.memory_space<vmem>>, vector<128x512xf32>,
      } else {
      }
      %c0 = arith.constant 0 : index
      %c0_4 = arith.constant 0 : index
      %9 = vector.load %arg10[%c0, %c0_4] : memref<128x512xf32, #tpu.memory_space<vmem>>, vector<128x512xf32>
      %c0_5 = arith.constant 0 : index
      %c0_6 = arith.constant 0 : index
      %10 = vector.load %arg2[%c0_5, %c0_6] : memref<128x256xbf16, #tpu.memory_space<vmem>>, vector<128x256xbf16>
      %c0_7 = arith.constant 0 : index
      %c0_8 = arith.constant 0 : index
      %11 = vector.load %arg3[%c0_7, %c0_8] : memref<256x512xbf16, #tpu.memory_space<vmem>>, vector<256x512xbf16>
      %cst = arith.constant dense<0.000000e+00> : vector<128x512xf32>
      %12 = tpu.matmul %10, %11, %cst {dimension_numbers = #tpu.dot_dimension_numbers<[1], [0], [0], [1], [0, 0, 1, 1], [], []>} : vector<128x256xbf16>, vector<256x512xbf16>, vector<128x512xf32> -> vector<128x512xf32>
      %13 = arith.addf %9, %12 : vector<128x512xf32>
      %c0_9 = arith.constant 0 : index
      %c0_10 = arith.constant 0 : index
      %14 = vector.load %arg10[%c0_9, %c0_10] : memref<128x512xf32, #tpu.memory_space<vmem>>, vector<128x512xf32>
      tpu.vector_store %arg10[%c0_9, %c0_10], %13 {strides = array<i32>} : memref<128x512xf32, #tpu.memory_space<vmem>>, vector<128x512xf32>,
    } else {
    }
    %c2_i32_0 = arith.constant 2 : i32
    %3 = arith.cmpi sge, %arg1, %c2_i32_0 : i32
    %4 = arith.extui %3 : i1 to i32
    %c0_i32_1 = arith.constant 0 : i32
    %5 = arith.cmpi ne, %4, %c0_i32_1 : i32
    scf.if %5 {
      %c2_i32_2 = arith.constant 2 : i32
      %6 = arith.cmpi eq, %arg1, %c2_i32_2 : i32
      %7 = arith.extui %6 : i1 to i32
      %c0_i32_3 = arith.constant 0 : i32
      %8 = arith.cmpi ne, %7, %c0_i32_3 : i32
      scf.if %8 {
        %c0_17 = arith.constant 0 : index
        %c0_18 = arith.constant 0 : index
        %23 = vector.load %arg10[%c0_17, %c0_18] : memref<128x512xf32, #tpu.memory_space<vmem>>, vector<128x512xf32>
        %c0_19 = arith.constant 0 : index
        %c0_20 = arith.constant 0 : index
        %24 = vector.load %arg4[%c0_19, %c0_20] : memref<1x512xf32, #tpu.memory_space<vmem>>, vector<1x512xf32>
        %25 = vector.broadcast %24 : vector<1x512xf32> to vector<128x512xf32>
        %26 = arith.addf %23, %25 : vector<128x512xf32>
        %cst_21 = arith.constant 0.000000e+00 : f32
        %27 = vector.broadcast %cst_21 : f32 to vector<128x512xf32>
        %28 = arith.maximumf %26, %27 : vector<128x512xf32>
        %29 = arith.truncf %28 : vector<128x512xf32> to vector<128x512xbf16>
        %c0_22 = arith.constant 0 : index
        %c0_23 = arith.constant 0 : index
        %30 = vector.load %arg11[%c0_22, %c0_23] : memref<128x512xbf16, #tpu.memory_space<vmem>>, vector<128x512xbf16>
        tpu.vector_store %arg11[%c0_22, %c0_23], %29 {strides = array<i32>} : memref<128x512xbf16, #tpu.memory_space<vmem>>, vector<128x512xbf16>,
        %c0_24 = arith.constant 0 : index
        %c0_25 = arith.constant 0 : index
        %31 = vector.load %arg8[%c0_24, %c0_25] : memref<1x128xf32, #tpu.memory_space<vmem>>, vector<1x128xf32>
        %32 = vector.shape_cast %31 : vector<1x128xf32> to vector<1x128xf32>
        %33 = vector.broadcast %32 : vector<1x128xf32> to vector<128x128xf32>
        %c0_26 = arith.constant 0 : index
        %c0_27 = arith.constant 0 : index
        %34 = vector.load %arg9[%c0_26, %c0_27] : memref<128x128xf32, #tpu.memory_space<vmem>>, vector<128x128xf32>
        tpu.vector_store %arg9[%c0_26, %c0_27], %33 {strides = array<i32>} : memref<128x128xf32, #tpu.memory_space<vmem>>, vector<128x128xf32>,
      } else {
      }
      %c0 = arith.constant 0 : index
      %c0_4 = arith.constant 0 : index
      %9 = vector.load %arg11[%c0, %c0_4] : memref<128x512xbf16, #tpu.memory_space<vmem>>, vector<128x512xbf16>
      %c0_5 = arith.constant 0 : index
      %c0_6 = arith.constant 0 : index
      %10 = vector.load %arg5[%c0_5, %c0_6] : memref<512x128xbf16, #tpu.memory_space<vmem>>, vector<512x128xbf16>
      %cst = arith.constant dense<0.000000e+00> : vector<128x128xf32>
      %11 = tpu.matmul %9, %10, %cst {dimension_numbers = #tpu.dot_dimension_numbers<[1], [0], [0], [1], [0, 0, 1, 1], [], []>} : vector<128x512xbf16>, vector<512x128xbf16>, vector<128x128xf32> -> vector<128x128xf32>
      %c0_7 = arith.constant 0 : index
      %c0_8 = arith.constant 0 : index
      %12 = vector.load %arg6[%c0_7, %c0_8] : memref<1x128xf32, #tpu.memory_space<vmem>>, vector<1x128xf32>
      %13 = vector.broadcast %12 : vector<1x128xf32> to vector<128x128xf32>
      %14 = arith.addf %11, %13 : vector<128x128xf32>
      %cst_9 = arith.constant 0.000000e+00 : f32
      %15 = vector.broadcast %cst_9 : f32 to vector<128x128xf32>
      %16 = arith.maximumf %14, %15 : vector<128x128xf32>
      %17 = arith.truncf %16 : vector<128x128xf32> to vector<128x128xbf16>
      %c0_10 = arith.constant 0 : index
      %c0_11 = arith.constant 0 : index
      %18 = vector.load %arg9[%c0_10, %c0_11] : memref<128x128xf32, #tpu.memory_space<vmem>>, vector<128x128xf32>
      %c0_12 = arith.constant 0 : index
      %c0_13 = arith.constant 0 : index
      %19 = vector.load %arg7[%c0_12, %c0_13] : memref<128x128xbf16, #tpu.memory_space<vmem>>, vector<128x128xbf16>
      %cst_14 = arith.constant dense<0.000000e+00> : vector<128x128xf32>
      %20 = tpu.matmul %17, %19, %cst_14 {dimension_numbers = #tpu.dot_dimension_numbers<[1], [0], [0], [1], [0, 0, 1, 1], [], []>} : vector<128x128xbf16>, vector<128x128xbf16>, vector<128x128xf32> -> vector<128x128xf32>
      %21 = arith.addf %18, %20 : vector<128x128xf32>
      %c0_15 = arith.constant 0 : index
      %c0_16 = arith.constant 0 : index
      %22 = vector.load %arg9[%c0_15, %c0_16] : memref<128x128xf32, #tpu.memory_space<vmem>>, vector<128x128xf32>
      tpu.vector_store %arg9[%c0_15, %c0_16], %21 {strides = array<i32>} : memref<128x128xf32, #tpu.memory_space<vmem>>, vector<128x128xf32>,
    } else {
    }
    return
  }
  func.func @transform_0(%arg0: i32, %arg1: i32) -> (i32, i32) {
    %c1_i32 = arith.constant 1 : i32
    %0 = arith.minsi %arg1, %c1_i32 : i32
    %c0_i32 = arith.constant 0 : i32
    return %arg0, %0 : i32, i32
  }
  func.func @transform_1(%arg0: i32, %arg1: i32) -> (i32, i32) {
    %c1_i32 = arith.constant 1 : i32
    %0 = arith.minsi %arg1, %c1_i32 : i32
    %c0_i32 = arith.constant 0 : i32
    %c0_i32_0 = arith.constant 0 : i32
    return %0, %c0_i32 : i32, i32
  }
  func.func @transform_2(%arg0: i32, %arg1: i32) -> (i32, i32) {
    %c0_i32 = arith.constant 0 : i32
    %c0_i32_0 = arith.constant 0 : i32
    %c0_i32_1 = arith.constant 0 : i32
    return %c0_i32, %c0_i32_0 : i32, i32
  }
  func.func @transform_3(%arg0: i32, %arg1: i32) -> (i32, i32) {
    %c2_i32 = arith.constant 2 : i32
    %0 = arith.subi %arg1, %c2_i32 : i32
    %c0_i32 = arith.constant 0 : i32
    %c3_i32 = arith.constant 3 : i32
    %1 = arith.maxsi %c0_i32, %0 : i32
    %2 = arith.minsi %c3_i32, %1 : i32
    %c0_i32_0 = arith.constant 0 : i32
    %c0_i32_1 = arith.constant 0 : i32
    return %c0_i32_0, %2 : i32, i32
  }
  func.func @transform_4(%arg0: i32, %arg1: i32) -> (i32, i32) {
    %c2_i32 = arith.constant 2 : i32
    %0 = arith.subi %arg1, %c2_i32 : i32
    %c0_i32 = arith.constant 0 : i32
    %c3_i32 = arith.constant 3 : i32
    %1 = arith.maxsi %c0_i32, %0 : i32
    %2 = arith.minsi %c3_i32, %1 : i32
    %c0_i32_0 = arith.constant 0 : i32
    %c0_i32_1 = arith.constant 0 : i32
    return %c0_i32_0, %2 : i32, i32
  }
  func.func @transform_5(%arg0: i32, %arg1: i32) -> (i32, i32) {
    %c2_i32 = arith.constant 2 : i32
    %0 = arith.subi %arg1, %c2_i32 : i32
    %c0_i32 = arith.constant 0 : i32
    %c3_i32 = arith.constant 3 : i32
    %1 = arith.maxsi %c0_i32, %0 : i32
    %2 = arith.minsi %c3_i32, %1 : i32
    %c0_i32_0 = arith.constant 0 : i32
    %c0_i32_1 = arith.constant 0 : i32
    return %2, %c0_i32_0 : i32, i32
  }
  func.func @transform_6(%arg0: i32, %arg1: i32) -> (i32, i32) {
    %c0_i32 = arith.constant 0 : i32
    %c0_i32_0 = arith.constant 0 : i32
    %c0_i32_1 = arith.constant 0 : i32
    return %c0_i32, %c0_i32_0 : i32, i32
  }
  func.func @transform_7(%arg0: i32, %arg1: i32) -> (i32, i32) {
    %c0_i32 = arith.constant 0 : i32
    %c0_i32_0 = arith.constant 0 : i32
    return %arg0, %c0_i32 : i32, i32
  }
}

module attributes {stable_mosaic.version = 11 : i64} {
  func.func @kernel(%arg0: i32, %arg1: i32, %arg2: memref<128x256xbf16, #tpu.memory_space<vmem>>, %arg3: memref<256x512xbf16, #tpu.memory_space<vmem>>, %arg4: memref<1x512xf32, #tpu.memory_space<vmem>>, %arg5: memref<512x128xbf16, #tpu.memory_space<vmem>>, %arg6: memref<1x128xf32, #tpu.memory_space<vmem>>, %arg7: memref<128x128xbf16, #tpu.memory_space<vmem>>, %arg8: memref<1x128xf32, #tpu.memory_space<vmem>>, %arg9: memref<128x128xf32, #tpu.memory_space<vmem>>, %arg10: memref<128x512xf32, #tpu.memory_space<vmem>>, %arg11: memref<128x512xbf16, #tpu.memory_space<vmem>>) attributes {dimension_semantics = [#tpu.dimension_semantics<parallel>, #tpu.dimension_semantics<arbitrary>], iteration_bounds = array<i64: 2, 6>, scalar_prefetch = 0 : i64, scratch_operands = 2 : i64, tpu.core_type = #tpu.core_type<tc>, window_params = [{transform_indices = @transform_0, window_bounds = array<i64: 128, 256>}, {transform_indices = @transform_1, window_bounds = array<i64: 256, 512>}, {pipeline_mode = #tpu.pipeline_mode<synchronous>, transform_indices = @transform_2, window_bounds = array<i64: 1, 512>}, {transform_indices = @transform_3, window_bounds = array<i64: 512, 128>}, {transform_indices = @transform_4, window_bounds = array<i64: 1, 128>}, {transform_indices = @transform_5, window_bounds = array<i64: 128, 128>}, {pipeline_mode = #tpu.pipeline_mode<synchronous>, transform_indices = @transform_6, window_bounds = array<i64: 1, 128>}, {transform_indices = @transform_7, window_bounds = array<i64: 128, 128>}]} {
    %c2_i32 = arith.constant 2 : i32
    %0 = arith.cmpi slt, %arg1, %c2_i32 : i32
    %1 = arith.extui %0 : i1 to i32
    %c0_i32 = arith.constant 0 : i32
    %2 = arith.cmpi ne, %1, %c0_i32 : i32
    scf.if %2 {
      %c0_i32_2 = arith.constant 0 : i32
      %6 = arith.cmpi eq, %arg1, %c0_i32_2 : i32
      %7 = arith.extui %6 : i1 to i32
      %c0_i32_3 = arith.constant 0 : i32
      %8 = arith.cmpi ne, %7, %c0_i32_3 : i32
      scf.if %8 {
        %cst_11 = arith.constant 0.000000e+00 : f32
        %15 = vector.broadcast %cst_11 : f32 to vector<128x512xf32>
        %c0_12 = arith.constant 0 : index
        %c0_13 = arith.constant 0 : index
        %16 = vector.load %arg10[%c0_12, %c0_13] : memref<128x512xf32, #tpu.memory_space<vmem>>, vector<128x512xf32>
        tpu.vector_store %arg10[%c0_12, %c0_13], %15 {strides = array<i32>} : memref<128x512xf32, #tpu.memory_space<vmem>>, vector<128x512xf32>,
      } else {
      }
      %c0 = arith.constant 0 : index
      %c0_4 = arith.constant 0 : index
      %9 = vector.load %arg10[%c0, %c0_4] : memref<128x512xf32, #tpu.memory_space<vmem>>, vector<128x512xf32>
      %c0_5 = arith.constant 0 : index
      %c0_6 = arith.constant 0 : index
      %10 = vector.load %arg2[%c0_5, %c0_6] : memref<128x256xbf16, #tpu.memory_space<vmem>>, vector<128x256xbf16>
      %c0_7 = arith.constant 0 : index
      %c0_8 = arith.constant 0 : index
      %11 = vector.load %arg3[%c0_7, %c0_8] : memref<256x512xbf16, #tpu.memory_space<vmem>>, vector<256x512xbf16>
      %cst = arith.constant dense<0.000000e+00> : vector<128x512xf32>
      %12 = tpu.matmul %10, %11, %cst {dimension_numbers = #tpu.dot_dimension_numbers<[1], [0], [0], [1], [0, 0, 1, 1], [], []>} : vector<128x256xbf16>, vector<256x512xbf16>, vector<128x512xf32> -> vector<128x512xf32>
      %13 = arith.addf %9, %12 : vector<128x512xf32>
      %c0_9 = arith.constant 0 : index
      %c0_10 = arith.constant 0 : index
      %14 = vector.load %arg10[%c0_9, %c0_10] : memref<128x512xf32, #tpu.memory_space<vmem>>, vector<128x512xf32>
      tpu.vector_store %arg10[%c0_9, %c0_10], %13 {strides = array<i32>} : memref<128x512xf32, #tpu.memory_space<vmem>>, vector<128x512xf32>,
    } else {
    }
    %c2_i32_0 = arith.constant 2 : i32
    %3 = arith.cmpi sge, %arg1, %c2_i32_0 : i32
    %4 = arith.extui %3 : i1 to i32
    %c0_i32_1 = arith.constant 0 : i32
    %5 = arith.cmpi ne, %4, %c0_i32_1 : i32
    scf.if %5 {
      %c2_i32_2 = arith.constant 2 : i32
      %6 = arith.cmpi eq, %arg1, %c2_i32_2 : i32
      %7 = arith.extui %6 : i1 to i32
      %c0_i32_3 = arith.constant 0 : i32
      %8 = arith.cmpi ne, %7, %c0_i32_3 : i32
      scf.if %8 {
        %c0_17 = arith.constant 0 : index
        %c0_18 = arith.constant 0 : index
        %23 = vector.load %arg10[%c0_17, %c0_18] : memref<128x512xf32, #tpu.memory_space<vmem>>, vector<128x512xf32>
        %c0_19 = arith.constant 0 : index
        %c0_20 = arith.constant 0 : index
        %24 = vector.load %arg4[%c0_19, %c0_20] : memref<1x512xf32, #tpu.memory_space<vmem>>, vector<1x512xf32>
        %25 = vector.broadcast %24 : vector<1x512xf32> to vector<128x512xf32>
        %26 = arith.addf %23, %25 : vector<128x512xf32>
        %cst_21 = arith.constant 0.000000e+00 : f32
        %27 = vector.broadcast %cst_21 : f32 to vector<128x512xf32>
        %28 = arith.maximumf %26, %27 : vector<128x512xf32>
        %29 = arith.truncf %28 : vector<128x512xf32> to vector<128x512xbf16>
        %c0_22 = arith.constant 0 : index
        %c0_23 = arith.constant 0 : index
        %30 = vector.load %arg11[%c0_22, %c0_23] : memref<128x512xbf16, #tpu.memory_space<vmem>>, vector<128x512xbf16>
        tpu.vector_store %arg11[%c0_22, %c0_23], %29 {strides = array<i32>} : memref<128x512xbf16, #tpu.memory_space<vmem>>, vector<128x512xbf16>,
        %c0_24 = arith.constant 0 : index
        %c0_25 = arith.constant 0 : index
        %31 = vector.load %arg8[%c0_24, %c0_25] : memref<1x128xf32, #tpu.memory_space<vmem>>, vector<1x128xf32>
        %32 = vector.shape_cast %31 : vector<1x128xf32> to vector<1x128xf32>
        %33 = vector.broadcast %32 : vector<1x128xf32> to vector<128x128xf32>
        %c0_26 = arith.constant 0 : index
        %c0_27 = arith.constant 0 : index
        %34 = vector.load %arg9[%c0_26, %c0_27] : memref<128x128xf32, #tpu.memory_space<vmem>>, vector<128x128xf32>
        tpu.vector_store %arg9[%c0_26, %c0_27], %33 {strides = array<i32>} : memref<128x128xf32, #tpu.memory_space<vmem>>, vector<128x128xf32>,
      } else {
      }
      %c0 = arith.constant 0 : index
      %c0_4 = arith.constant 0 : index
      %9 = vector.load %arg11[%c0, %c0_4] : memref<128x512xbf16, #tpu.memory_space<vmem>>, vector<128x512xbf16>
      %c0_5 = arith.constant 0 : index
      %c0_6 = arith.constant 0 : index
      %10 = vector.load %arg5[%c0_5, %c0_6] : memref<512x128xbf16, #tpu.memory_space<vmem>>, vector<512x128xbf16>
      %cst = arith.constant dense<0.000000e+00> : vector<128x128xf32>
      %11 = tpu.matmul %9, %10, %cst {dimension_numbers = #tpu.dot_dimension_numbers<[1], [0], [0], [1], [0, 0, 1, 1], [], []>} : vector<128x512xbf16>, vector<512x128xbf16>, vector<128x128xf32> -> vector<128x128xf32>
      %c0_7 = arith.constant 0 : index
      %c0_8 = arith.constant 0 : index
      %12 = vector.load %arg6[%c0_7, %c0_8] : memref<1x128xf32, #tpu.memory_space<vmem>>, vector<1x128xf32>
      %13 = vector.broadcast %12 : vector<1x128xf32> to vector<128x128xf32>
      %14 = arith.addf %11, %13 : vector<128x128xf32>
      %cst_9 = arith.constant 0.000000e+00 : f32
      %15 = vector.broadcast %cst_9 : f32 to vector<128x128xf32>
      %16 = arith.maximumf %14, %15 : vector<128x128xf32>
      %17 = arith.truncf %16 : vector<128x128xf32> to vector<128x128xbf16>
      %c0_10 = arith.constant 0 : index
      %c0_11 = arith.constant 0 : index
      %18 = vector.load %arg9[%c0_10, %c0_11] : memref<128x128xf32, #tpu.memory_space<vmem>>, vector<128x128xf32>
      %c0_12 = arith.constant 0 : index
      %c0_13 = arith.constant 0 : index
      %19 = vector.load %arg7[%c0_12, %c0_13] : memref<128x128xbf16, #tpu.memory_space<vmem>>, vector<128x128xbf16>
      %cst_14 = arith.constant dense<0.000000e+00> : vector<128x128xf32>
      %20 = tpu.matmul %17, %19, %cst_14 {dimension_numbers = #tpu.dot_dimension_numbers<[1], [0], [0], [1], [0, 0, 1, 1], [], []>} : vector<128x128xbf16>, vector<128x128xbf16>, vector<128x128xf32> -> vector<128x128xf32>
      %21 = arith.addf %18, %20 : vector<128x128xf32>
      %c0_15 = arith.constant 0 : index
      %c0_16 = arith.constant 0 : index
      %22 = vector.load %arg9[%c0_15, %c0_16] : memref<128x128xf32, #tpu.memory_space<vmem>>, vector<128x128xf32>
      tpu.vector_store %arg9[%c0_15, %c0_16], %21 {strides = array<i32>} : memref<128x128xf32, #tpu.memory_space<vmem>>, vector<128x128xf32>,
    } else {
    }
    return
  }
  func.func @transform_0(%arg0: i32, %arg1: i32) -> (i32, i32) {
    %c1_i32 = arith.constant 1 : i32
    %0 = arith.minsi %arg1, %c1_i32 : i32
    %c0_i32 = arith.constant 0 : i32
    return %arg0, %0 : i32, i32
  }
  func.func @transform_1(%arg0: i32, %arg1: i32) -> (i32, i32) {
    %c1_i32 = arith.constant 1 : i32
    %0 = arith.minsi %arg1, %c1_i32 : i32
    %c0_i32 = arith.constant 0 : i32
    %c0_i32_0 = arith.constant 0 : i32
    return %0, %c0_i32 : i32, i32
  }
  func.func @transform_2(%arg0: i32, %arg1: i32) -> (i32, i32) {
    %c0_i32 = arith.constant 0 : i32
    %c0_i32_0 = arith.constant 0 : i32
    %c0_i32_1 = arith.constant 0 : i32
    return %c0_i32, %c0_i32_0 : i32, i32
  }
  func.func @transform_3(%arg0: i32, %arg1: i32) -> (i32, i32) {
    %c2_i32 = arith.constant 2 : i32
    %0 = arith.subi %arg1, %c2_i32 : i32
    %c0_i32 = arith.constant 0 : i32
    %c3_i32 = arith.constant 3 : i32
    %1 = arith.maxsi %c0_i32, %0 : i32
    %2 = arith.minsi %c3_i32, %1 : i32
    %c0_i32_0 = arith.constant 0 : i32
    %c0_i32_1 = arith.constant 0 : i32
    return %c0_i32_0, %2 : i32, i32
  }
  func.func @transform_4(%arg0: i32, %arg1: i32) -> (i32, i32) {
    %c2_i32 = arith.constant 2 : i32
    %0 = arith.subi %arg1, %c2_i32 : i32
    %c0_i32 = arith.constant 0 : i32
    %c3_i32 = arith.constant 3 : i32
    %1 = arith.maxsi %c0_i32, %0 : i32
    %2 = arith.minsi %c3_i32, %1 : i32
    %c0_i32_0 = arith.constant 0 : i32
    %c0_i32_1 = arith.constant 0 : i32
    return %c0_i32_0, %2 : i32, i32
  }
  func.func @transform_5(%arg0: i32, %arg1: i32) -> (i32, i32) {
    %c2_i32 = arith.constant 2 : i32
    %0 = arith.subi %arg1, %c2_i32 : i32
    %c0_i32 = arith.constant 0 : i32
    %c3_i32 = arith.constant 3 : i32
    %1 = arith.maxsi %c0_i32, %0 : i32
    %2 = arith.minsi %c3_i32, %1 : i32
    %c0_i32_0 = arith.constant 0 : i32
    %c0_i32_1 = arith.constant 0 : i32
    return %2, %c0_i32_0 : i32, i32
  }
  func.func @transform_6(%arg0: i32, %arg1: i32) -> (i32, i32) {
    %c0_i32 = arith.constant 0 : i32
    %c0_i32_0 = arith.constant 0 : i32
    %c0_i32_1 = arith.constant 0 : i32
    return %c0_i32, %c0_i32_0 : i32, i32
  }
  func.func @transform_7(%arg0: i32, %arg1: i32) -> (i32, i32) {
    %c0_i32 = arith.constant 0 : i32
    %c0_i32_0 = arith.constant 0 : i32
    return %arg0, %c0_i32 : i32, i32
  }
}

</mosaic_0001>

<bundles_post_ra>
// kernel: tpu_custom_call.1
= control target key start
LH: loop header
LB: loop body
LE: loop exit
PB: predicated region body
PF: predicated region fallthrough
CT: control target
= control target key end

     0   :  { %s4953_s0 = inlined_call_operand.hbm [shape: bf16[256,512], index: 0, kind: input, shape index: {}]   ;;  %s4954_s1 = inlined_call_operand.hbm [shape: bf16[512,512], index: 1, kind: input, shape index: {}]   ;;  %s4955_s2 = inlined_call_operand.hbm [shape: f32[1,512], index: 2, kind: input, shape index: {}]   ;;  %s4956_s3 = inlined_call_operand.hbm [shape: bf16[512,512], index: 3, kind: input, shape index: {}]   ;;  %s4957_s4 = inlined_call_operand.hbm [shape: f32[1,512], index: 4, kind: input, shape index: {}]   ;;  %s4958_s5 = inlined_call_operand.hbm [shape: bf16[512,128], index: 5, kind: input, shape index: {}]   ;;  %s4959_s6 = inlined_call_operand.hbm [shape: f32[1,128], index: 6, kind: input, shape index: {}]   ;;  %s4960_s7 = inlined_call_operand.hbm [shape: f32[256,128], index: 7, kind: output, shape index: {}]  }
   0x1   :  { %5003 = sst [smem:[#allocation44_spill]] %s4953_s0 }
   0x2   :  { %5004 = sst [smem:[#allocation45_spill]] %s4954_s1 }
   0x3   :  { %5005 = sst [smem:[#allocation46_spill]] %s4955_s2 }
   0x4   :  { %5006 = sst [smem:[#allocation47_spill]] %s4956_s3 }
   0x5   :  { %5007 = sst [smem:[#allocation48_spill]] %s4957_s4 }
   0x6   :  { %5008 = sst [smem:[#allocation49_spill]] %s4958_s5 }
   0x7   :  { %5009 = sst [smem:[#allocation50_spill]] %s4959_s6 }
   0x8   :  { %5010 = sst [smem:[#allocation51_spill]] %s4960_s7 }
   0x9   :  { %12 = vsyncpa [#allocation5], 0 }
   0xa   :  { %14 = vsyncpa [#allocation5 + $0x1], 0 }
   0xb   :  { %15 = vsyncpa [#allocation8], 0 }
   0xc   :  { %17 = vsyncpa [#allocation8 + $0x1], 0 }
   0xd   :  { %18 = vsyncpa [#allocation11], 0 }
   0xe   :  { %20 = vsyncpa [#allocation11 + $0x1], 0 }
   0xf   :  { %21 = vsyncpa [#allocation14], 0 }
  0x10   :  { %23 = vsyncpa [#allocation14 + $0x1], 0 }
  0x11   :  { %24 = vsyncpa [#allocation6], 0 }
  0x12   :  { %26 = vsyncpa [#allocation6 + $0x1], 0  ;;  %s4021_s24 = smov 0   ;;  %s4023_s25 = smov 0  }
  0x13   :  { %s4025_s26 = smov 0   ;;  %s4027_s27 = smov 0  }
  0x14   :  { %s4029_s28 = smov 0   ;;  %s4031_s29 = smov 0  }
  0x15   :  { %s4033_s30 = smov 0   ;;  %s4035_s8 = smov 0  }
  0x16   :  { %s4037_s9 = smov 0   ;;  %s4039_s10 = smov 0  }
  0x17   :  { %s4041_s11 = smov 0   ;;  %s4043_s12 = smov 0  }
  0x18   :  { %s4045_s13 = smov 0   ;;  %s4047_s14 = smov 0  }
  0x19   :  { %s4049_s15 = smov 0   ;;  %s4051_s16 = smov 0  }
  0x1a   :  { %s4053_s17 = smov 0  }
  0x1b LB: > { %5011 = sst [smem:[#allocation24_spill]] %s3898_s24  ;;  %s4101_s18 = sadd.s32 4294967295, %s3962_s17   ;;  %s3962_s17 = sphi %s4053_s17, %s32_s17   ;;  %s3958_s16 = sphi %s4051_s16, %s5116_s16   ;;  %s3954_s15 = sphi %s4049_s15, %s5115_s15   ;;  %s3950_s14 = sphi %s4047_s14, %s5114_s14   ;;  %s3946_s13 = sphi %s4045_s13, %s5113_s13   ;;  %s3942_s12 = sphi %s4043_s12, %s5112_s12   ;;  %s3938_s11 = sphi %s4041_s11, %s5111_s11   ;;  %s3934_s10 = sphi %s4039_s10, %s5101_s10   ;;  %s3930_s9 = sphi %s4037_s9, %s5110_s9   ;;  %s3926_s8 = sphi %s4035_s8, %s5109_s8   ;;  %s3922_s30 = sphi %s4033_s30, %s5108_s30   ;;  %s3918_s29 = sphi %s4031_s29, %s5100_s29   ;;  %s3914_s28 = sphi %s4029_s28, %s5099_s28   ;;  %s3910_s27 = sphi %s4027_s27, %s5098_s27   ;;  %s3906_s26 = sphi %s4025_s26, %s5107_s26   ;;  %s3902_s25 = sphi %s4023_s25, %s5106_s25   ;;  %s3898_s24 = sphi %s4021_s24, %s5097_s24  }
  0x1c   : > { %5012 = sst [smem:[#allocation25_spill]] %s3902_s25  ;;  %s2778_s19 = sadd.s32 4294967294, %s3962_s17  }
  0x1d   : > { %5013 = sst [smem:[#allocation26_spill]] %s3914_s28  ;;  %p70_p0 = scmp.ne.s32.totalorder %s3938_s11, %s3934_s10 }
  0x1e   : > { %5014 = sst [smem:[#allocation27_spill]] %s3918_s29  ;;  %p4972_p1 = scmp.eq.s32.totalorder %s4101_s18, 0 }
  0x1f   : > { %5015 = sst [smem:[#allocation28_spill]] %s3938_s11  ;;  %p100_p2 = scmp.ne.s32.totalorder %s3926_s8, %s3922_s30 }
  0x20   : > { %5016 = sst [smem:[#allocation29_spill]] %s3946_s13  ;;  %p157_p3 = scmp.ne.s32.totalorder %s3914_s28, %s3910_s27 }
  0x21   : > { %5017 = sst [smem:[#allocation30_spill]] %s3950_s14  ;;  %p4110_p4 = por %p4972_p1, %p70_p0 }
  0x22   : > { %5018 = sst [smem:[#allocation31_spill]] %s3954_s15  ;;  %p4117_p5 = por %p100_p2, %p4972_p1 }
  0x23   : > { %5019 = sst [smem:[#allocation32_spill]] %s3958_s16  ;;  %p4123_p6 = por %p157_p3, %p4972_p1 }
  0x24   : > { %5020 = sst [smem:[#allocation33_spill]] %s4101_s18  ;;  %p273_p7 = scmp.ne.s32.totalorder %s3906_s26, %s3902_s25 }
  0x25   : > { %s5021_s20 = scalar_select %p4110_p4, 1, 0 }
  0x26   : > { %s5023_s22 = scalar_select %p4117_p5, 1, 0 }
  0x27   : > { %5022 = sst [smem:[#allocation34_spill]] %s5021_s20  ;;  %p274_p8 = scmp.eq.s32.totalorder %s4101_s18, 11 }
  0x28   : > { %5024 = sst [smem:[#allocation35_spill]] %s5023_s22  ;;  %p279_p9 = scmp.ne.s32.totalorder %s3902_s25, %s3898_s24 }
  0x29   : > { %s5025_s23 = scalar_select %p4123_p6, 1, 0 }
  0x2a   : > { %p280_p10 = scmp.eq.s32.totalorder %s2778_s19, 11  ;;  %p4132_p11 = por %p274_p8, %p273_p7 }
  0x2b   : > { %5026 = sst [smem:[#allocation36_spill]] %s5025_s23  ;;  %p2815_p12 = scmp.ge.s32.totalorder %s3962_s17, 1 }
  0x2c   : > { %s5027_s27 = scalar_select %p4132_p11, 1, 0 }
  0x2d   : > { %p4137_p13 = por %p280_p10, %p279_p9  ;;  %p287_p0 = scmp.lt.s32.totalorder %s3962_s17, 13 }
  0x2e   : > { %5028 = sst [smem:[#allocation37_spill]] %s5027_s27  ;;  %s3964_s21 = smov [#allocation9]  }
  0x2f   : > { %s5029_s30 = scalar_select %p4137_p13, 1, 0 }
  0x30   : > { %p4142_p2 = pnand %p2815_p12, %p287_p0  ;;  %s300_s7 = sshll.u32 %s3964_s21, 4  ;;  %s301_s7 = int_to_ptr.vmem [resolvable:$true] %s300_s7 }
  0x31   : > { %5030 = sst [smem:[#allocation38_spill]] %s5029_s30  ;;  %s3965_s19 = smov [#allocation15]  }
  0x32   : > { %s5031_s10 = scalar_select %p4142_p2, 1, 0 }
  0x33   : > { %p3226_p3 = pneg %p4142_p2  ;;  %s311_s24 = sshll.u32 %s3965_s19, 4  ;;  %s4154_s24 = int_to_ptr.vmem [resolvable:$true] %s311_s24 }
  0x34   : > { %5032 = sst [smem:[#allocation39_spill]] %s5031_s10 }
  0x35   : > { %p4150_p7 = pnand %p3226_p3, %p4972_p1  ;;  %s5034_s2 = sld [smem:[#allocation46_spill]] }
  0x37   : > { %p3568_p9 = pneg %p4150_p7 }
  0x3b   : > { %s3566_s13 = scalar_lea.hbm %s5034_s2, 64 }
  0x3c   : > { %p3567_p8 = scmp.ne.s32.totalorder %s5034_s2, %s3566_s13  ;;  %p3573_p0 = scmp.lt.u32.totalorder %s3566_s13, %s5034_s2 }
  0x3e   : > { %p3569_p10 = pnand %p3568_p9, %p3567_p8 }
  0x40   : > { %p3570_p12 = pneg %p3569_p10 }
  0x42   : > { %p3575_p3 = pnand %p3573_p0, %p3570_p12 }
  0x44   : > { %3578 = shalt.err (!%p3575_p3)
}
  0x45   : > { %s3579_s22 = scalar_lea.vmem %s301_s7, 64  ;;  %p3587_p6 = scmp.lt.s32.totalorder %s301_s7, %s301_s7 }
  0x46   : > { %p3580_p1 = scmp.ne.s32.totalorder %s301_s7, %s3579_s22  ;;  %p3588_p5 = scmp.lt.s32.totalorder %s3579_s22, %s3579_s22 }
  0x48   : > { %p3582_p13 = pnand %p3580_p1, %p3568_p9  ;;  %p3589_p4 = por %p3588_p5, %p3587_p6 }
  0x4a   : > { %p3583_p11 = pneg %p3582_p13 }
  0x4c   : > { %p3590_p2 = pnand %p3589_p4, %p3583_p11 }
  0x4e   : > { %3593 = shalt.err (!%p3590_p2)
}
  0x4f   : > { %3229 = dma.hbm_to_vmem [thread:$0]  (!%p4150_p7), %s5034_s2, 64, %s301_s7, [#allocation8]  }
  0x50   : > { %s5035_s6 = sld [smem:[#allocation50_spill]] }
  0x56   : > { %s3594_s30 = scalar_lea.hbm %s5035_s6, 16 }
  0x57   : > { %p3595_p1 = scmp.ne.s32.totalorder %s5035_s6, %s3594_s30  ;;  %p3601_p6 = scmp.lt.u32.totalorder %s3594_s30, %s5035_s6 }
  0x59   : > { %p3597_p5 = pnand %p3595_p1, %p3568_p9 }
  0x5b   : > { %p3598_p4 = pneg %p3597_p5 }
  0x5d   : > { %p3603_p11 = pnand %p3601_p6, %p3598_p4 }
  0x5f   : > { %3606 = shalt.err (!%p3603_p11)
}
  0x60   : > { %s3607_s7 = scalar_lea.vmem %s4154_s24, 16  ;;  %s3614_s25 = scalar_lea.vmem %s4154_s24, 32 }
  0x61   : > { %p3608_p13 = scmp.ne.s32.totalorder %s4154_s24, %s3607_s7  ;;  %p3615_p10 = scmp.lt.s32.totalorder %s4154_s24, %s4154_s24 }
  0x62   : > { %p3616_p12 = scmp.lt.s32.totalorder %s3614_s25, %s3607_s7 }
  0x63   : > { %p3610_p2 = pnand %p3608_p13, %p3568_p9 }
  0x64   : > { %p3617_p0 = por %p3616_p12, %p3615_p10 }
  0x65   : > { %p3611_p8 = pneg %p3610_p2 }
  0x67   : > { %p3618_p3 = pnand %p3617_p0, %p3611_p8 }
  0x69   : > { %3621 = shalt.err (!%p3618_p3)
}
  0x6a   : > { %3232 = dma.hbm_to_vmem [thread:$0]  (!%p4150_p7), %s5035_s6, 16, %s4154_s24, [#allocation14]  }
  0x6b   : > { %s41_s13 = sadd.s32 1, %s3954_s15  ;;  %p4985_p9 = scmp.eq.s32.totalorder %s3962_s17, 0 }
  0x6c   : > { %p4206_p1 = scmp.ge.s32.totalorder %s41_s13, 6  ;;  %s2779_s27 = sadd.s32 4294967294, %s3954_s15 }
  0x6d   : > { %p132_p5 = scmp.gt.s32.totalorder %s2779_s27, 0  ;;  %p2780_p4 = scmp.lt.s32.totalorder %s2779_s27, 3 }
  0x6e   : > { %s5036_s23 = scalar_select %p4206_p1, 1, 0 }
  0x6f   : > { %s5118_s13 = smov (%p4206_p1, %s41_s13), 0  ;;  %s5120_s27 = smov (!%p132_p5, %s2779_s27), 0 }
  0x70   : > { %5037 = sst [smem:[#allocation40_spill]] %s5118_s13  ;;  %s2785_s30 = sadd.s32 4294967294, %s5118_s13 }
  0x71   : > { %s144_s24 = sadd.s32 1, %s3918_s29  ;;  %s5122_s27 = smov (!%p2780_p4, %s5120_s27), 3 }
  0x72   : > { %p137_p7 = scmp.gt.s32.totalorder %s2785_s30, 0  ;;  %p2786_p6 = scmp.lt.s32.totalorder %s2785_s30, 3 }
  0x73   : > { %p151_p11 = scmp.ne.s32.totalorder %s3918_s29, %s3914_s28  ;;  %p4984_p13 = scmp.lt.s32.totalorder %s3962_s17, 12 }
  0x74   : > { %s5124_s30 = smov (!%p137_p7, %s2785_s30), 0  ;;  %s4229_s19 = sand.u32 1, %s3962_s17  }
  0x75   : > { %p4224_p2 = por %p151_p11, %p4985_p9  ;;  %s5126_s30 = smov (!%p2786_p6, %s5124_s30), 3 }
  0x76   : > { %s4232_s22 = sand.u32 1, %s3918_s29   ;;  %s141_s7 = ssub.s32 %s5122_s27, %s5126_s30 }
  0x77   : > { %p142_p8 = scmp.eq.s32.totalorder %s141_s7, 0  ;;  %s2828_s25 = sshll.u32 %s4232_s22, 8 }
  0x78   : > { %s2835_s18 = sshll.u32 %s5122_s27, 6  ;;  %s5040_s3 = sld [smem:[#allocation47_spill]] }
  0x79   : > { %s4238_s14 = scalar_select %p142_p8, %s3918_s29, %s144_s24  }
  0x7a   : > { %s376_s20 = scalar_lea.vmem [#allocation10], %s2828_s25  ;;  %p4251_p10 = pnand %p4984_p13, %p4224_p2 }
  0x7b   : > { %5039 = sst [smem:[#allocation41_spill]] %s4238_s14  ;;  %s387_s10 = sshll.u32 %s376_s20, 4  ;;  %s4245_s10 = int_to_ptr.vmem [resolvable:$true] %s387_s10 }
  0x7c   : > { %s5041_s30 = scalar_select %p4251_p10, 1, 0 }
  0x7d   : > { %p4260_p0 = pneg %p4251_p10 }
  0x7e   : > { %s4243_s28 = scalar_lea.hbm %s5040_s3, %s2835_s18  ;;  %5042 = sst [smem:[#allocation42_spill]] %s5041_s30 }
  0x7f   : > { %s3622_s7 = scalar_lea.hbm %s4243_s28, 4096  ;;  %s3627_s21 = scalar_lea.hbm %s5040_s3, 16384 }
  0x80   : > { %p3623_p12 = scmp.ne.s32.totalorder %s4243_s28, %s3622_s7  ;;  %p3628_p4 = scmp.lt.u32.totalorder %s4243_s28, %s5040_s3 }
  0x81   : > { %p3629_p7 = scmp.lt.u32.totalorder %s3627_s21, %s3622_s7  ;;  %p3631_p11 = scmp.lt.u32.totalorder %s3622_s7, %s4243_s28 }
  0x82   : > { %p3625_p3 = pnand %p4260_p0, %p3623_p12 }
  0x83   : > { %p3630_p6 = por %p3629_p7, %p3628_p4 }
  0x84   : > { %p3626_p5 = pneg %p3625_p3 }
  0x85   : > { %p3632_p2 = por %p3631_p11, %p3630_p6 }
  0x87   : > { %p3633_p8 = pnand %p3632_p2, %p3626_p5 }
  0x89   : > { %3636 = shalt.err (!%p3633_p8)
}
  0x8a   : > { %s3637_s24 = scalar_lea.vmem %s4245_s10, 4096  ;;  %s3966_s6 = smov [#allocation10]  }
  0x8b   : > { %p3638_p12 = scmp.ne.s32.totalorder %s4245_s10, %s3637_s24  ;;  %s3642_s20 = sshll.u32 %s3966_s6, 4  ;;  %s3643_s20 = int_to_ptr.vmem [resolvable:$false] %s3642_s20 }
  0x8c   : > { %s3644_s25 = scalar_lea.vmem %s3643_s20, 8192  ;;  %p3645_p9 = scmp.lt.s32.totalorder %s4245_s10, %s3643_s20 }
  0x8d   : > { %p3640_p3 = pnand %p3638_p12, %p4260_p0  ;;  %p3646_p1 = scmp.lt.s32.totalorder %s3644_s25, %s3637_s24 }
  0x8f   : > { %p3641_p13 = pneg %p3640_p3  ;;  %p3647_p4 = por %p3646_p1, %p3645_p9 }
  0x91   : > { %p3648_p7 = pnand %p3647_p4, %p3641_p13 }
  0x93   : > { %3651 = shalt.err (!%p3648_p7)
}
  0x94   : > { %s4989_s7 = smov 256   ;;  %s4987_s24 = smov 64  }
  0x95   : > { %s4988_s21 = smov 4   ;;  %s5044_s18 = scalar_lea.sflag [#allocation11], %s4229_s19 }
  0x96   : > { %3242 = dma.hbm_to_vmem [thread:$0]  (!%p4251_p10), %s4243_s28, 4096, %s4245_s10, %s5044_s18, %s4989_s7, %s4987_s24, %s4988_s21  }
  0x97   : > { %p48_p9 = scmp.lt.s32.totalorder %s3954_s15, 1  ;;  %s44_s6 = sadd.s32 1, %s3958_s16 }
  0x98   : > { %p50_p1 = scmp.lt.s32.totalorder %s5118_s13, 1  ;;  %p5045_p13 = scmp.ne.s32.totalorder %s5036_s23, 0 }
  0x99   : > { %s4295_s20 = scalar_select %p48_p9, %s3954_s15, 1 }
  0x9a   : > { %s5128_s6 = smov (!%p5045_p13, %s44_s6), %s3958_s16  ;;  %s57_s25 = sadd.s32 1, %s3942_s12 }
  0x9b   : > { %p46_p5 = scmp.ge.s32.totalorder %s5128_s6, 2  ;;  %p64_p6 = scmp.ne.s32.totalorder %s3942_s12, %s3938_s11 }
  0x9c   : > { %s51_s3 = scalar_select %p50_p1, %s5118_s13, 1 }
  0x9d   : > { %s5130_s6 = smov (%p46_p5, %s5128_s6), 0  ;;  %p5047_p2 = scmp.eq.s32.totalorder %s3962_s17, 0 }
  0x9e   : > { %5046 = sst [smem:[#allocation43_spill]] %s5130_s6  ;;  %s4302_s28 = ssub.s32 %s4295_s20, %s51_s3 }
  0x9f   : > { %s52_s10 = ssub.s32 %s3958_s16, %s5130_s6  ;;  %p4312_p8 = por %p5047_p2, %p64_p6 }
  0xa0   : > { %s54_s23 = sor.u32 %s4302_s28, %s52_s10  ;;  %p261_p3 = scmp.eq.s32.totalorder %s52_s10, 0 }
  0xa1   : > { %p55_p12 = scmp.eq.s32.totalorder %s54_s23, 0  ;;  %s322_s24 = sand.u32 1, %s3942_s12  }
  0xa2   : > { %s2821_s21 = sshll.u32 %s4295_s20, 1  ;;  %s5049_s3 = sadd.s32 1, %s3906_s26 }
  0xa3   : > { %s4319_s7 = scalar_select %p55_p12, %s3942_s12, %s57_s25  }
  0xa4   : > { %s4324_s13 = scalar_select %p261_p3, %s3906_s26, %s5049_s3  }
  0xa5   : > { %s2819_s15 = sshll.u32 %s322_s24, 7  ;;  %s3003_s6 = sshll.u32 %s3958_s16, 6 }
  0xa6   : > { %s335_s14 = sadd.s32 %s3003_s6, %s2821_s21  ;;  %s326_s29 = scalar_lea.vmem [#allocation4], %s2819_s15 }
  0xa7   : > { %s338_s11 = sshll.u32 %s326_s29, 4  ;;  %s2823_s5 = sshll.u32 %s335_s14, 6  ;;  %s4327_s11 = int_to_ptr.vmem [resolvable:$true] %s338_s11 }
  0xa8   : > { %s5050_s0 = sld [smem:[#allocation44_spill]]  ;;  %p5051_p4 = scmp.lt.s32.totalorder %s3962_s17, 12 }
  0xa9   : > { %s4342_s29 = scalar_lea.sflag [#allocation5], %s322_s24 }
  0xaa   : > { %p4338_p7 = pnand %p5051_p4, %p4312_p8 }
  0xac   : > { %p3654_p1 = pneg %p4338_p7 }
  0xae   : > { %s4332_s23 = scalar_lea.hbm %s5050_s0, %s2823_s5  ;;  %s3657_s14 = scalar_lea.hbm %s5050_s0, 8192 }
  0xaf   : > { %s3652_s15 = scalar_lea.hbm %s4332_s23, 2048  ;;  %p3658_p6 = scmp.lt.u32.totalorder %s4332_s23, %s5050_s0 }
  0xb0   : > { %p3653_p9 = scmp.ne.s32.totalorder %s4332_s23, %s3652_s15  ;;  %p3659_p2 = scmp.lt.u32.totalorder %s3657_s14, %s3652_s15 }
  0xb1   : > { %p3661_p12 = scmp.lt.u32.totalorder %s3652_s15, %s4332_s23 }
  0xb2   : > { %p3655_p13 = pnand %p3654_p1, %p3653_p9  ;;  %p3660_p8 = por %p3659_p2, %p3658_p6 }
  0xb4   : > { %p3656_p5 = pneg %p3655_p13  ;;  %p3662_p3 = por %p3661_p12, %p3660_p8 }
  0xb6   : > { %p3663_p4 = pnand %p3662_p3, %p3656_p5 }
  0xb8   : > { %3666 = shalt.err (!%p3663_p4)
}
  0xb9   : > { %s3667_s24 = scalar_lea.vmem %s4327_s11, 2048  ;;  %s3970_s6 = smov [#allocation4]  }
  0xba   : > { %p3668_p9 = scmp.ne.s32.totalorder %s4327_s11, %s3667_s24  ;;  %s3672_s10 = sshll.u32 %s3970_s6, 4  ;;  %s3673_s10 = int_to_ptr.vmem [resolvable:$false] %s3672_s10 }
  0xbb   : > { %s3674_s18 = scalar_lea.vmem %s3673_s10, 4096  ;;  %p3675_p10 = scmp.lt.s32.totalorder %s4327_s11, %s3673_s10 }
  0xbc   : > { %p3670_p13 = pnand %p3668_p9, %p3654_p1  ;;  %p3676_p6 = scmp.lt.s32.totalorder %s3674_s18, %s3667_s24 }
  0xbe   : > { %p3671_p11 = pneg %p3670_p13  ;;  %p3677_p2 = por %p3676_p6, %p3675_p10 }
  0xc0   : > { %p3678_p8 = pnand %p3677_p2, %p3671_p11 }
  0xc2   : > { %3681 = shalt.err (!%p3678_p8)
}
  0xc3   : > { %s3971_s3 = smov 128   ;;  %s3972_s15 = smov 8  }
  0xc4   : > { %s5053_s4 = smov 256   ;;  %s87_s5 = sadd.s32 1, %s3930_s9 }
  0xc5   : > { %3236 = dma.hbm_to_vmem [thread:$0]  (!%p4338_p7), %s4332_s23, 2048, %s4327_s11, %s4342_s29, %s5053_s4, %s3971_s3, %s3972_s15  }
  0xc6   : > { %p94_p10 = scmp.ne.s32.totalorder %s3930_s9, %s3926_s8  ;;  %p5054_p11 = scmp.eq.s32.totalorder %s4302_s28, 0 }
  0xc7   : > { %p5055_p1 = scmp.eq.s32.totalorder %s3962_s17, 0  ;;  %s350_s30 = sand.u32 1, %s3930_s9  }
  0xc8   : > { %s4377_s14 = scalar_select %p5054_p11, %s3930_s9, %s87_s5  }
  0xc9   : > { %p96_p5 = por %p94_p10, %p5055_p1  ;;  %s2824_s21 = sshll.u32 %s350_s30, 9 }
  0xca   : > { %s3005_s24 = sshll.u32 %s4295_s20, 13  ;;  %s5056_s1 = sld [smem:[#allocation45_spill]] }
  0xcb   : > { %s352_s11 = scalar_lea.vmem [#allocation7], %s2824_s21  ;;  %p5057_p7 = scmp.lt.s32.totalorder %s3962_s17, 12 }
  0xcc   : > { %s362_s23 = sshll.u32 %s352_s11, 4  ;;  %s349_s20 = scalar_lea.sflag [#allocation8], %s4229_s19  ;;  %s4394_s23 = int_to_ptr.vmem [resolvable:$true] %s362_s23 }
  0xcd   : > { %p4390_p12 = pnand %p5057_p7, %p96_p5 }
  0xcf   : > { %p3684_p4 = pneg %p4390_p12 }
  0xd0   : > { %s4386_s18 = scalar_lea.hbm %s5056_s1, %s3005_s24  ;;  %s3687_s15 = scalar_lea.hbm %s5056_s1, 16384 }
  0xd1   : > { %s3682_s25 = scalar_lea.hbm %s4386_s18, 8192  ;;  %p3688_p6 = scmp.lt.u32.totalorder %s4386_s18, %s5056_s1 }
  0xd2   : > { %p3683_p3 = scmp.ne.s32.totalorder %s4386_s18, %s3682_s25  ;;  %p3689_p2 = scmp.lt.u32.totalorder %s3687_s15, %s3682_s25 }
  0xd3   : > { %p3691_p10 = scmp.lt.u32.totalorder %s3682_s25, %s4386_s18 }
  0xd4   : > { %p3685_p9 = pnand %p3684_p4, %p3683_p3  ;;  %p3690_p8 = por %p3689_p2, %p3688_p6 }
  0xd6   : > { %p3686_p13 = pneg %p3685_p9  ;;  %p3692_p11 = por %p3691_p10, %p3690_p8 }
  0xd8   : > { %p3693_p1 = pnand %p3692_p11, %p3686_p13 }
  0xda   : > { %3696 = shalt.err (!%p3693_p1)
}
  0xdb   : > { %s3697_s21 = scalar_lea.vmem %s4394_s23, 8192  ;;  %s3973_s24 = smov [#allocation7]  }
  0xdc   : > { %p3698_p5 = scmp.ne.s32.totalorder %s4394_s23, %s3697_s21  ;;  %s3702_s6 = sshll.u32 %s3973_s24, 4  ;;  %s3703_s6 = int_to_ptr.vmem [resolvable:$false] %s3702_s6 }
  0xdd   : > { %s3704_s10 = scalar_lea.vmem %s3703_s6, 16384  ;;  %p3705_p9 = scmp.lt.s32.totalorder %s4394_s23, %s3703_s6 }
  0xde   : > { %p3700_p7 = pnand %p3698_p5, %p3684_p4  ;;  %p3706_p6 = scmp.lt.s32.totalorder %s3704_s10, %s3697_s21 }
  0xe0   : > { %p3701_p3 = pneg %p3700_p7  ;;  %p3707_p2 = por %p3706_p6, %p3705_p9 }
  0xe2   : > { %p3708_p8 = pnand %p3707_p2, %p3701_p3 }
  0xe4   : > { %3711 = shalt.err (!%p3708_p8)
}
  0xe5   : > { %s3974_s11 = smov 16   ;;  %s2842_s25 = sshll.u32 %s5122_s27, 4 }
  0xe6   : > { %3239 = dma.hbm_to_vmem [thread:$0]  (!%p4390_p12), %s4386_s18, 8192, %s4394_s23, %s349_s20, %s5053_s4, %s5053_s4, %s3974_s11  }
  0xe7   : > { %s400_s29 = scalar_lea.vmem [#allocation12], %s4232_s22  ;;  %s5059_s30 = sld [smem:[#allocation48_spill]] }
  0xe8   : > { %s412_s3 = sshll.u32 %s400_s29, 4  ;;  %s413_s3 = int_to_ptr.vmem [resolvable:$true] %s412_s3 }
  0xed   : > { %s5060_s21 = smov %s5059_s30  ;;  %s410_s24 = scalar_lea.hbm %s5059_s30, %s2842_s25 }
  0xee   : > { %s3712_s6 = scalar_lea.hbm %s410_s24, 16  ;;  %s3717_s0 = scalar_lea.hbm %s5060_s21, 64 }
  0xef   : > { %p3713_p4 = scmp.ne.s32.totalorder %s410_s24, %s3712_s6  ;;  %p3718_p12 = scmp.lt.u32.totalorder %s410_s24, %s5060_s21 }
  0xf0   : > { %p3719_p11 = scmp.lt.u32.totalorder %s3717_s0, %s3712_s6  ;;  %p3721_p5 = scmp.lt.u32.totalorder %s3712_s6, %s410_s24 }
  0xf1   : > { %p3715_p13 = pnand %p3713_p4, %p4260_p0 }
  0xf2   : > { %p3720_p1 = por %p3719_p11, %p3718_p12 }
  0xf3   : > { %p3716_p10 = pneg %p3715_p13 }
  0xf4   : > { %p3722_p7 = por %p3721_p5, %p3720_p1 }
  0xf6   : > { %p3723_p3 = pnand %p3722_p7, %p3716_p10 }
  0xf8   : > { %3726 = shalt.err (!%p3723_p3)
}
  0xf9   : > { %s3727_s4 = scalar_lea.vmem %s413_s3, 16  ;;  %s3975_s18 = smov [#allocation12]  }
  0xfa   : > { %p3728_p9 = scmp.ne.s32.totalorder %s413_s3, %s3727_s4  ;;  %s3732_s23 = sshll.u32 %s3975_s18, 4  ;;  %s3733_s23 = int_to_ptr.vmem [resolvable:$false] %s3732_s23 }
  0xfb   : > { %s3734_s20 = scalar_lea.vmem %s3733_s23, 32  ;;  %p3735_p8 = scmp.lt.s32.totalorder %s413_s3, %s3733_s23 }
  0xfc   : > { %p3730_p6 = pnand %p3728_p9, %p4260_p0  ;;  %p3736_p4 = scmp.lt.s32.totalorder %s3734_s20, %s3727_s4 }
  0xfe   : > { %p3731_p2 = pneg %p3730_p6  ;;  %p3737_p13 = por %p3736_p4, %p3735_p8 }
 0x100   : > { %p3738_p11 = pnand %p3737_p13, %p3731_p2 }
 0x102   : > { %3741 = shalt.err (!%p3738_p11)
}
 0x103   : > { %s5061_s0 = sld [smem:[#allocation42_spill]]  ;;  %s5063_s1 = scalar_lea.sflag [#allocation11], %s4229_s19 }
 0x104   : > { %s2843_s16 = sshll.u32 %s4232_s22, 6  ;;  %s3012_s11 = sshll.u32 %s5122_s27, 10 }
 0x105   : > { %s5064_s15 = sld [smem:[#allocation49_spill]]  ;;  %s423_s6 = scalar_lea.vmem [#allocation13], %s2843_s16 }
 0x106   : > { %s435_s28 = sshll.u32 %s423_s6, 4  ;;  %s420_s10 = scalar_lea.sflag [#allocation14], %s4229_s19  ;;  %s4452_s28 = int_to_ptr.vmem [resolvable:$true] %s435_s28 }
 0x109   : > { %p5062_p12 = scmp.ne.s32.totalorder %s5061_s0, 0 }
 0x10b   : > { %3245 = dma.hbm_to_vmem [thread:$0]  (!%p5062_p12), %s410_s24, 16, %s413_s3, %s5063_s1  }
 0x10c   : > { %s5065_s5 = smov %s5064_s15  ;;  %s4450_s30 = scalar_lea.hbm %s5064_s15, %s3012_s11 }
 0x10d   : > { %s3742_s4 = scalar_lea.hbm %s4450_s30, 1024  ;;  %s3747_s3 = scalar_lea.hbm %s5065_s5, 4096 }
 0x10e   : > { %p3743_p10 = scmp.ne.s32.totalorder %s4450_s30, %s3742_s4  ;;  %p3748_p7 = scmp.lt.u32.totalorder %s4450_s30, %s5065_s5 }
 0x10f   : > { %p3749_p3 = scmp.lt.u32.totalorder %s3747_s3, %s3742_s4  ;;  %p3751_p6 = scmp.lt.u32.totalorder %s3742_s4, %s4450_s30 }
 0x110   : > { %p3745_p1 = pnand %p3743_p10, %p4260_p0 }
 0x111   : > { %p3750_p9 = por %p3749_p3, %p3748_p7 }
 0x112   : > { %p3746_p5 = pneg %p3745_p1 }
 0x113   : > { %p3752_p2 = por %p3751_p6, %p3750_p9 }
 0x115   : > { %p3753_p8 = pnand %p3752_p2, %p3746_p5 }
 0x117   : > { %3756 = shalt.err (!%p3753_p8)
}
 0x118   : > { %s3757_s23 = scalar_lea.vmem %s4452_s28, 1024  ;;  %s3976_s20 = smov [#allocation13]  }
 0x119   : > { %p3758_p4 = scmp.ne.s32.totalorder %s4452_s28, %s3757_s23  ;;  %s3762_s1 = sshll.u32 %s3976_s20, 4  ;;  %s3763_s1 = int_to_ptr.vmem [resolvable:$false] %s3762_s1 }
 0x11a   : > { %s3764_s16 = scalar_lea.vmem %s3763_s1, 2048  ;;  %p3765_p10 = scmp.lt.s32.totalorder %s4452_s28, %s3763_s1 }
 0x11b   : > { %p3760_p13 = pnand %p3758_p4, %p4260_p0  ;;  %p3766_p1 = scmp.lt.s32.totalorder %s3764_s16, %s3757_s23 }
 0x11d   : > { %p3761_p11 = pneg %p3760_p13  ;;  %p3767_p7 = por %p3766_p1, %p3765_p10 }
 0x11f   : > { %p3768_p3 = pnand %p3767_p7, %p3761_p11 }
 0x121   : > { %3771 = shalt.err (!%p3768_p3)
}
 0x122   : > { %s5066_s11 = smov 4   ;;  %s5067_s25 = smov 64  }
 0x123   : > { %3248 = dma.hbm_to_vmem [thread:$0]  (!%p5062_p12), %s4450_s30, 1024, %s4452_s28, %s420_s10, %s5067_s25, %s5067_s25, %s5066_s11  }
 0x124   : > { %s5068_s2 = sld [smem:[#allocation39_spill]] }
 0x12a   : > { %p5069_p0 = scmp.ne.s32.totalorder %s5068_s2, 0 }
 0x12b   : > { %s5070_s29 = sld [smem:[#allocation28_spill]] (!%p5069_p0)  ;;  %s5071_s15 = sld [smem:[#allocation34_spill]] (!%p5069_p0) }
 0x12c   : > { %447 = sbr.rel (%p5069_p0) target bundleno = 1352 (0x548), region = 48 }
 0x131   : > { %s449_s6 = sand.u32 (!%p5069_p0), 1, %s5070_s29   ;;  %p5072_p5 = scmp.ne.s32.totalorder (!%p5069_p0), %s5071_s15, 0 }
 0x132   : > { %s2853_s4 = sshll.u32 (!%p5069_p0), %s449_s6, 7  ;;  %s450_s27 = scalar_lea.sflag (!%p5069_p0), [#allocation5], %s449_s6 }
 0x133   : > { %s4484_s22 = scalar_lea.vmem [#allocation4], %s2853_s4 }
 0x134   : > { %3869 = dma.done.wait (%p5072_p5), %s450_s27, 2048  }
 0x135   : > { %3871 = vsyncadd (%p5072_p5), %s450_s27, 4294965248  ;;  %s5073_s0 = sld [smem:[#allocation33_spill]]  ;;  %s5074_s19 = sld [smem:[#allocation35_spill]] }
 0x136   : > { %s460_s30 = sand.u32 1, %s3926_s8  }
 0x137   : > { %s2854_s28 = sshll.u32 %s460_s30, 9 }
 0x138   : > { %s4492_s24 = scalar_lea.vmem [#allocation7], %s2854_s28 }
 0x13b   : > { %s458_s3 = sand.u32 1, %s5073_s0   ;;  %p5075_p12 = scmp.ne.s32.totalorder %s5074_s19, 0 }
 0x13c   : > { %s459_s10 = scalar_lea.sflag [#allocation8], %s458_s3 }
 0x13d   : > { %3873 = dma.done.wait (%p5075_p12), %s459_s10, 8192  }
 0x13e   : > { %3875 = vsyncadd (%p5075_p12), %s459_s10, 4294959104  ;;  %p5076_p9 = scmp.eq.s32.totalorder %s5073_s0, 0 }
 0x140   : > { %3877 = dma.done.wait (%p5076_p9), [#allocation8], 64   ;;  %p5077_p6 = pmov %p5076_p9 }
 0x141   : > { %s5078_s18 = sld [smem:[#allocation26_spill]]  ;;  %s5079_s23 = sld [smem:[#allocation36_spill]] }
 0x142   : > { %3879 = vsyncadd (%p5077_p6), [#allocation8], 4294967232  ;;  %s472_s16 = scalar_lea.sflag [#allocation11], %s458_s3 }
 0x147   : > { %s4503_s20 = sand.u32 1, %s5078_s18   ;;  %p5080_p2 = scmp.ne.s32.totalorder %s5079_s23, 0 }
 0x148   : > { %s2856_s1 = sshll.u32 %s4503_s20, 8 }
 0x149   : > { %s4506_s11 = scalar_lea.vmem [#allocation10], %s2856_s1 }
 0x14a   : > { %3881 = dma.done.wait (%p5080_p2), %s472_s16, 4112  }
 0x14b   : > { %3883 = vsyncadd (%p5080_p2), %s472_s16, 4294963184  ;;  %s2857_s25 = sshll.u32 %s4503_s20, 6  ;;  %s483_s2 = scalar_lea.vmem [#allocation12], %s4503_s20 }
 0x14c   : > { %s489_s29 = scalar_lea.sflag [#allocation14], %s458_s3  ;;  %s4514_s15 = scalar_lea.vmem [#allocation13], %s2857_s25 }
 0x14d   : > { %3885 = dma.done.wait (%p5080_p2), %s489_s29, 1024  }
 0x14e   : > { %3887 = vsyncadd (%p5080_p2), %s489_s29, 4294966272  ;;  %p5081_p8 = pmov %p5077_p6 }
 0x14f   : > { %p5082_p4 = pmov %p5077_p6 }
 0x150   : > { %3889 = dma.done.wait (%p5081_p8), [#allocation14], 16  }
 0x151   : > { %3891 = vsyncadd (%p5082_p4), [#allocation14], 4294967280  ;;  %s5083_s6 = sld [smem:[#allocation25_spill]]  ;;  %s5084_s3 = sld [smem:[#allocation29_spill]] }
 0x157   : > { %s543_s4 = sand.u32 1, %s5083_s6   ;;  %p2860_p13 = scmp.ge.s32.totalorder %s5084_s3, 2 }
 0x158   : > { %s2859_s27 = sshll.u32 %s543_s4, 7  ;;  %s5085_s30 = sld [smem:[#allocation29_spill]] (!%p2860_p13) }
 0x159   : > { %s4527_s19 = scalar_lea.vmem [#allocation16], %s2859_s27  ;;  %574 = sbr.rel (%p2860_p13) target bundleno = 724 (0x2d4), region = 80 }
 0x15e   : > { %p2861_p11 = scmp.ne.s32.totalorder (!%p2860_p13), %s5085_s30, 0 }
 0x160   : > { %578 = sbr.rel (%p2861_p11) target bundleno = 385 (0x181), region = 84  ;;  %v3977_v0 = vmov (!%p2861_p11), 0.0  }
 0x161   : > { %579 = vst [vmem:[#allocation2] sm:$0xff] (!%p2861_p11), %v3977_v0  ;;  %580 = vst [vmem:[#allocation2 + $0x8] sm:$0xff] (!%p2861_p11), %v3977_v0 }
 0x162   : > { %581 = vst [vmem:[#allocation2 + $0x10] sm:$0xff] (!%p2861_p11), %v3977_v0  ;;  %582 = vst [vmem:[#allocation2 + $0x18] sm:$0xff] (!%p2861_p11), %v3977_v0 }
 0x163   : > { %583 = vst [vmem:[#allocation2 + $0x20] sm:$0xff] (!%p2861_p11), %v3977_v0  ;;  %584 = vst [vmem:[#allocation2 + $0x28] sm:$0xff] (!%p2861_p11), %v3977_v0 }
 0x164   : > { %585 = vst [vmem:[#allocation2 + $0x30] sm:$0xff] (!%p2861_p11), %v3977_v0  ;;  %586 = vst [vmem:[#allocation2 + $0x38] sm:$0xff] (!%p2861_p11), %v3977_v0 }
 0x165   : > { %587 = vst [vmem:[#allocation2 + $0x40] sm:$0xff] (!%p2861_p11), %v3977_v0  ;;  %588 = vst [vmem:[#allocation2 + $0x48] sm:$0xff] (!%p2861_p11), %v3977_v0 }
 0x166   : > { %589 = vst [vmem:[#allocation2 + $0x50] sm:$0xff] (!%p2861_p11), %v3977_v0  ;;  %590 = vst [vmem:[#allocation2 + $0x58] sm:$0xff] (!%p2861_p11), %v3977_v0 }
 0x167   : > { %591 = vst [vmem:[#allocation2 + $0x60] sm:$0xff] %v3977_v0  ;;  %592 = vst [vmem:[#allocation2 + $0x68] sm:$0xff] %v3977_v0 }
 0x168   : > { %593 = vst [vmem:[#allocation2 + $0x70] sm:$0xff] %v3977_v0  ;;  %594 = vst [vmem:[#allocation2 + $0x78] sm:$0xff] %v3977_v0 }
 0x169   : > { %595 = vst [vmem:[#allocation2 + $0x80] sm:$0xff] %v3977_v0  ;;  %596 = vst [vmem:[#allocation2 + $0x88] sm:$0xff] %v3977_v0 }
 0x16a   : > { %597 = vst [vmem:[#allocation2 + $0x90] sm:$0xff] %v3977_v0  ;;  %598 = vst [vmem:[#allocation2 + $0x98] sm:$0xff] %v3977_v0 }
 0x16b   : > { %599 = vst [vmem:[#allocation2 + $0xa0] sm:$0xff] %v3977_v0  ;;  %600 = vst [vmem:[#allocation2 + $0xa8] sm:$0xff] %v3977_v0 }
 0x16c   : > { %601 = vst [vmem:[#allocation2 + $0xb0] sm:$0xff] %v3977_v0  ;;  %602 = vst [vmem:[#allocation2 + $0xb8] sm:$0xff] %v3977_v0 }
 0x16d   : > { %603 = vst [vmem:[#allocation2 + $0xc0] sm:$0xff] %v3977_v0  ;;  %604 = vst [vmem:[#allocation2 + $0xc8] sm:$0xff] %v3977_v0 }
 0x16e   : > { %605 = vst [vmem:[#allocation2 + $0xd0] sm:$0xff] %v3977_v0  ;;  %606 = vst [vmem:[#allocation2 + $0xd8] sm:$0xff] %v3977_v0 }
 0x16f   : > { %607 = vst [vmem:[#allocation2 + $0xe0] sm:$0xff] %v3977_v0  ;;  %608 = vst [vmem:[#allocation2 + $0xe8] sm:$0xff] %v3977_v0 }
 0x170   : > { %609 = vst [vmem:[#allocation2 + $0xf0] sm:$0xff] %v3977_v0  ;;  %610 = vst [vmem:[#allocation2 + $0xf8] sm:$0xff] %v3977_v0 }
 0x171   : > { %611 = vst [vmem:[#allocation2 + $0x100] sm:$0xff] %v3977_v0  ;;  %612 = vst [vmem:[#allocation2 + $0x108] sm:$0xff] %v3977_v0 }
 0x172   : > { %613 = vst [vmem:[#allocation2 + $0x110] sm:$0xff] %v3977_v0  ;;  %614 = vst [vmem:[#allocation2 + $0x118] sm:$0xff] %v3977_v0 }
 0x173   : > { %615 = vst [vmem:[#allocation2 + $0x120] sm:$0xff] %v3977_v0  ;;  %616 = vst [vmem:[#allocation2 + $0x128] sm:$0xff] %v3977_v0 }
 0x174   : > { %617 = vst [vmem:[#allocation2 + $0x130] sm:$0xff] %v3977_v0  ;;  %618 = vst [vmem:[#allocation2 + $0x138] sm:$0xff] %v3977_v0 }
 0x175   : > { %619 = vst [vmem:[#allocation2 + $0x140] sm:$0xff] %v3977_v0  ;;  %620 = vst [vmem:[#allocation2 + $0x148] sm:$0xff] %v3977_v0 }
 0x176   : > { %621 = vst [vmem:[#allocation2 + $0x150] sm:$0xff] %v3977_v0  ;;  %622 = vst [vmem:[#allocation2 + $0x158] sm:$0xff] %v3977_v0 }
 0x177   : > { %623 = vst [vmem:[#allocation2 + $0x160] sm:$0xff] %v3977_v0  ;;  %624 = vst [vmem:[#allocation2 + $0x168] sm:$0xff] %v3977_v0 }
 0x178   : > { %625 = vst [vmem:[#allocation2 + $0x170] sm:$0xff] %v3977_v0  ;;  %626 = vst [vmem:[#allocation2 + $0x178] sm:$0xff] %v3977_v0 }
 0x179   : > { %627 = vst [vmem:[#allocation2 + $0x180] sm:$0xff] %v3977_v0  ;;  %628 = vst [vmem:[#allocation2 + $0x188] sm:$0xff] %v3977_v0 }
 0x17a   : > { %629 = vst [vmem:[#allocation2 + $0x190] sm:$0xff] %v3977_v0  ;;  %630 = vst [vmem:[#allocation2 + $0x198] sm:$0xff] %v3977_v0 }
 0x17b   : > { %631 = vst [vmem:[#allocation2 + $0x1a0] sm:$0xff] %v3977_v0  ;;  %632 = vst [vmem:[#allocation2 + $0x1a8] sm:$0xff] %v3977_v0 }
 0x17c   : > { %633 = vst [vmem:[#allocation2 + $0x1b0] sm:$0xff] %v3977_v0  ;;  %634 = vst [vmem:[#allocation2 + $0x1b8] sm:$0xff] %v3977_v0 }
 0x17d   : > { %635 = vst [vmem:[#allocation2 + $0x1c0] sm:$0xff] %v3977_v0  ;;  %636 = vst [vmem:[#allocation2 + $0x1c8] sm:$0xff] %v3977_v0 }
 0x17e   : > { %637 = vst [vmem:[#allocation2 + $0x1d0] sm:$0xff] %v3977_v0  ;;  %638 = vst [vmem:[#allocation2 + $0x1d8] sm:$0xff] %v3977_v0 }
 0x17f   : > { %639 = vst [vmem:[#allocation2 + $0x1e0] sm:$0xff] %v3977_v0  ;;  %640 = vst [vmem:[#allocation2 + $0x1e8] sm:$0xff] %v3977_v0 }
 0x180   : > { %641 = vst [vmem:[#allocation2 + $0x1f0] sm:$0xff] %v3977_v0  ;;  %642 = vst [vmem:[#allocation2 + $0x1f8] sm:$0xff] %v3977_v0 }
 0x181 PF: > { %v3406_v1 = vld [vmem:[%s4492_s24 + $0x4] ss:$16 sps:$4 sm:$0xff]   ;;  %v3408_v2 = vld [vmem:[%s4492_s24 + $0xc] ss:$16 sps:$4 sm:$0xff]   ;;  %v3410_v3 = vld [vmem:[%s4492_s24] ss:$16 sps:$4 sm:$0xff]  }
 0x182   : > { %1187 = vmatprep.subr.bf16.mxu0 %v3406_v1  ;;  %v3411_v4 = vld [vmem:[%s4492_s24 + $0x8] ss:$16 sps:$4 sm:$0xff]   ;;  %1300 = vmatprep.subr.bf16.mxu1 %v3408_v2  ;;  %v3412_v5 = vld [vmem:[%s4492_s24 + $0x24] ss:$16 sps:$4 sm:$0xff]   ;;  %v3414_v6 = vld [vmem:[%s4492_s24 + $0x2c] ss:$16 sps:$4 sm:$0xff]  }
 0x183   : > { %1188 = vmatpush1.bf16.msra.mxu0 %v3410_v3  ;;  %1301 = vmatpush1.bf16.msra.mxu1 %v3411_v4  ;;  %v3416_v7 = vld [vmem:[%s4492_s24 + $0x20] ss:$16 sps:$4 sm:$0xff]   ;;  %v3417_v8 = vld [vmem:[%s4492_s24 + $0x28] ss:$16 sps:$4 sm:$0xff]   ;;  %v3418_v9 = vld [vmem:[%s4492_s24 + $0x44] ss:$16 sps:$4 sm:$0xff]  }
 0x184   : > { %1189 = vmatprep.subr.bf16.mxu0 %v3412_v5  ;;  %1302 = vmatprep.subr.bf16.mxu1 %v3414_v6  ;;  %v3420_v10 = vld [vmem:[%s4492_s24 + $0x4c] ss:$16 sps:$4 sm:$0xff]   ;;  %v3422_v11 = vld [vmem:[%s4492_s24 + $0x40] ss:$16 sps:$4 sm:$0xff]   ;;  %v3423_v12 = vld [vmem:[%s4492_s24 + $0x48] ss:$16 sps:$4 sm:$0xff]  }
 0x185   : > { %v3424_v13 = vld [vmem:[%s4492_s24 + $0x64] ss:$16 sps:$4 sm:$0xff]   ;;  %v3426_v14 = vld [vmem:[%s4492_s24 + $0x6c] ss:$16 sps:$4 sm:$0xff]   ;;  %v3428_v15 = vld [vmem:[%s4492_s24 + $0x60] ss:$16 sps:$4 sm:$0xff]  }
 0x186   : > { %v3429_v16 = vld [vmem:[%s4492_s24 + $0x68] ss:$16 sps:$4 sm:$0xff]   ;;  %v3430_v17 = vld [vmem:[%s4492_s24 + $0x84] ss:$16 sps:$4 sm:$0xff]   ;;  %v3432_v18 = vld [vmem:[%s4492_s24 + $0x8c] ss:$16 sps:$4 sm:$0xff]  }
 0x187   : > { %1190 = vmatpush1.bf16.msra.mxu0 %v3416_v7  ;;  %1303 = vmatpush1.bf16.msra.mxu1 %v3417_v8  ;;  %v3434_v19 = vld [vmem:[%s4492_s24 + $0x80] ss:$16 sps:$4 sm:$0xff]   ;;  %v3435_v20 = vld [vmem:[%s4492_s24 + $0x88] ss:$16 sps:$4 sm:$0xff]   ;;  %v3436_v21 = vld [vmem:[%s4492_s24 + $0xa4] ss:$16 sps:$4 sm:$0xff]  }
 0x188   : > { %1191 = vmatprep.subr.bf16.mxu0 %v3418_v9  ;;  %1304 = vmatprep.subr.bf16.mxu1 %v3420_v10  ;;  %v3438_v22 = vld [vmem:[%s4492_s24 + $0xac] ss:$16 sps:$4 sm:$0xff]   ;;  %v3440_v23 = vld [vmem:[%s4492_s24 + $0xa0] ss:$16 sps:$4 sm:$0xff]   ;;  %v3441_v24 = vld [vmem:[%s4492_s24 + $0xa8] ss:$16 sps:$4 sm:$0xff]  }
 0x189   : > { %v3442_v25 = vld [vmem:[%s4492_s24 + $0xc4] ss:$16 sps:$4 sm:$0xff]   ;;  %v3444_v26 = vld [vmem:[%s4492_s24 + $0xcc] ss:$16 sps:$4 sm:$0xff]   ;;  %v3446_v27 = vld [vmem:[%s4492_s24 + $0xc0] ss:$16 sps:$4 sm:$0xff]  }
 0x18a   : > { %v3447_v28 = vld [vmem:[%s4492_s24 + $0xc8] ss:$16 sps:$4 sm:$0xff]   ;;  %v3448_v29 = vld [vmem:[%s4492_s24 + $0xe4] ss:$16 sps:$4 sm:$0xff]   ;;  %v3450_v30 = vld [vmem:[%s4492_s24 + $0xec] ss:$16 sps:$4 sm:$0xff]  }
 0x18b   : > { %1192 = vmatpush1.bf16.msra.mxu0 %v3422_v11  ;;  %1305 = vmatpush1.bf16.msra.mxu1 %v3423_v12  ;;  %v3452_v31 = vld [vmem:[%s4492_s24 + $0xe0] ss:$16 sps:$4 sm:$0xff]   ;;  %v3453_v32 = vld [vmem:[%s4492_s24 + $0xe8] ss:$16 sps:$4 sm:$0xff]   ;;  %v3454_v33 = vld [vmem:[%s4492_s24 + $0x104] ss:$16 sps:$4 sm:$0xff]  }
 0x18c   : > { %1193 = vmatprep.subr.bf16.mxu0 %v3424_v13  ;;  %1306 = vmatprep.subr.bf16.mxu1 %v3426_v14  ;;  %v3456_v34 = vld [vmem:[%s4492_s24 + $0x10c] ss:$16 sps:$4 sm:$0xff]   ;;  %v3458_v35 = vld [vmem:[%s4492_s24 + $0x100] ss:$16 sps:$4 sm:$0xff]   ;;  %v3459_v36 = vld [vmem:[%s4492_s24 + $0x108] ss:$16 sps:$4 sm:$0xff]  }
 0x18d   : > { %v3460_v37 = vld [vmem:[%s4492_s24 + $0x124] ss:$16 sps:$4 sm:$0xff]   ;;  %v3462_v38 = vld [vmem:[%s4492_s24 + $0x12c] ss:$16 sps:$4 sm:$0xff]   ;;  %v3464_v39 = vld [vmem:[%s4492_s24 + $0x120] ss:$16 sps:$4 sm:$0xff]  }
 0x18e   : > { %v3465_v40 = vld [vmem:[%s4492_s24 + $0x128] ss:$16 sps:$4 sm:$0xff]   ;;  %v3466_v41 = vld [vmem:[%s4492_s24 + $0x144] ss:$16 sps:$4 sm:$0xff]   ;;  %v3468_v42 = vld [vmem:[%s4492_s24 + $0x14c] ss:$16 sps:$4 sm:$0xff]  }
 0x18f   : > { %1194 = vmatpush1.bf16.msra.mxu0 %v3428_v15  ;;  %1307 = vmatpush1.bf16.msra.mxu1 %v3429_v16  ;;  %v3470_v43 = vld [vmem:[%s4492_s24 + $0x140] ss:$16 sps:$4 sm:$0xff]   ;;  %v3471_v44 = vld [vmem:[%s4492_s24 + $0x148] ss:$16 sps:$4 sm:$0xff]   ;;  %v3472_v45 = vld [vmem:[%s4492_s24 + $0x164] ss:$16 sps:$4 sm:$0xff]  }
 0x190   : > { %1195 = vmatprep.subr.bf16.mxu0 %v3430_v17  ;;  %1308 = vmatprep.subr.bf16.mxu1 %v3432_v18  ;;  %v3474_v46 = vld [vmem:[%s4492_s24 + $0x16c] ss:$16 sps:$4 sm:$0xff]   ;;  %v3476_v47 = vld [vmem:[%s4492_s24 + $0x160] ss:$16 sps:$4 sm:$0xff]   ;;  %v3477_v48 = vld [vmem:[%s4492_s24 + $0x168] ss:$16 sps:$4 sm:$0xff]  }
 0x191   : > { %v3504_v49 = vld [vmem:[%s4484_s22 + $0x4] ss:$8 sps:$4 sm:$0xff]   ;;  %v3482_v52 = vld [vmem:[%s4492_s24 + $0x180] ss:$16 sps:$4 sm:$0xff]   ;;  %v3483_v53 = vld [vmem:[%s4492_s24 + $0x188] ss:$16 sps:$4 sm:$0xff]  }
 0x192   : > { %v3478_v50 = vld [vmem:[%s4492_s24 + $0x184] ss:$16 sps:$4 sm:$0xff]   ;;  %v3480_v51 = vld [vmem:[%s4492_s24 + $0x18c] ss:$16 sps:$4 sm:$0xff]   ;;  %1219 = vmatprep.mubr.bf16.mxu0 %v3504_v49  ;;  %1332 = vmatprep.mubr.bf16.mxu1 %v3504_v49  ;;  %v3488_v56 = vld [vmem:[%s4492_s24 + $0x1a0] ss:$16 sps:$4 sm:$0xff]  }
 0x193   : > { %1196 = vmatpush1.bf16.msra.mxu0 %v3434_v19  ;;  %1309 = vmatpush1.bf16.msra.mxu1 %v3435_v20  ;;  %v3484_v54 = vld [vmem:[%s4492_s24 + $0x1a4] ss:$16 sps:$4 sm:$0xff]   ;;  %v3486_v55 = vld [vmem:[%s4492_s24 + $0x1ac] ss:$16 sps:$4 sm:$0xff]   ;;  %v3489_v57 = vld [vmem:[%s4492_s24 + $0x1a8] ss:$16 sps:$4 sm:$0xff]  }
 0x194   : > { %1197 = vmatprep.subr.bf16.mxu0 %v3436_v21  ;;  %1310 = vmatprep.subr.bf16.mxu1 %v3438_v22  ;;  %v3490_v58 = vld [vmem:[%s4492_s24 + $0x1c4] ss:$16 sps:$4 sm:$0xff]   ;;  %v3492_v59 = vld [vmem:[%s4492_s24 + $0x1cc] ss:$16 sps:$4 sm:$0xff]   ;;  %v3494_v60 = vld [vmem:[%s4492_s24 + $0x1c0] ss:$16 sps:$4 sm:$0xff]  }
 0x195   : > { %v3495_v61 = vld [vmem:[%s4492_s24 + $0x1c8] ss:$16 sps:$4 sm:$0xff]   ;;  %v3496_v62 = vld [vmem:[%s4492_s24 + $0x1e4] ss:$16 sps:$4 sm:$0xff]   ;;  %v3498_v63 = vld [vmem:[%s4492_s24 + $0x1ec] ss:$16 sps:$4 sm:$0xff]  }
 0x196   : > { %v3500_v0 = vld [vmem:[%s4492_s24 + $0x1e0] ss:$16 sps:$4 sm:$0xff]   ;;  %v3501_v1 = vld [vmem:[%s4492_s24 + $0x1e8] ss:$16 sps:$4 sm:$0xff]   ;;  %v3505_v3 = vld [vmem:[%s4484_s22 + $0x14] ss:$8 sps:$4 sm:$0xff]  }
 0x197   : > { %1198 = vmatpush1.bf16.msra.mxu0 %v3440_v23  ;;  %1311 = vmatpush1.bf16.msra.mxu1 %v3441_v24  ;;  %v3502_v2 = vld [vmem:[%s4484_s22] ss:$8 sps:$4 sm:$0xff]   ;;  %v3507_v4 = vld [vmem:[%s4484_s22 + $0x10] ss:$8 sps:$4 sm:$0xff]   ;;  %v3508_v5 = vld [vmem:[%s4484_s22 + $0x24] ss:$8 sps:$4 sm:$0xff]  }
 0x198   : > { %1199 = vmatprep.subr.bf16.mxu0 %v3442_v25  ;;  %1312 = vmatprep.subr.bf16.mxu1 %v3444_v26  ;;  %v3510_v6 = vld [vmem:[%s4484_s22 + $0x20] ss:$8 sps:$4 sm:$0xff]   ;;  %v3511_v7 = vld [vmem:[%s4484_s22 + $0x34] ss:$8 sps:$4 sm:$0xff]   ;;  %v3513_v8 = vld [vmem:[%s4484_s22 + $0x30] ss:$8 sps:$4 sm:$0xff]  }
 0x199   : > { %v3514_v9 = vld [vmem:[%s4484_s22 + $0x44] ss:$8 sps:$4 sm:$0xff]   ;;  %v3516_v10 = vld [vmem:[%s4484_s22 + $0x40] ss:$8 sps:$4 sm:$0xff]   ;;  %v3517_v11 = vld [vmem:[%s4484_s22 + $0x54] ss:$8 sps:$4 sm:$0xff]  }
 0x19a   : > { %v3519_v12 = vld [vmem:[%s4484_s22 + $0x50] ss:$8 sps:$4 sm:$0xff]   ;;  %v3520_v13 = vld [vmem:[%s4484_s22 + $0x64] ss:$8 sps:$4 sm:$0xff]   ;;  %v3522_v14 = vld [vmem:[%s4484_s22 + $0x60] ss:$8 sps:$4 sm:$0xff]  }
 0x19b   : > { %1200 = vmatpush1.bf16.msra.mxu0 %v3446_v27  ;;  %1313 = vmatpush1.bf16.msra.mxu1 %v3447_v28  ;;  %v3523_v15 = vld [vmem:[%s4484_s22 + $0x74] ss:$8 sps:$4 sm:$0xff]   ;;  %v3525_v16 = vld [vmem:[%s4484_s22 + $0x70] ss:$8 sps:$4 sm:$0xff]   ;;  %v643_v17 = vld [vmem:[#allocation2] sm:$0xff] }
 0x19c   : > { %1201 = vmatprep.subr.bf16.mxu0 %v3448_v29  ;;  %1314 = vmatprep.subr.bf16.mxu1 %v3450_v30  ;;  %v645_v18 = vld [vmem:[#allocation2 + $0x10] sm:$0xff]  ;;  %v644_v19 = vld [vmem:[#allocation2 + $0x8] sm:$0xff]  ;;  %v646_v20 = vld [vmem:[#allocation2 + $0x18] sm:$0xff] }
 0x19d   : > { %v647_v23 = vld [vmem:[#allocation2 + $0x20] sm:$0xff]  ;;  %v649_v24 = vld [vmem:[#allocation2 + $0x30] sm:$0xff]  ;;  %v648_v29 = vld [vmem:[#allocation2 + $0x28] sm:$0xff] }
 0x19e   : > { %v650_v30 = vld [vmem:[#allocation2 + $0x38] sm:$0xff] }
 0x19f   : > { %1202 = vmatpush1.bf16.msra.mxu0 %v3452_v31  ;;  %1315 = vmatpush1.bf16.msra.mxu1 %v3453_v32 }
 0x1a0   : > { %1203 = vmatprep.subr.bf16.mxu0 %v3454_v33  ;;  %1316 = vmatprep.subr.bf16.mxu1 %v3456_v34 }
 0x1a3   : > { %1204 = vmatpush1.bf16.msra.mxu0 %v3458_v35  ;;  %1317 = vmatpush1.bf16.msra.mxu1 %v3459_v36 }
 0x1a4   : > { %1205 = vmatprep.subr.bf16.mxu0 %v3460_v37  ;;  %1318 = vmatprep.subr.bf16.mxu1 %v3462_v38 }
 0x1a7   : > { %1206 = vmatpush1.bf16.msra.mxu0 %v3464_v39  ;;  %1319 = vmatpush1.bf16.msra.mxu1 %v3465_v40 }
 0x1a8   : > { %1207 = vmatprep.subr.bf16.mxu0 %v3466_v41  ;;  %1320 = vmatprep.subr.bf16.mxu1 %v3468_v42  ;;  %v651_v41 = vld [vmem:[#allocation2 + $0x40] sm:$0xff]  ;;  %v653_v42 = vld [vmem:[#allocation2 + $0x50] sm:$0xff] }
 0x1ab   : > { %1208 = vmatpush1.bf16.msra.mxu0 %v3470_v43  ;;  %1321 = vmatpush1.bf16.msra.mxu1 %v3471_v44  ;;  %v652_v43 = vld [vmem:[#allocation2 + $0x48] sm:$0xff]  ;;  %v654_v44 = vld [vmem:[#allocation2 + $0x58] sm:$0xff] }
 0x1ac   : > { %1209 = vmatprep.subr.bf16.mxu0 %v3472_v45  ;;  %1322 = vmatprep.subr.bf16.mxu1 %v3474_v46 }
 0x1af   : > { %1210 = vmatpush1.bf16.msra.mxu0 %v3476_v47  ;;  %1323 = vmatpush1.bf16.msra.mxu1 %v3477_v48  ;;  %v655_v47 = vld [vmem:[#allocation2 + $0x60] sm:$0xff]  ;;  %v657_v48 = vld [vmem:[#allocation2 + $0x70] sm:$0xff] }
 0x1b0   : > { %1211 = vmatprep.subr.bf16.mxu0 %v3478_v50  ;;  %1324 = vmatprep.subr.bf16.mxu1 %v3480_v51 }
 0x1b3   : > { %1212 = vmatpush1.bf16.msra.mxu0 %v3482_v52  ;;  %1325 = vmatpush1.bf16.msra.mxu1 %v3483_v53  ;;  %v656_v53 = vld [vmem:[#allocation2 + $0x68] sm:$0xff] }
 0x1b4   : > { %1213 = vmatprep.subr.bf16.mxu0 %v3484_v54  ;;  %1326 = vmatprep.subr.bf16.mxu1 %v3486_v55  ;;  %v658_v54 = vld [vmem:[#allocation2 + $0x78] sm:$0xff] }
 0x1b7   : > { %1214 = vmatpush1.bf16.msra.mxu0 %v3488_v56  ;;  %1327 = vmatpush1.bf16.msra.mxu1 %v3489_v57 }
 0x1b8   : > { %1215 = vmatprep.subr.bf16.mxu0 %v3490_v58  ;;  %1328 = vmatprep.subr.bf16.mxu1 %v3492_v59 }
 0x1bb   : > { %1216 = vmatpush1.bf16.msra.mxu0 %v3494_v60  ;;  %1329 = vmatpush1.bf16.msra.mxu1 %v3495_v61 }
 0x1bc   : > { %1217 = vmatprep.subr.bf16.mxu0 %v3496_v62  ;;  %1330 = vmatprep.subr.bf16.mxu1 %v3498_v63 }
 0x1bf   : > { %1218 = vmatpush1.bf16.msra.mxu0 %v3500_v0  ;;  %1331 = vmatpush1.bf16.msra.mxu1 %v3501_v1  ;;  %v659_v1 = vld [vmem:[#allocation2 + $0x80] sm:$0xff] }
 0x1c2   : > { %1220 = vmatmul.mubr.bf16.vlgmr.msra.gmra.mrb[0].mxu0 %v3502_v2  ;;  %1333 = vmatmul.mubr.bf16.vlgmr.msra.gmra.mrb[0].mxu1 %v3502_v2  ;;  %v661_v2 = vld [vmem:[#allocation2 + $0x90] sm:$0xff] }
 0x1c3   : > { %1229 = vmatprep.mubr.bf16.mxu0 %v3505_v3  ;;  %1342 = vmatprep.mubr.bf16.mxu1 %v3505_v3  ;;  %v660_v3 = vld [vmem:[#allocation2 + $0x88] sm:$0xff] }
 0x1ca   : > { %1230 = vmatmul.mubr.bf16.gmra.mrb[4].mxu0 %v3507_v4  ;;  %1343 = vmatmul.mubr.bf16.gmra.mrb[4].mxu1 %v3507_v4  ;;  %v662_v4 = vld [vmem:[#allocation2 + $0x98] sm:$0xff] }
 0x1cb   : > { %1239 = vmatprep.mubr.bf16.mxu0 %v3508_v5  ;;  %1352 = vmatprep.mubr.bf16.mxu1 %v3508_v5 }
 0x1d2   : > { %1240 = vmatmul.mubr.bf16.gmra.mrb[8].mxu0 %v3510_v6  ;;  %1353 = vmatmul.mubr.bf16.gmra.mrb[8].mxu1 %v3510_v6 }
 0x1d3   : > { %1249 = vmatprep.mubr.bf16.mxu0 %v3511_v7  ;;  %1362 = vmatprep.mubr.bf16.mxu1 %v3511_v7  ;;  %v663_v7 = vld [vmem:[#allocation2 + $0xa0] sm:$0xff] }
 0x1da   : > { %1250 = vmatmul.mubr.bf16.gmra.mrb[12].mxu0 %v3513_v8  ;;  %1363 = vmatmul.mubr.bf16.gmra.mrb[12].mxu1 %v3513_v8  ;;  %v665_v8 = vld [vmem:[#allocation2 + $0xb0] sm:$0xff] }
 0x1db   : > { %1259 = vmatprep.mubr.bf16.mxu0 %v3514_v9  ;;  %1372 = vmatprep.mubr.bf16.mxu1 %v3514_v9 }
 0x1e2   : > { %1260 = vmatmul.mubr.bf16.gmra.mrb[16].mxu0 %v3516_v10  ;;  %1373 = vmatmul.mubr.bf16.gmra.mrb[16].mxu1 %v3516_v10 }
 0x1e3   : > { %1269 = vmatprep.mubr.bf16.mxu0 %v3517_v11  ;;  %1382 = vmatprep.mubr.bf16.mxu1 %v3517_v11 }
 0x1ea   : > { %1270 = vmatmul.mubr.bf16.gmra.mrb[20].mxu0 %v3519_v12  ;;  %1383 = vmatmul.mubr.bf16.gmra.mrb[20].mxu1 %v3519_v12 }
 0x1eb   : > { %1279 = vmatprep.mubr.bf16.mxu0 %v3520_v13  ;;  %1392 = vmatprep.mubr.bf16.mxu1 %v3520_v13  ;;  %v664_v13 = vld [vmem:[#allocation2 + $0xa8] sm:$0xff] }
 0x1f2   : > { %1280 = vmatmul.mubr.bf16.gmra.mrb[24].mxu0 %v3522_v14  ;;  %1393 = vmatmul.mubr.bf16.gmra.mrb[24].mxu1 %v3522_v14  ;;  %v666_v14 = vld [vmem:[#allocation2 + $0xb8] sm:$0xff] }
 0x1f3   : > { %1289 = vmatprep.mubr.bf16.mxu0 %v3523_v15  ;;  %1402 = vmatprep.mubr.bf16.mxu1 %v3523_v15 }
 0x1fa   : > { %1290 = vmatmul.mubr.bf16.gmra.mrb[28].mxu0 %v3525_v16  ;;  %1403 = vmatmul.mubr.bf16.gmra.mrb[28].mxu1 %v3525_v16 }
 0x295   : > { %v1221_v21 = vpop.f32.mrb[0].mxu0  ;;  %v1334_v22 = vpop.f32.mrb[0].mxu1 }
 0x296   : > { %v1413_v25 = vadd.f32 %v1221_v21, %v643_v17  ;;  %v1415_v26 = vadd.f32 %v1334_v22, %v645_v18  ;;  %v1223_v27 = vpop.f32.mrb[1].mxu0  ;;  %v1336_v28 = vpop.f32.mrb[1].mxu1 }
 0x297   : > { %v1414_v31 = vadd.f32 %v1223_v27, %v644_v19  ;;  %v1416_v32 = vadd.f32 %v1336_v28, %v646_v20  ;;  %v1225_v33 = vpop.f32.mrb[2].mxu0  ;;  %v1338_v34 = vpop.f32.mrb[2].mxu1  ;;  %v668_v27 = vld [vmem:[#allocation2 + $0xc8] sm:$0xff]  ;;  %v670_v28 = vld [vmem:[#allocation2 + $0xd8] sm:$0xff] }
 0x298   : > { %1477 = vst [vmem:[#allocation2] sm:$0xff] %v1413_v25  ;;  %1479 = vst [vmem:[#allocation2 + $0x10] sm:$0xff] %v1415_v26  ;;  %v1417_v35 = vadd.f32 %v1225_v33, %v647_v23  ;;  %v1419_v36 = vadd.f32 %v1338_v34, %v649_v24  ;;  %v1227_v37 = vpop.f32.mrb[3].mxu0  ;;  %v1340_v38 = vpop.f32.mrb[3].mxu1  ;;  %v667_v25 = vld [vmem:[#allocation2 + $0xc0] sm:$0xff]  ;;  %v669_v26 = vld [vmem:[#allocation2 + $0xd0] sm:$0xff] }
 0x299   : > { %1478 = vst [vmem:[#allocation2 + $0x8] sm:$0xff] %v1414_v31  ;;  %1480 = vst [vmem:[#allocation2 + $0x18] sm:$0xff] %v1416_v32  ;;  %v1418_v39 = vadd.f32 %v1227_v37, %v648_v29  ;;  %v1420_v40 = vadd.f32 %v1340_v38, %v650_v30  ;;  %v671_v31 = vld [vmem:[#allocation2 + $0xe0] sm:$0xff]  ;;  %v673_v32 = vld [vmem:[#allocation2 + $0xf0] sm:$0xff] }
 0x29a   : > { %1481 = vst [vmem:[#allocation2 + $0x20] sm:$0xff] %v1417_v35  ;;  %1483 = vst [vmem:[#allocation2 + $0x30] sm:$0xff] %v1419_v36  ;;  %v672_v37 = vld [vmem:[#allocation2 + $0xe8] sm:$0xff]  ;;  %v674_v38 = vld [vmem:[#allocation2 + $0xf8] sm:$0xff] }
 0x29b   : > { %1482 = vst [vmem:[#allocation2 + $0x28] sm:$0xff] %v1418_v39  ;;  %1484 = vst [vmem:[#allocation2 + $0x38] sm:$0xff] %v1420_v40 }
 0x29d   : > { %v1231_v45 = vpop.f32.mrb[4].mxu0  ;;  %v1344_v46 = vpop.f32.mrb[4].mxu1 }
 0x29e   : > { %v1421_v49 = vadd.f32 %v1231_v45, %v651_v41  ;;  %v1423_v50 = vadd.f32 %v1344_v46, %v653_v42  ;;  %v1233_v51 = vpop.f32.mrb[5].mxu0  ;;  %v1346_v52 = vpop.f32.mrb[5].mxu1 }
 0x29f   : > { %v1422_v55 = vadd.f32 %v1233_v51, %v652_v43  ;;  %v1424_v56 = vadd.f32 %v1346_v52, %v654_v44  ;;  %v1235_v57 = vpop.f32.mrb[6].mxu0  ;;  %v1348_v58 = vpop.f32.mrb[6].mxu1  ;;  %v676_v51 = vld [vmem:[#allocation2 + $0x108] sm:$0xff]  ;;  %v678_v52 = vld [vmem:[#allocation2 + $0x118] sm:$0xff] }
 0x2a0   : > { %1485 = vst [vmem:[#allocation2 + $0x40] sm:$0xff] %v1421_v49  ;;  %1487 = vst [vmem:[#allocation2 + $0x50] sm:$0xff] %v1423_v50  ;;  %v1425_v59 = vadd.f32 %v1235_v57, %v655_v47  ;;  %v1427_v60 = vadd.f32 %v1348_v58, %v657_v48  ;;  %v1237_v61 = vpop.f32.mrb[7].mxu0  ;;  %v1350_v62 = vpop.f32.mrb[7].mxu1  ;;  %v675_v49 = vld [vmem:[#allocation2 + $0x100] sm:$0xff]  ;;  %v677_v50 = vld [vmem:[#allocation2 + $0x110] sm:$0xff] }
 0x2a1   : > { %1486 = vst [vmem:[#allocation2 + $0x48] sm:$0xff] %v1422_v55  ;;  %1488 = vst [vmem:[#allocation2 + $0x58] sm:$0xff] %v1424_v56  ;;  %v1426_v63 = vadd.f32 %v1237_v61, %v656_v53  ;;  %v1428_v0 = vadd.f32 %v1350_v62, %v658_v54  ;;  %v679_v55 = vld [vmem:[#allocation2 + $0x120] sm:$0xff]  ;;  %v681_v56 = vld [vmem:[#allocation2 + $0x130] sm:$0xff] }
 0x2a2   : > { %1489 = vst [vmem:[#allocation2 + $0x60] sm:$0xff] %v1425_v59  ;;  %1491 = vst [vmem:[#allocation2 + $0x70] sm:$0xff] %v1427_v60  ;;  %v680_v61 = vld [vmem:[#allocation2 + $0x128] sm:$0xff]  ;;  %v682_v62 = vld [vmem:[#allocation2 + $0x138] sm:$0xff] }
 0x2a3   : > { %1490 = vst [vmem:[#allocation2 + $0x68] sm:$0xff] %v1426_v63  ;;  %1492 = vst [vmem:[#allocation2 + $0x78] sm:$0xff] %v1428_v0 }
 0x2a5   : > { %v1241_v5 = vpop.f32.mrb[8].mxu0  ;;  %v1354_v6 = vpop.f32.mrb[8].mxu1 }
 0x2a6   : > { %v1429_v9 = vadd.f32 %v1241_v5, %v659_v1  ;;  %v1431_v10 = vadd.f32 %v1354_v6, %v661_v2  ;;  %v1243_v11 = vpop.f32.mrb[9].mxu0  ;;  %v1356_v12 = vpop.f32.mrb[9].mxu1 }
 0x2a7   : > { %v1430_v15 = vadd.f32 %v1243_v11, %v660_v3  ;;  %v1432_v16 = vadd.f32 %v1356_v12, %v662_v4  ;;  %v1245_v17 = vpop.f32.mrb[10].mxu0  ;;  %v1358_v18 = vpop.f32.mrb[10].mxu1  ;;  %v684_v11 = vld [vmem:[#allocation2 + $0x148] sm:$0xff]  ;;  %v686_v12 = vld [vmem:[#allocation2 + $0x158] sm:$0xff] }
 0x2a8   : > { %1493 = vst [vmem:[#allocation2 + $0x80] sm:$0xff] %v1429_v9  ;;  %1495 = vst [vmem:[#allocation2 + $0x90] sm:$0xff] %v1431_v10  ;;  %v1433_v19 = vadd.f32 %v1245_v17, %v663_v7  ;;  %v1435_v20 = vadd.f32 %v1358_v18, %v665_v8  ;;  %v1247_v21 = vpop.f32.mrb[11].mxu0  ;;  %v1360_v22 = vpop.f32.mrb[11].mxu1  ;;  %v683_v9 = vld [vmem:[#allocation2 + $0x140] sm:$0xff]  ;;  %v685_v10 = vld [vmem:[#allocation2 + $0x150] sm:$0xff] }
 0x2a9   : > { %1494 = vst [vmem:[#allocation2 + $0x88] sm:$0xff] %v1430_v15  ;;  %1496 = vst [vmem:[#allocation2 + $0x98] sm:$0xff] %v1432_v16  ;;  %v1434_v23 = vadd.f32 %v1247_v21, %v664_v13  ;;  %v1436_v24 = vadd.f32 %v1360_v22, %v666_v14  ;;  %v687_v15 = vld [vmem:[#allocation2 + $0x160] sm:$0xff]  ;;  %v689_v16 = vld [vmem:[#allocation2 + $0x170] sm:$0xff] }
 0x2aa   : > { %1497 = vst [vmem:[#allocation2 + $0xa0] sm:$0xff] %v1433_v19  ;;  %1499 = vst [vmem:[#allocation2 + $0xb0] sm:$0xff] %v1435_v20  ;;  %v688_v21 = vld [vmem:[#allocation2 + $0x168] sm:$0xff]  ;;  %v690_v22 = vld [vmem:[#allocation2 + $0x178] sm:$0xff] }
 0x2ab   : > { %1498 = vst [vmem:[#allocation2 + $0xa8] sm:$0xff] %v1434_v23  ;;  %1500 = vst [vmem:[#allocation2 + $0xb8] sm:$0xff] %v1436_v24 }
 0x2ad   : > { %v1251_v29 = vpop.f32.mrb[12].mxu0  ;;  %v1364_v30 = vpop.f32.mrb[12].mxu1 }
 0x2ae   : > { %v1437_v33 = vadd.f32 %v1251_v29, %v667_v25  ;;  %v1439_v34 = vadd.f32 %v1364_v30, %v669_v26  ;;  %v1253_v35 = vpop.f32.mrb[13].mxu0  ;;  %v1366_v36 = vpop.f32.mrb[13].mxu1 }
 0x2af   : > { %v1438_v39 = vadd.f32 %v1253_v35, %v668_v27  ;;  %v1440_v40 = vadd.f32 %v1366_v36, %v670_v28  ;;  %v1255_v41 = vpop.f32.mrb[14].mxu0  ;;  %v1368_v42 = vpop.f32.mrb[14].mxu1  ;;  %v692_v35 = vld [vmem:[#allocation2 + $0x188] sm:$0xff]  ;;  %v694_v36 = vld [vmem:[#allocation2 + $0x198] sm:$0xff] }
 0x2b0   : > { %1501 = vst [vmem:[#allocation2 + $0xc0] sm:$0xff] %v1437_v33  ;;  %1503 = vst [vmem:[#allocation2 + $0xd0] sm:$0xff] %v1439_v34  ;;  %v1441_v43 = vadd.f32 %v1255_v41, %v671_v31  ;;  %v1443_v44 = vadd.f32 %v1368_v42, %v673_v32  ;;  %v1257_v45 = vpop.f32.mrb[15].mxu0  ;;  %v1370_v46 = vpop.f32.mrb[15].mxu1  ;;  %v691_v33 = vld [vmem:[#allocation2 + $0x180] sm:$0xff]  ;;  %v693_v34 = vld [vmem:[#allocation2 + $0x190] sm:$0xff] }
 0x2b1   : > { %1502 = vst [vmem:[#allocation2 + $0xc8] sm:$0xff] %v1438_v39  ;;  %1504 = vst [vmem:[#allocation2 + $0xd8] sm:$0xff] %v1440_v40  ;;  %v1442_v47 = vadd.f32 %v1257_v45, %v672_v37  ;;  %v1444_v48 = vadd.f32 %v1370_v46, %v674_v38  ;;  %v695_v39 = vld [vmem:[#allocation2 + $0x1a0] sm:$0xff]  ;;  %v697_v40 = vld [vmem:[#allocation2 + $0x1b0] sm:$0xff] }
 0x2b2   : > { %1505 = vst [vmem:[#allocation2 + $0xe0] sm:$0xff] %v1441_v43  ;;  %1507 = vst [vmem:[#allocation2 + $0xf0] sm:$0xff] %v1443_v44  ;;  %v696_v45 = vld [vmem:[#allocation2 + $0x1a8] sm:$0xff]  ;;  %v698_v46 = vld [vmem:[#allocation2 + $0x1b8] sm:$0xff] }
 0x2b3   : > { %1506 = vst [vmem:[#allocation2 + $0xe8] sm:$0xff] %v1442_v47  ;;  %1508 = vst [vmem:[#allocation2 + $0xf8] sm:$0xff] %v1444_v48 }
 0x2b5   : > { %v1261_v53 = vpop.f32.mrb[16].mxu0  ;;  %v1374_v54 = vpop.f32.mrb[16].mxu1 }
 0x2b6   : > { %v1445_v57 = vadd.f32 %v1261_v53, %v675_v49  ;;  %v1447_v58 = vadd.f32 %v1374_v54, %v677_v50  ;;  %v1263_v59 = vpop.f32.mrb[17].mxu0  ;;  %v1376_v60 = vpop.f32.mrb[17].mxu1 }
 0x2b7   : > { %v1446_v63 = vadd.f32 %v1263_v59, %v676_v51  ;;  %v1448_v0 = vadd.f32 %v1376_v60, %v678_v52  ;;  %v1265_v1 = vpop.f32.mrb[18].mxu0  ;;  %v1378_v2 = vpop.f32.mrb[18].mxu1  ;;  %v700_v59 = vld [vmem:[#allocation2 + $0x1c8] sm:$0xff]  ;;  %v702_v60 = vld [vmem:[#allocation2 + $0x1d8] sm:$0xff] }
 0x2b8   : > { %1509 = vst [vmem:[#allocation2 + $0x100] sm:$0xff] %v1445_v57  ;;  %1511 = vst [vmem:[#allocation2 + $0x110] sm:$0xff] %v1447_v58  ;;  %v1449_v3 = vadd.f32 %v1265_v1, %v679_v55  ;;  %v1451_v4 = vadd.f32 %v1378_v2, %v681_v56  ;;  %v1267_v5 = vpop.f32.mrb[19].mxu0  ;;  %v1380_v6 = vpop.f32.mrb[19].mxu1  ;;  %v699_v57 = vld [vmem:[#allocation2 + $0x1c0] sm:$0xff]  ;;  %v701_v58 = vld [vmem:[#allocation2 + $0x1d0] sm:$0xff] }
 0x2b9   : > { %1510 = vst [vmem:[#allocation2 + $0x108] sm:$0xff] %v1446_v63  ;;  %1512 = vst [vmem:[#allocation2 + $0x118] sm:$0xff] %v1448_v0  ;;  %v1450_v7 = vadd.f32 %v1267_v5, %v680_v61  ;;  %v1452_v8 = vadd.f32 %v1380_v6, %v682_v62  ;;  %v703_v63 = vld [vmem:[#allocation2 + $0x1e0] sm:$0xff]  ;;  %v705_v0 = vld [vmem:[#allocation2 + $0x1f0] sm:$0xff] }
 0x2ba   : > { %1513 = vst [vmem:[#allocation2 + $0x120] sm:$0xff] %v1449_v3  ;;  %1515 = vst [vmem:[#allocation2 + $0x130] sm:$0xff] %v1451_v4  ;;  %v704_v5 = vld [vmem:[#allocation2 + $0x1e8] sm:$0xff]  ;;  %v706_v6 = vld [vmem:[#allocation2 + $0x1f8] sm:$0xff] }
 0x2bb   : > { %1514 = vst [vmem:[#allocation2 + $0x128] sm:$0xff] %v1450_v7  ;;  %1516 = vst [vmem:[#allocation2 + $0x138] sm:$0xff] %v1452_v8 }
 0x2bd   : > { %v1271_v13 = vpop.f32.mrb[20].mxu0  ;;  %v1384_v14 = vpop.f32.mrb[20].mxu1 }
 0x2be   : > { %v1453_v17 = vadd.f32 %v1271_v13, %v683_v9  ;;  %v1455_v18 = vadd.f32 %v1384_v14, %v685_v10  ;;  %v1273_v19 = vpop.f32.mrb[21].mxu0  ;;  %v1386_v20 = vpop.f32.mrb[21].mxu1 }
 0x2bf   : > { %v1454_v23 = vadd.f32 %v1273_v19, %v684_v11  ;;  %v1456_v24 = vadd.f32 %v1386_v20, %v686_v12  ;;  %v1275_v25 = vpop.f32.mrb[22].mxu0  ;;  %v1388_v26 = vpop.f32.mrb[22].mxu1 }
 0x2c0   : > { %1517 = vst [vmem:[#allocation2 + $0x140] sm:$0xff] %v1453_v17  ;;  %1519 = vst [vmem:[#allocation2 + $0x150] sm:$0xff] %v1455_v18  ;;  %v1457_v27 = vadd.f32 %v1275_v25, %v687_v15  ;;  %v1459_v28 = vadd.f32 %v1388_v26, %v689_v16  ;;  %v1277_v29 = vpop.f32.mrb[23].mxu0  ;;  %v1390_v30 = vpop.f32.mrb[23].mxu1 }
 0x2c1   : > { %1518 = vst [vmem:[#allocation2 + $0x148] sm:$0xff] %v1454_v23  ;;  %1520 = vst [vmem:[#allocation2 + $0x158] sm:$0xff] %v1456_v24  ;;  %v1458_v31 = vadd.f32 %v1277_v29, %v688_v21  ;;  %v1460_v32 = vadd.f32 %v1390_v30, %v690_v22 }
 0x2c2   : > { %1521 = vst [vmem:[#allocation2 + $0x160] sm:$0xff] %v1457_v27  ;;  %1523 = vst [vmem:[#allocation2 + $0x170] sm:$0xff] %v1459_v28 }
 0x2c3   : > { %1522 = vst [vmem:[#allocation2 + $0x168] sm:$0xff] %v1458_v31  ;;  %1524 = vst [vmem:[#allocation2 + $0x178] sm:$0xff] %v1460_v32 }
 0x2c5   : > { %v1281_v37 = vpop.f32.mrb[24].mxu0  ;;  %v1394_v38 = vpop.f32.mrb[24].mxu1 }
 0x2c6   : > { %v1461_v41 = vadd.f32 %v1281_v37, %v691_v33  ;;  %v1463_v42 = vadd.f32 %v1394_v38, %v693_v34  ;;  %v1283_v43 = vpop.f32.mrb[25].mxu0  ;;  %v1396_v44 = vpop.f32.mrb[25].mxu1 }
 0x2c7   : > { %v1462_v47 = vadd.f32 %v1283_v43, %v692_v35  ;;  %v1464_v48 = vadd.f32 %v1396_v44, %v694_v36  ;;  %v1285_v49 = vpop.f32.mrb[26].mxu0  ;;  %v1398_v50 = vpop.f32.mrb[26].mxu1 }
 0x2c8   : > { %1525 = vst [vmem:[#allocation2 + $0x180] sm:$0xff] %v1461_v41  ;;  %1527 = vst [vmem:[#allocation2 + $0x190] sm:$0xff] %v1463_v42  ;;  %v1465_v51 = vadd.f32 %v1285_v49, %v695_v39  ;;  %v1467_v52 = vadd.f32 %v1398_v50, %v697_v40  ;;  %v1287_v53 = vpop.f32.mrb[27].mxu0  ;;  %v1400_v54 = vpop.f32.mrb[27].mxu1 }
 0x2c9   : > { %1526 = vst [vmem:[#allocation2 + $0x188] sm:$0xff] %v1462_v47  ;;  %1528 = vst [vmem:[#allocation2 + $0x198] sm:$0xff] %v1464_v48  ;;  %v1466_v55 = vadd.f32 %v1287_v53, %v696_v45  ;;  %v1468_v56 = vadd.f32 %v1400_v54, %v698_v46 }
 0x2ca   : > { %1529 = vst [vmem:[#allocation2 + $0x1a0] sm:$0xff] %v1465_v51  ;;  %1531 = vst [vmem:[#allocation2 + $0x1b0] sm:$0xff] %v1467_v52 }
 0x2cb   : > { %1530 = vst [vmem:[#allocation2 + $0x1a8] sm:$0xff] %v1466_v55  ;;  %1532 = vst [vmem:[#allocation2 + $0x1b8] sm:$0xff] %v1468_v56 }
 0x2cd   : > { %v1291_v61 = vpop.f32.mrb[28].mxu0  ;;  %v1404_v62 = vpop.f32.mrb[28].mxu1 }
 0x2ce   : > { %v1469_v1 = vadd.f32 %v1291_v61, %v699_v57  ;;  %v1471_v2 = vadd.f32 %v1404_v62, %v701_v58  ;;  %v1293_v3 = vpop.f32.mrb[29].mxu0  ;;  %v1406_v4 = vpop.f32.mrb[29].mxu1 }
 0x2cf   : > { %v1470_v7 = vadd.f32 %v1293_v3, %v700_v59  ;;  %v1472_v8 = vadd.f32 %v1406_v4, %v702_v60  ;;  %v1295_v9 = vpop.f32.mrb[30].mxu0  ;;  %v1408_v10 = vpop.f32.mrb[30].mxu1 }
 0x2d0   : > { %1533 = vst [vmem:[#allocation2 + $0x1c0] sm:$0xff] %v1469_v1  ;;  %1535 = vst [vmem:[#allocation2 + $0x1d0] sm:$0xff] %v1471_v2  ;;  %v1473_v11 = vadd.f32 %v1295_v9, %v703_v63  ;;  %v1475_v12 = vadd.f32 %v1408_v10, %v705_v0  ;;  %v1297_v13 = vpop.f32.mrb[31].mxu0  ;;  %v1410_v14 = vpop.f32.mrb[31].mxu1 }
 0x2d1   : > { %1534 = vst [vmem:[#allocation2 + $0x1c8] sm:$0xff] %v1470_v7  ;;  %1536 = vst [vmem:[#allocation2 + $0x1d8] sm:$0xff] %v1472_v8  ;;  %v1474_v15 = vadd.f32 %v1297_v13, %v704_v5  ;;  %v1476_v16 = vadd.f32 %v1410_v14, %v706_v6 }
 0x2d2   : > { %1537 = vst [vmem:[#allocation2 + $0x1e0] sm:$0xff] %v1473_v11  ;;  %1539 = vst [vmem:[#allocation2 + $0x1f0] sm:$0xff] %v1475_v12 }
 0x2d3   : > { %1538 = vst [vmem:[#allocation2 + $0x1e8] sm:$0xff] %v1474_v15  ;;  %1540 = vst [vmem:[#allocation2 + $0x1f8] sm:$0xff] %v1476_v16 }
 0x2d4 PF: > { %s5086_s22 = sld [smem:[#allocation29_spill]] }
 0x2da   : > { %p2942_p10 = scmp.lt.s32.totalorder %s5086_s22, 2 }
 0x2db   : > { %s5087_s0 = sld [smem:[#allocation29_spill]] (!%p2942_p10) }
 0x2dc   : > { %1544 = sbr.rel (%p2942_p10) target bundleno = 1324 (0x52c), region = 88 }
 0x2e1   : > { %p2943_p1 = scmp.ne.s32.totalorder (!%p2942_p10), %s5087_s0, 2 }
 0x2e3   : > { %1548 = sbr.rel (%p2943_p1) target bundleno = 791 (0x317), region = 92  ;;  %v1615_v17 = vlaneseq (!%p2943_p1)  ;;  %v1613_v19 = vld [vmem:[#allocation9] sm:$0xf] (!%p2943_p1)  ;;  %v1550_v26 = vld [vmem:[#allocation2 + $0x8] sm:$0xff] (!%p2943_p1)  ;;  %v1551_v28 = vld [vmem:[#allocation2 + $0x10] sm:$0xff] (!%p2943_p1) }
 0x2e4   : > { %v1549_v20 = vld [vmem:[#allocation2] sm:$0xff] (!%p2943_p1)  ;;  %v1554_v27 = vld [vmem:[#allocation2 + $0x28] sm:$0xff] (!%p2943_p1)  ;;  %v1555_v31 = vld [vmem:[#allocation2 + $0x30] sm:$0xff] (!%p2943_p1) }
 0x2e5   : > { %v1616_v18 = vshrl.u32 (!%p2943_p1), %v1615_v17, 7  ;;  %v1553_v21 = vld [vmem:[#allocation2 + $0x20] sm:$0xff] (!%p2943_p1)  ;;  %v1552_v33 = vld [vmem:[#allocation2 + $0x18] sm:$0xff] (!%p2943_p1)  ;;  %v1558_v50 = vld [vmem:[#allocation2 + $0x48] sm:$0xff] (!%p2943_p1) }
 0x2e6   : > { %v1556_v34 = vld [vmem:[#allocation2 + $0x38] sm:$0xff] (!%p2943_p1)  ;;  %v1557_v44 = vld [vmem:[#allocation2 + $0x40] sm:$0xff] (!%p2943_p1)  ;;  %v1562_v51 = vld [vmem:[#allocation2 + $0x68] sm:$0xff] (!%p2943_p1) }
 0x2e7   : > { %v1617_v22 = vsub.s32 (!%p2943_p1), 0, %v1616_v18  ;;  %v1621_v23 = vsub.s32 (!%p2943_p1), 1, %v1616_v18  ;;  %v1625_v24 = vsub.s32 (!%p2943_p1), 2, %v1616_v18  ;;  %v1629_v25 = vsub.s32 (!%p2943_p1), 3, %v1616_v18  ;;  %v1561_v45 = vld [vmem:[#allocation2 + $0x60] sm:$0xff] (!%p2943_p1)  ;;  %v1559_v56 = vld [vmem:[#allocation2 + $0x50] sm:$0xff] (!%p2943_p1) }
 0x2e8   : > { %v1563_v57 = vld [vmem:[#allocation2 + $0x70] sm:$0xff] (!%p2943_p1)  ;;  %v1560_v62 = vld [vmem:[#allocation2 + $0x58] sm:$0xff] (!%p2943_p1)  ;;  %v1565_v4 = vld [vmem:[#allocation2 + $0x80] sm:$0xff] (!%p2943_p1) }
 0x2e9   : > { %v4677_v29 = vrot.slane (!%p2943_p1), %v1613_v19, %v1617_v22  ;;  %v4679_v30 = vrot.slane (!%p2943_p1), %v1613_v19, %v1621_v23  ;;  %v4681_v32 = vrot.slane (!%p2943_p1), %v1613_v19, %v1625_v24  ;;  %v4683_v35 = vrot.slane (!%p2943_p1), %v1613_v19, %v1629_v25  ;;  %v1564_v63 = vld [vmem:[#allocation2 + $0x78] sm:$0xff] (!%p2943_p1)  ;;  %v1569_v9 = vld [vmem:[#allocation2 + $0xa0] sm:$0xff] (!%p2943_p1)  ;;  %v1566_v14 = vld [vmem:[#allocation2 + $0x88] sm:$0xff] (!%p2943_p1) }
 0x2ea   : > { %v1570_v15 = vld [vmem:[#allocation2 + $0xa8] sm:$0xff] }
 0x2eb   : > { %v1635_v36 = vadd.f32 %v4677_v29, %v1549_v20  ;;  %v1639_v37 = vadd.f32 %v4677_v29, %v1553_v21  ;;  %v1636_v38 = vadd.f32 %v4679_v30, %v1550_v26  ;;  %v1640_v39 = vadd.f32 %v4679_v30, %v1554_v27  ;;  %v1567_v20 = vld [vmem:[#allocation2 + $0x90] sm:$0xff]  ;;  %v1568_v26 = vld [vmem:[#allocation2 + $0x98] sm:$0xff] }
 0x2ec   : > { %v1637_v40 = vadd.f32 %v4681_v32, %v1551_v28  ;;  %v1641_v41 = vadd.f32 %v4681_v32, %v1555_v31  ;;  %v1638_v42 = vadd.f32 %v4683_v35, %v1552_v33  ;;  %v1642_v43 = vadd.f32 %v4683_v35, %v1556_v34  ;;  %v1571_v21 = vld [vmem:[#allocation2 + $0xb0] sm:$0xff]  ;;  %v1572_v27 = vld [vmem:[#allocation2 + $0xb8] sm:$0xff] }
 0x2ed   : > { %v1699_v46 = vmax.f32 %v1635_v36, 0.0  ;;  %v1703_v47 = vmax.f32 %v1639_v37, 0.0  ;;  %v1700_v48 = vmax.f32 %v1636_v38, 0.0  ;;  %v1704_v49 = vmax.f32 %v1640_v39, 0.0  ;;  %v1573_v36 = vld [vmem:[#allocation2 + $0xc0] sm:$0xff] }
 0x2ee   : > { %v1701_v52 = vmax.f32 %v1637_v40, 0.0  ;;  %v1705_v53 = vmax.f32 %v1641_v41, 0.0  ;;  %v1702_v54 = vmax.f32 %v1638_v42, 0.0  ;;  %v1706_v55 = vmax.f32 %v1642_v43, 0.0  ;;  %v1577_v41 = vld [vmem:[#allocation2 + $0xe0] sm:$0xff] }
 0x2ef   : > { %v1763_v58 = vpack.c.bf16 %v1703_v47, %v1699_v46  ;;  %v1764_v59 = vpack.c.bf16 %v1704_v49, %v1700_v48  ;;  %v1643_v60 = vadd.f32 %v4677_v29, %v1557_v44  ;;  %v1647_v61 = vadd.f32 %v4677_v29, %v1561_v45  ;;  %v1574_v46 = vld [vmem:[#allocation2 + $0xc8] sm:$0xff] }
 0x2f0   : > { %v1765_v0 = vpack.c.bf16 %v1705_v53, %v1701_v52  ;;  %v1766_v1 = vpack.c.bf16 %v1706_v55, %v1702_v54  ;;  %v1644_v2 = vadd.f32 %v4679_v30, %v1558_v50  ;;  %v1648_v3 = vadd.f32 %v4679_v30, %v1562_v51  ;;  %v1578_v47 = vld [vmem:[#allocation2 + $0xe8] sm:$0xff]  ;;  %v1575_v52 = vld [vmem:[#allocation2 + $0xd0] sm:$0xff] }
 0x2f1   : > { %1795 = vst [vmem:[#allocation3] sm:$0xff] %v1763_v58  ;;  %1796 = vst [vmem:[#allocation3 + $0x8] sm:$0xff] %v1764_v59  ;;  %v1707_v5 = vmax.f32 %v1643_v60, 0.0  ;;  %v1711_v6 = vmax.f32 %v1647_v61, 0.0  ;;  %v1645_v7 = vadd.f32 %v4681_v32, %v1559_v56  ;;  %v1649_v8 = vadd.f32 %v4681_v32, %v1563_v57  ;;  %v1579_v53 = vld [vmem:[#allocation2 + $0xf0] sm:$0xff]  ;;  %v1576_v58 = vld [vmem:[#allocation2 + $0xd8] sm:$0xff] }
 0x2f2   : > { %1797 = vst [vmem:[#allocation3 + $0x10] sm:$0xff] %v1765_v0  ;;  %1798 = vst [vmem:[#allocation3 + $0x18] sm:$0xff] %v1766_v1  ;;  %v1708_v10 = vmax.f32 %v1644_v2, 0.0  ;;  %v1712_v11 = vmax.f32 %v1648_v3, 0.0  ;;  %v1646_v12 = vadd.f32 %v4683_v35, %v1560_v62  ;;  %v1650_v13 = vadd.f32 %v4683_v35, %v1564_v63  ;;  %v1580_v59 = vld [vmem:[#allocation2 + $0xf8] sm:$0xff]  ;;  %v1581_v1 = vld [vmem:[#allocation2 + $0x100] sm:$0xff] }
 0x2f3   : > { %v1767_v16 = vpack.c.bf16 %v1711_v6, %v1707_v5  ;;  %v1709_v17 = vmax.f32 %v1645_v7, 0.0  ;;  %v1713_v18 = vmax.f32 %v1649_v8, 0.0  ;;  %v1651_v19 = vadd.f32 %v4677_v29, %v1565_v4  ;;  %v2944_v60 = vld [vmem:[#allocation15] ss:$0 sm:$0xff] }
 0x2f4   : > { %v1768_v22 = vpack.c.bf16 %v1712_v11, %v1708_v10  ;;  %v1710_v23 = vmax.f32 %v1646_v12, 0.0  ;;  %v1714_v24 = vmax.f32 %v1650_v13, 0.0  ;;  %v1655_v25 = vadd.f32 %v4677_v29, %v1569_v9  ;;  %1834 = vst [vmem:[%s4527_s19] sm:$0xff] %v2944_v60  ;;  %1835 = vst [vmem:[%s4527_s19 + $0x8] sm:$0xff] %v2944_v60  ;;  %v1585_v6 = vld [vmem:[#allocation2 + $0x120] sm:$0xff]  ;;  %v1582_v11 = vld [vmem:[#allocation2 + $0x108] sm:$0xff] }
 0x2f5   : > { %1799 = vst [vmem:[#allocation3 + $0x20] sm:$0xff] %v1767_v16  ;;  %v1769_v28 = vpack.c.bf16 %v1713_v18, %v1709_v17  ;;  %v1715_v31 = vmax.f32 %v1651_v19, 0.0  ;;  %v1652_v33 = vadd.f32 %v4679_v30, %v1566_v14  ;;  %v1656_v34 = vadd.f32 %v4679_v30, %v1570_v15  ;;  %1836 = vst [vmem:[%s4527_s19 + $0x10] sm:$0xff] %v2944_v60  ;;  %v1586_v12 = vld [vmem:[#allocation2 + $0x128] sm:$0xff]  ;;  %v1583_v17 = vld [vmem:[#allocation2 + $0x110] sm:$0xff] }
 0x2f6   : > { %1800 = vst [vmem:[#allocation3 + $0x28] sm:$0xff] %v1768_v22  ;;  %v1770_v37 = vpack.c.bf16 %v1714_v24, %v1710_v23  ;;  %v1719_v38 = vmax.f32 %v1655_v25, 0.0  ;;  %v1653_v39 = vadd.f32 %v4681_v32, %v1567_v20  ;;  %v1657_v40 = vadd.f32 %v4681_v32, %v1571_v21  ;;  %1837 = vst [vmem:[%s4527_s19 + $0x18] sm:$0xff] %v2944_v60  ;;  %v1587_v18 = vld [vmem:[#allocation2 + $0x130] sm:$0xff]  ;;  %v1584_v23 = vld [vmem:[#allocation2 + $0x118] sm:$0xff] }
 0x2f7   : > { %1801 = vst [vmem:[#allocation3 + $0x30] sm:$0xff] %v1769_v28  ;;  %v1716_v42 = vmax.f32 %v1652_v33, 0.0  ;;  %v1720_v43 = vmax.f32 %v1656_v34, 0.0  ;;  %v1654_v44 = vadd.f32 %v4683_v35, %v1568_v26  ;;  %v1658_v45 = vadd.f32 %v4683_v35, %v1572_v27  ;;  %1838 = vst [vmem:[%s4527_s19 + $0x20] sm:$0xff] %v2944_v60  ;;  %v1588_v24 = vld [vmem:[#allocation2 + $0x138] sm:$0xff] }
 0x2f8   : > { %1802 = vst [vmem:[#allocation3 + $0x38] sm:$0xff] %v1770_v37  ;;  %v1771_v48 = vpack.c.bf16 %v1719_v38, %v1715_v31  ;;  %v1717_v49 = vmax.f32 %v1653_v39, 0.0  ;;  %v1721_v50 = vmax.f32 %v1657_v40, 0.0  ;;  %v1659_v51 = vadd.f32 %v4677_v29, %v1573_v36  ;;  %1839 = vst [vmem:[%s4527_s19 + $0x28] sm:$0xff] %v2944_v60  ;;  %v1589_v31 = vld [vmem:[#allocation2 + $0x140] sm:$0xff] }
 0x2f9   : > { %v1772_v54 = vpack.c.bf16 %v1720_v43, %v1716_v42  ;;  %v1718_v55 = vmax.f32 %v1654_v44, 0.0  ;;  %v1722_v56 = vmax.f32 %v1658_v45, 0.0  ;;  %v1663_v57 = vadd.f32 %v4677_v29, %v1577_v41  ;;  %1840 = vst [vmem:[%s4527_s19 + $0x30] sm:$0xff] %v2944_v60  ;;  %1841 = vst [vmem:[%s4527_s19 + $0x38] sm:$0xff] %v2944_v60  ;;  %v1593_v38 = vld [vmem:[#allocation2 + $0x160] sm:$0xff]  ;;  %v1590_v43 = vld [vmem:[#allocation2 + $0x148] sm:$0xff] }
 0x2fa   : > { %1803 = vst [vmem:[#allocation3 + $0x40] sm:$0xff] %v1771_v48  ;;  %v1773_v61 = vpack.c.bf16 %v1721_v50, %v1717_v49  ;;  %v1723_v62 = vmax.f32 %v1659_v51, 0.0  ;;  %v1660_v63 = vadd.f32 %v4679_v30, %v1574_v46  ;;  %v1664_v0 = vadd.f32 %v4679_v30, %v1578_v47  ;;  %1842 = vst [vmem:[%s4527_s19 + $0x40] sm:$0xff] %v2944_v60  ;;  %v1594_v44 = vld [vmem:[#allocation2 + $0x168] sm:$0xff]  ;;  %v1591_v49 = vld [vmem:[#allocation2 + $0x150] sm:$0xff] }
 0x2fb   : > { %1843 = vst [vmem:[%s4527_s19 + $0x48] sm:$0xff] %v2944_v60  ;;  %1844 = vst [vmem:[%s4527_s19 + $0x50] sm:$0xff] %v2944_v60  ;;  %v1774_v2 = vpack.c.bf16 %v1722_v56, %v1718_v55  ;;  %v1727_v3 = vmax.f32 %v1663_v57, 0.0  ;;  %v1661_v4 = vadd.f32 %v4681_v32, %v1575_v52  ;;  %v1665_v5 = vadd.f32 %v4681_v32, %v1579_v53  ;;  %v1595_v50 = vld [vmem:[#allocation2 + $0x170] sm:$0xff]  ;;  %v1592_v55 = vld [vmem:[#allocation2 + $0x158] sm:$0xff] }
 0x2fc   : > { %1845 = vst [vmem:[%s4527_s19 + $0x58] sm:$0xff] %v2944_v60  ;;  %1846 = vst [vmem:[%s4527_s19 + $0x60] sm:$0xff] %v2944_v60  ;;  %v1724_v7 = vmax.f32 %v1660_v63, 0.0  ;;  %v1728_v8 = vmax.f32 %v1664_v0, 0.0  ;;  %v1662_v9 = vadd.f32 %v4683_v35, %v1576_v58  ;;  %v1666_v10 = vadd.f32 %v4683_v35, %v1580_v59  ;;  %v1596_v56 = vld [vmem:[#allocation2 + $0x178] sm:$0xff] }
 0x2fd   : > { %1847 = vst [vmem:[%s4527_s19 + $0x68] sm:$0xff] %v2944_v60  ;;  %1848 = vst [vmem:[%s4527_s19 + $0x70] sm:$0xff] %v2944_v60  ;;  %v1775_v13 = vpack.c.bf16 %v1727_v3, %v1723_v62  ;;  %v1725_v14 = vmax.f32 %v1661_v4, 0.0  ;;  %v1729_v15 = vmax.f32 %v1665_v5, 0.0  ;;  %v1667_v16 = vadd.f32 %v4677_v29, %v1581_v1 }
 0x2fe   : > { %1849 = vst [vmem:[%s4527_s19 + $0x78] sm:$0xff] %v2944_v60  ;;  %1804 = vst [vmem:[#allocation3 + $0x48] sm:$0xff] %v1772_v54  ;;  %v1776_v19 = vpack.c.bf16 %v1728_v8, %v1724_v7  ;;  %v1726_v20 = vmax.f32 %v1662_v9, 0.0  ;;  %v1730_v21 = vmax.f32 %v1666_v10, 0.0  ;;  %v1671_v22 = vadd.f32 %v4677_v29, %v1585_v6  ;;  %v1598_v7 = vld [vmem:[#allocation2 + $0x188] sm:$0xff] }
 0x2ff   : > { %1805 = vst [vmem:[#allocation3 + $0x50] sm:$0xff] %v1773_v61  ;;  %1806 = vst [vmem:[#allocation3 + $0x58] sm:$0xff] %v1774_v2  ;;  %v1777_v25 = vpack.c.bf16 %v1729_v15, %v1725_v14  ;;  %v1731_v26 = vmax.f32 %v1667_v16, 0.0  ;;  %v1668_v27 = vadd.f32 %v4679_v30, %v1582_v11  ;;  %v1672_v28 = vadd.f32 %v4679_v30, %v1586_v12  ;;  %v1597_v61 = vld [vmem:[#allocation2 + $0x180] sm:$0xff]  ;;  %v1602_v8 = vld [vmem:[#allocation2 + $0x1a8] sm:$0xff] }
 0x300   : > { %1807 = vst [vmem:[#allocation3 + $0x60] sm:$0xff] %v1775_v13  ;;  %1808 = vst [vmem:[#allocation3 + $0x68] sm:$0xff] %v1776_v19  ;;  %v1778_v33 = vpack.c.bf16 %v1730_v21, %v1726_v20  ;;  %v1735_v34 = vmax.f32 %v1671_v22, 0.0  ;;  %v1669_v36 = vadd.f32 %v4681_v32, %v1583_v17  ;;  %v1673_v37 = vadd.f32 %v4681_v32, %v1587_v18  ;;  %v1601_v2 = vld [vmem:[#allocation2 + $0x1a0] sm:$0xff]  ;;  %v1599_v13 = vld [vmem:[#allocation2 + $0x190] sm:$0xff] }
 0x301   : > { %1809 = vst [vmem:[#allocation3 + $0x70] sm:$0xff] %v1777_v25  ;;  %v1732_v39 = vmax.f32 %v1668_v27, 0.0  ;;  %v1736_v40 = vmax.f32 %v1672_v28, 0.0  ;;  %v1670_v41 = vadd.f32 %v4683_v35, %v1584_v23  ;;  %v1674_v42 = vadd.f32 %v4683_v35, %v1588_v24  ;;  %v1603_v14 = vld [vmem:[#allocation2 + $0x1b0] sm:$0xff]  ;;  %v1600_v19 = vld [vmem:[#allocation2 + $0x198] sm:$0xff]  ;;  %v1605_v25 = vld [vmem:[#allocation2 + $0x1c0] sm:$0xff] }
 0x302   : > { %1810 = vst [vmem:[#allocation3 + $0x78] sm:$0xff] %v1778_v33  ;;  %v1779_v45 = vpack.c.bf16 %v1735_v34, %v1731_v26  ;;  %v1733_v46 = vmax.f32 %v1669_v36, 0.0  ;;  %v1737_v47 = vmax.f32 %v1673_v37, 0.0  ;;  %v1675_v48 = vadd.f32 %v4677_v29, %v1589_v31  ;;  %v1604_v20 = vld [vmem:[#allocation2 + $0x1b8] sm:$0xff]  ;;  %v1609_v33 = vld [vmem:[#allocation2 + $0x1e0] sm:$0xff] }
 0x303   : > { %v1780_v51 = vpack.c.bf16 %v1736_v40, %v1732_v39  ;;  %v1734_v52 = vmax.f32 %v1670_v41, 0.0  ;;  %v1738_v53 = vmax.f32 %v1674_v42, 0.0  ;;  %v1679_v54 = vadd.f32 %v4677_v29, %v1593_v38  ;;  %v1606_v39 = vld [vmem:[#allocation2 + $0x1c8] sm:$0xff] }
 0x304   : > { %1811 = vst [vmem:[#allocation3 + $0x80] sm:$0xff] %v1779_v45  ;;  %v1781_v57 = vpack.c.bf16 %v1737_v47, %v1733_v46  ;;  %v1739_v58 = vmax.f32 %v1675_v48, 0.0  ;;  %v1676_v59 = vadd.f32 %v4679_v30, %v1590_v43  ;;  %v1680_v60 = vadd.f32 %v4679_v30, %v1594_v44  ;;  %v1610_v40 = vld [vmem:[#allocation2 + $0x1e8] sm:$0xff]  ;;  %v1607_v45 = vld [vmem:[#allocation2 + $0x1d0] sm:$0xff] }
 0x305   : > { %1812 = vst [vmem:[#allocation3 + $0x88] sm:$0xff] %v1780_v51  ;;  %v1782_v62 = vpack.c.bf16 %v1738_v53, %v1734_v52  ;;  %v1743_v63 = vmax.f32 %v1679_v54, 0.0  ;;  %v1677_v0 = vadd.f32 %v4681_v32, %v1591_v49  ;;  %v1681_v1 = vadd.f32 %v4681_v32, %v1595_v50  ;;  %v1611_v46 = vld [vmem:[#allocation2 + $0x1f0] sm:$0xff]  ;;  %v1608_v51 = vld [vmem:[#allocation2 + $0x1d8] sm:$0xff] }
 0x306   : > { %1813 = vst [vmem:[#allocation3 + $0x90] sm:$0xff] %v1781_v57  ;;  %v1740_v3 = vmax.f32 %v1676_v59, 0.0  ;;  %v1744_v4 = vmax.f32 %v1680_v60, 0.0  ;;  %v1678_v5 = vadd.f32 %v4683_v35, %v1592_v55  ;;  %v1682_v6 = vadd.f32 %v4683_v35, %v1596_v56  ;;  %v1612_v52 = vld [vmem:[#allocation2 + $0x1f8] sm:$0xff] }
 0x307   : > { %1814 = vst [vmem:[#allocation3 + $0x98] sm:$0xff] %v1782_v62  ;;  %v1783_v9 = vpack.c.bf16 %v1743_v63, %v1739_v58  ;;  %v1741_v10 = vmax.f32 %v1677_v0, 0.0  ;;  %v1745_v11 = vmax.f32 %v1681_v1, 0.0  ;;  %v1683_v12 = vadd.f32 %v4677_v29, %v1597_v61 }
 0x308   : > { %v1784_v15 = vpack.c.bf16 %v1744_v4, %v1740_v3  ;;  %v1742_v16 = vmax.f32 %v1678_v5, 0.0  ;;  %v1746_v17 = vmax.f32 %v1682_v6, 0.0  ;;  %v1687_v18 = vadd.f32 %v4677_v29, %v1601_v2 }
 0x309   : > { %1815 = vst [vmem:[#allocation3 + $0xa0] sm:$0xff] %v1783_v9  ;;  %v1785_v21 = vpack.c.bf16 %v1745_v11, %v1741_v10  ;;  %v1747_v22 = vmax.f32 %v1683_v12, 0.0  ;;  %v1684_v23 = vadd.f32 %v4679_v30, %v1598_v7  ;;  %v1688_v24 = vadd.f32 %v4679_v30, %v1602_v8 }
 0x30a   : > { %1816 = vst [vmem:[#allocation3 + $0xa8] sm:$0xff] %v1784_v15  ;;  %v1786_v26 = vpack.c.bf16 %v1746_v17, %v1742_v16  ;;  %v1751_v27 = vmax.f32 %v1687_v18, 0.0  ;;  %v1685_v28 = vadd.f32 %v4681_v32, %v1599_v13  ;;  %v1689_v31 = vadd.f32 %v4681_v32, %v1603_v14 }
 0x30b   : > { %1817 = vst [vmem:[#allocation3 + $0xb0] sm:$0xff] %v1785_v21  ;;  %v1748_v34 = vmax.f32 %v1684_v23, 0.0  ;;  %v1752_v36 = vmax.f32 %v1688_v24, 0.0  ;;  %v1686_v37 = vadd.f32 %v4683_v35, %v1600_v19  ;;  %v1690_v38 = vadd.f32 %v4683_v35, %v1604_v20 }
 0x30c   : > { %1818 = vst [vmem:[#allocation3 + $0xb8] sm:$0xff] %v1786_v26  ;;  %v1787_v41 = vpack.c.bf16 %v1751_v27, %v1747_v22  ;;  %v1749_v42 = vmax.f32 %v1685_v28, 0.0  ;;  %v1753_v43 = vmax.f32 %v1689_v31, 0.0  ;;  %v1691_v44 = vadd.f32 %v4677_v29, %v1605_v25 }
 0x30d   : > { %v1788_v47 = vpack.c.bf16 %v1752_v36, %v1748_v34  ;;  %v1750_v48 = vmax.f32 %v1686_v37, 0.0  ;;  %v1754_v49 = vmax.f32 %v1690_v38, 0.0  ;;  %v1695_v50 = vadd.f32 %v4677_v29, %v1609_v33 }
 0x30e   : > { %1819 = vst [vmem:[#allocation3 + $0xc0] sm:$0xff] %v1787_v41  ;;  %v1789_v53 = vpack.c.bf16 %v1753_v43, %v1749_v42  ;;  %v1755_v54 = vmax.f32 %v1691_v44, 0.0  ;;  %v1692_v55 = vadd.f32 %v4679_v30, %v1606_v39  ;;  %v1696_v56 = vadd.f32 %v4679_v30, %v1610_v40 }
 0x30f   : > { %1820 = vst [vmem:[#allocation3 + $0xc8] sm:$0xff] %v1788_v47  ;;  %v1790_v57 = vpack.c.bf16 %v1754_v49, %v1750_v48  ;;  %v1759_v58 = vmax.f32 %v1695_v50, 0.0  ;;  %v1693_v59 = vadd.f32 %v4681_v32, %v1607_v45  ;;  %v1697_v60 = vadd.f32 %v4681_v32, %v1611_v46 }
 0x310   : > { %1821 = vst [vmem:[#allocation3 + $0xd0] sm:$0xff] %v1789_v53  ;;  %v1756_v61 = vmax.f32 %v1692_v55, 0.0  ;;  %v1760_v62 = vmax.f32 %v1696_v56, 0.0  ;;  %v1694_v29 = vadd.f32 %v4683_v35, %v1608_v51  ;;  %v1698_v63 = vadd.f32 %v4683_v35, %v1612_v52 }
 0x311   : > { %1822 = vst [vmem:[#allocation3 + $0xd8] sm:$0xff] %v1790_v57  ;;  %v1791_v0 = vpack.c.bf16 %v1759_v58, %v1755_v54  ;;  %v1757_v1 = vmax.f32 %v1693_v59, 0.0  ;;  %v1761_v2 = vmax.f32 %v1697_v60, 0.0 }
 0x312   : > { %v1792_v3 = vpack.c.bf16 %v1760_v62, %v1756_v61  ;;  %v1758_v30 = vmax.f32 %v1694_v29, 0.0  ;;  %v1762_v4 = vmax.f32 %v1698_v63, 0.0 }
 0x313   : > { %1823 = vst [vmem:[#allocation3 + $0xe0] sm:$0xff] %v1791_v0  ;;  %v1793_v5 = vpack.c.bf16 %v1761_v2, %v1757_v1 }
 0x314   : > { %1824 = vst [vmem:[#allocation3 + $0xe8] sm:$0xff] %v1792_v3  ;;  %v1794_v6 = vpack.c.bf16 %v1762_v4, %v1758_v30 }
 0x315   : > { %1825 = vst [vmem:[#allocation3 + $0xf0] sm:$0xff] %v1793_v5 }
 0x316   : > { %1826 = vst [vmem:[#allocation3 + $0xf8] sm:$0xff] %v1794_v6 }
 0x317 PF: > { %v3526_v32 = vld [vmem:[%s4506_s11 + $0x40] sm:$0xff]   ;;  %v3530_v9 = vld [vmem:[%s4506_s11 + $0x48] sm:$0xff]   ;;  %v3534_v13 = vld [vmem:[%s4506_s11 + $0x50] sm:$0xff]  }
 0x318   : > { %v3527_v35 = vld [vmem:[%s4506_s11 + $0xc0] sm:$0xff]   ;;  %3014 = vmatprep.subr.bf16.mxu0 %v3526_v32  ;;  %v3531_v10 = vld [vmem:[%s4506_s11 + $0xc8] sm:$0xff]   ;;  %v3535_v14 = vld [vmem:[%s4506_s11 + $0xd0] sm:$0xff]  }
 0x319   : > { %v3528_v7 = vld [vmem:[%s4506_s11] sm:$0xff]   ;;  %3078 = vmatprep.subr.bf16.mxu1 %v3527_v35  ;;  %v3532_v11 = vld [vmem:[%s4506_s11 + $0x8] sm:$0xff]   ;;  %v3536_v15 = vld [vmem:[%s4506_s11 + $0x10] sm:$0xff]  }
 0x31a   : > { %v3529_v8 = vld [vmem:[%s4506_s11 + $0x80] sm:$0xff]   ;;  %3015 = vmatpush3.bf16.msra.mxu0 %v3528_v7  ;;  %v3533_v12 = vld [vmem:[%s4506_s11 + $0x88] sm:$0xff]   ;;  %v3537_v16 = vld [vmem:[%s4506_s11 + $0x90] sm:$0xff]  }
 0x31b   : > { %3079 = vmatpush3.bf16.msra.mxu1 %v3529_v8  ;;  %3016 = vmatprep.subr.bf16.mxu0 %v3530_v9  ;;  %v3538_v17 = vld [vmem:[%s4506_s11 + $0x58] sm:$0xff]   ;;  %v3542_v21 = vld [vmem:[%s4506_s11 + $0x60] sm:$0xff]   ;;  %v3546_v25 = vld [vmem:[%s4506_s11 + $0x68] sm:$0xff]  }
 0x31c   : > { %3080 = vmatprep.subr.bf16.mxu1 %v3531_v10  ;;  %v3539_v18 = vld [vmem:[%s4506_s11 + $0xd8] sm:$0xff]   ;;  %v3543_v22 = vld [vmem:[%s4506_s11 + $0xe0] sm:$0xff]   ;;  %v3547_v26 = vld [vmem:[%s4506_s11 + $0xe8] sm:$0xff]  }
 0x31d   : > { %v3540_v19 = vld [vmem:[%s4506_s11 + $0x18] sm:$0xff]   ;;  %v3544_v23 = vld [vmem:[%s4506_s11 + $0x20] sm:$0xff]   ;;  %v3548_v27 = vld [vmem:[%s4506_s11 + $0x28] sm:$0xff]  }
 0x31e   : > { %3017 = vmatpush3.bf16.msra.mxu0 %v3532_v11  ;;  %v3541_v20 = vld [vmem:[%s4506_s11 + $0x98] sm:$0xff]   ;;  %v3545_v24 = vld [vmem:[%s4506_s11 + $0xa0] sm:$0xff]   ;;  %v3549_v28 = vld [vmem:[%s4506_s11 + $0xa8] sm:$0xff]  }
 0x31f   : > { %3081 = vmatpush3.bf16.msra.mxu1 %v3533_v12  ;;  %3018 = vmatprep.subr.bf16.mxu0 %v3534_v13  ;;  %v3550_v31 = vld [vmem:[%s4506_s11 + $0x70] sm:$0xff]   ;;  %v3554_v37 = vld [vmem:[%s4506_s11 + $0x78] sm:$0xff]   ;;  %v1851_v41 = vld [vmem:[#allocation3 + $0x8] sm:$0xff] }
 0x320   : > { %3082 = vmatprep.subr.bf16.mxu1 %v3535_v14  ;;  %v3551_v33 = vld [vmem:[%s4506_s11 + $0xf0] sm:$0xff]   ;;  %v3555_v38 = vld [vmem:[%s4506_s11 + $0xf8] sm:$0xff]   ;;  %2177 = vmatprep.mubr.bf16.mxu0 %v1851_v41  ;;  %v1855_v45 = vld [vmem:[#allocation3 + $0x28] sm:$0xff] }
 0x321   : > { %v3552_v34 = vld [vmem:[%s4506_s11 + $0x30] sm:$0xff]   ;;  %v3556_v39 = vld [vmem:[%s4506_s11 + $0x38] sm:$0xff]   ;;  %v1859_v49 = vld [vmem:[#allocation3 + $0x48] sm:$0xff] }
 0x322   : > { %3019 = vmatpush3.bf16.msra.mxu0 %v3536_v15  ;;  %v3553_v36 = vld [vmem:[%s4506_s11 + $0xb0] sm:$0xff]   ;;  %v3557_v40 = vld [vmem:[%s4506_s11 + $0xb8] sm:$0xff]   ;;  %v3558_v51 = vld [vmem:[%s4514_s15] sm:$0xff]  }
 0x323   : > { %3083 = vmatpush3.bf16.msra.mxu1 %v3537_v16  ;;  %3020 = vmatprep.subr.bf16.mxu0 %v3538_v17  ;;  %v1853_v42 = vld [vmem:[#allocation3 + $0x18] sm:$0xff]  ;;  %v1850_v43 = vld [vmem:[#allocation3] sm:$0xff]  ;;  %v1852_v44 = vld [vmem:[#allocation3 + $0x10] sm:$0xff] }
 0x324   : > { %3084 = vmatprep.subr.bf16.mxu1 %v3539_v18  ;;  %2274 = vmatprep.mubr.bf16.mxu1 %v1853_v42  ;;  %v1857_v46 = vld [vmem:[#allocation3 + $0x38] sm:$0xff]  ;;  %v1854_v47 = vld [vmem:[#allocation3 + $0x20] sm:$0xff]  ;;  %v1856_v48 = vld [vmem:[#allocation3 + $0x30] sm:$0xff] }
 0x325   : > { %v1861_v50 = vld [vmem:[#allocation3 + $0x58] sm:$0xff]  ;;  %v3559_v52 = vld [vmem:[%s4514_s15 + $0x8] sm:$0xff]   ;;  %v1858_v54 = vld [vmem:[#allocation3 + $0x40] sm:$0xff] }
 0x326   : > { %3021 = vmatpush3.bf16.msra.mxu0 %v3540_v19  ;;  %v3560_v53 = vld [vmem:[%s4514_s15 + $0x10] sm:$0xff]   ;;  %v1863_v56 = vld [vmem:[#allocation3 + $0x68] sm:$0xff]  ;;  %v1862_v58 = vld [vmem:[#allocation3 + $0x60] sm:$0xff] }
 0x327   : > { %3085 = vmatpush3.bf16.msra.mxu1 %v3541_v20  ;;  %3022 = vmatprep.subr.bf16.mxu0 %v3542_v21  ;;  %v1860_v55 = vld [vmem:[#allocation3 + $0x50] sm:$0xff]  ;;  %v1865_v57 = vld [vmem:[#allocation3 + $0x78] sm:$0xff]  ;;  %v1867_v60 = vld [vmem:[#allocation3 + $0x88] sm:$0xff] }
 0x328   : > { %3086 = vmatprep.subr.bf16.mxu1 %v3543_v22  ;;  %v1864_v59 = vld [vmem:[#allocation3 + $0x70] sm:$0xff]  ;;  %v1869_v61 = vld [vmem:[#allocation3 + $0x98] sm:$0xff]  ;;  %v1866_v62 = vld [vmem:[#allocation3 + $0x80] sm:$0xff] }
 0x329   : > { %v1868_v29 = vld [vmem:[#allocation3 + $0x90] sm:$0xff]  ;;  %v1871_v63 = vld [vmem:[#allocation3 + $0xa8] sm:$0xff]  ;;  %v1873_v0 = vld [vmem:[#allocation3 + $0xb8] sm:$0xff] }
 0x32a   : > { %3023 = vmatpush3.bf16.msra.mxu0 %v3544_v23  ;;  %v1870_v1 = vld [vmem:[#allocation3 + $0xa0] sm:$0xff]  ;;  %v1872_v2 = vld [vmem:[#allocation3 + $0xb0] sm:$0xff]  ;;  %v1875_v3 = vld [vmem:[#allocation3 + $0xc8] sm:$0xff] }
 0x32b   : > { %3087 = vmatpush3.bf16.msra.mxu1 %v3545_v24  ;;  %3024 = vmatprep.subr.bf16.mxu0 %v3546_v25  ;;  %v1877_v30 = vld [vmem:[#allocation3 + $0xd8] sm:$0xff]  ;;  %v1874_v4 = vld [vmem:[#allocation3 + $0xc0] sm:$0xff]  ;;  %v1876_v5 = vld [vmem:[#allocation3 + $0xd0] sm:$0xff] }
 0x32c   : > { %3088 = vmatprep.subr.bf16.mxu1 %v3547_v26  ;;  %v1879_v6 = vld [vmem:[#allocation3 + $0xe8] sm:$0xff]  ;;  %v1881_v32 = vld [vmem:[#allocation3 + $0xf8] sm:$0xff]  ;;  %v1878_v35 = vld [vmem:[#allocation3 + $0xe0] sm:$0xff] }
 0x32d   : > { %v1880_v7 = vld [vmem:[#allocation3 + $0xf0] sm:$0xff]  ;;  %v3561_v8 = vld [vmem:[%s4514_s15 + $0x18] sm:$0xff]   ;;  %v3562_v9 = vld [vmem:[%s4514_s15 + $0x20] sm:$0xff]  }
 0x32e   : > { %3025 = vmatpush3.bf16.msra.mxu0 %v3548_v27  ;;  %v3563_v10 = vld [vmem:[%s4514_s15 + $0x28] sm:$0xff]   ;;  %v3564_v11 = vld [vmem:[%s4514_s15 + $0x30] sm:$0xff]   ;;  %v3565_v12 = vld [vmem:[%s4514_s15 + $0x38] sm:$0xff]  }
 0x32f   : > { %3089 = vmatpush3.bf16.msra.mxu1 %v3549_v28  ;;  %3026 = vmatprep.subr.bf16.mxu0 %v3550_v31  ;;  %v4807_v15 = vld [vmem:[%s483_s2] ss:$0 sm:$0xff] }
 0x330   : > { %3090 = vmatprep.subr.bf16.mxu1 %v3551_v33 }
 0x332   : > { %3027 = vmatpush3.bf16.msra.mxu0 %v3552_v34 }
 0x333   : > { %3091 = vmatpush3.bf16.msra.mxu1 %v3553_v36  ;;  %3028 = vmatprep.subr.bf16.mxu0 %v3554_v37 }
 0x334   : > { %3092 = vmatprep.subr.bf16.mxu1 %v3555_v38 }
 0x336   : > { %3029 = vmatpush3.bf16.msra.mxu0 %v3556_v39 }
 0x337   : > { %3093 = vmatpush3.bf16.msra.mxu1 %v3557_v40  ;;  %3158 = vmatprep.subr.bf16.mxu0 %v3558_v51 }
 0x338   : > { %3190 = vmatprep.subr.bf16.mxu1 %v3558_v51 }
 0x339   : > { %2178 = vmatmul.mubr.bf16.vlgmr.msra.gmra.mrb[0].mxu0 %v1850_v43 }
 0x33a   : > { %2275 = vmatmul.mubr.bf16.vlgmr.msra.gmra.mrb[0].mxu1 %v1852_v44  ;;  %2185 = vmatprep.mubr.bf16.mxu0 %v1855_v45 }
 0x33b   : > { %2282 = vmatprep.mubr.bf16.mxu1 %v1857_v46  ;;  %3159 = vmatpush3.bf16.msra.mxu0 %v3558_v51 }
 0x33c   : > { %3160 = vmatprep.subr.bf16.mxu0 %v3559_v52  ;;  %3198 = vmatpush3.bf16.msra.mxu1 %v3558_v51 }
 0x33d   : > { %3191 = vmatprep.subr.bf16.mxu1 %v3559_v52 }
 0x33f   : > { %3161 = vmatpush3.bf16.msra.mxu0 %v3559_v52 }
 0x340   : > { %3162 = vmatprep.subr.bf16.mxu0 %v3560_v53  ;;  %3199 = vmatpush3.bf16.msra.mxu1 %v3559_v52 }
 0x341   : > { %2186 = vmatmul.mubr.bf16.gmra.mrb[4].mxu0 %v1854_v47  ;;  %3192 = vmatprep.subr.bf16.mxu1 %v3560_v53 }
 0x342   : > { %2283 = vmatmul.mubr.bf16.gmra.mrb[4].mxu1 %v1856_v48  ;;  %2193 = vmatprep.mubr.bf16.mxu0 %v1859_v49 }
 0x343   : > { %2290 = vmatprep.mubr.bf16.mxu1 %v1861_v50  ;;  %3163 = vmatpush3.bf16.msra.mxu0 %v3560_v53 }
 0x344   : > { %3200 = vmatpush3.bf16.msra.mxu1 %v3560_v53  ;;  %3164 = vmatprep.subr.bf16.mxu0 %v3561_v8 }
 0x345   : > { %3193 = vmatprep.subr.bf16.mxu1 %v3561_v8 }
 0x347   : > { %3165 = vmatpush3.bf16.msra.mxu0 %v3561_v8 }
 0x348   : > { %3201 = vmatpush3.bf16.msra.mxu1 %v3561_v8  ;;  %3166 = vmatprep.subr.bf16.mxu0 %v3562_v9 }
 0x349   : > { %2194 = vmatmul.mubr.bf16.gmra.mrb[8].mxu0 %v1858_v54  ;;  %3194 = vmatprep.subr.bf16.mxu1 %v3562_v9 }
 0x34a   : > { %2291 = vmatmul.mubr.bf16.gmra.mrb[8].mxu1 %v1860_v55  ;;  %2201 = vmatprep.mubr.bf16.mxu0 %v1863_v56 }
 0x34b   : > { %2298 = vmatprep.mubr.bf16.mxu1 %v1865_v57  ;;  %3167 = vmatpush3.bf16.msra.mxu0 %v3562_v9 }
 0x34c   : > { %3202 = vmatpush3.bf16.msra.mxu1 %v3562_v9  ;;  %3168 = vmatprep.subr.bf16.mxu0 %v3563_v10 }
 0x34d   : > { %3195 = vmatprep.subr.bf16.mxu1 %v3563_v10 }
 0x34f   : > { %3169 = vmatpush3.bf16.msra.mxu0 %v3563_v10 }
 0x350   : > { %3203 = vmatpush3.bf16.msra.mxu1 %v3563_v10  ;;  %3170 = vmatprep.subr.bf16.mxu0 %v3564_v11 }
 0x351   : > { %2202 = vmatmul.mubr.bf16.gmra.mrb[12].mxu0 %v1862_v58  ;;  %3196 = vmatprep.subr.bf16.mxu1 %v3564_v11 }
 0x352   : > { %2299 = vmatmul.mubr.bf16.gmra.mrb[12].mxu1 %v1864_v59  ;;  %2209 = vmatprep.mubr.bf16.mxu0 %v1867_v60 }
 0x353   : > { %2306 = vmatprep.mubr.bf16.mxu1 %v1869_v61  ;;  %3171 = vmatpush3.bf16.msra.mxu0 %v3564_v11 }
 0x354   : > { %3204 = vmatpush3.bf16.msra.mxu1 %v3564_v11  ;;  %3172 = vmatprep.subr.bf16.mxu0 %v3565_v12 }
 0x355   : > { %3197 = vmatprep.subr.bf16.mxu1 %v3565_v12 }
 0x357   : > { %3173 = vmatpush3.bf16.msra.mxu0 %v3565_v12 }
 0x358   : > { %3205 = vmatpush3.bf16.msra.mxu1 %v3565_v12 }
 0x359   : > { %2210 = vmatmul.mubr.bf16.gmra.mrb[16].mxu0 %v1866_v62 }
 0x35a   : > { %2307 = vmatmul.mubr.bf16.gmra.mrb[16].mxu1 %v1868_v29  ;;  %2217 = vmatprep.mubr.bf16.mxu0 %v1871_v63 }
 0x35b   : > { %2314 = vmatprep.mubr.bf16.mxu1 %v1873_v0 }
 0x361   : > { %2218 = vmatmul.mubr.bf16.gmra.mrb[20].mxu0 %v1870_v1 }
 0x362   : > { %2315 = vmatmul.mubr.bf16.gmra.mrb[20].mxu1 %v1872_v2  ;;  %2225 = vmatprep.mubr.bf16.mxu0 %v1875_v3 }
 0x363   : > { %2322 = vmatprep.mubr.bf16.mxu1 %v1877_v30 }
 0x369   : > { %2226 = vmatmul.mubr.bf16.gmra.mrb[24].mxu0 %v1874_v4 }
 0x36a   : > { %2323 = vmatmul.mubr.bf16.gmra.mrb[24].mxu1 %v1876_v5  ;;  %2233 = vmatprep.mubr.bf16.mxu0 %v1879_v6 }
 0x36b   : > { %2330 = vmatprep.mubr.bf16.mxu1 %v1881_v32 }
 0x371   : > { %2234 = vmatmul.mubr.bf16.gmra.mrb[28].mxu0 %v1878_v35 }
 0x372   : > { %2331 = vmatmul.mubr.bf16.gmra.mrb[28].mxu1 %v1880_v7 }
 0x40c   : > { %v3030_v13 = vpop.f32.mrb[0].mxu0 }
 0x40d   : > { %v3094_v14 = vpop.f32.mrb[0].mxu1  ;;  %v3031_v16 = vpop.f32.mrb[1].mxu0 }
 0x40e   : > { %v3032_v17 = vadd.f32 %v3031_v16, %v3030_v13  ;;  %v3095_v18 = vpop.f32.mrb[1].mxu1  ;;  %v3033_v19 = vpop.f32.mrb[2].mxu0 }
 0x40f   : > { %v3096_v20 = vadd.f32 %v3095_v18, %v3094_v14  ;;  %v3097_v21 = vpop.f32.mrb[2].mxu1  ;;  %v3034_v22 = vpop.f32.mrb[3].mxu0 }
 0x410   : > { %v2180_v23 = vadd.f32 %v3032_v17, %v4807_v15  ;;  %v3035_v24 = vadd.f32 %v3034_v22, %v3033_v19  ;;  %v3098_v25 = vpop.f32.mrb[3].mxu1 }
 0x411   : > { %v3099_v26 = vadd.f32 %v3098_v25, %v3097_v21 }
 0x412   : > { %v2277_v27 = vadd.f32 %v3096_v20, %v2180_v23  ;;  %v2183_v28 = vadd.f32 %v3035_v24, %v4807_v15 }
 0x414   : > { %v2280_v31 = vadd.f32 %v3099_v26, %v2183_v28  ;;  %v3036_v33 = vpop.f32.mrb[4].mxu0  ;;  %v2339_v37 = vmax.f32 %v2277_v27, 0.0 }
 0x415   : > { %v3100_v34 = vpop.f32.mrb[4].mxu1  ;;  %v3037_v36 = vpop.f32.mrb[5].mxu0 }
 0x416   : > { %v2340_v38 = vmax.f32 %v2280_v31, 0.0  ;;  %v3038_v39 = vadd.f32 %v3037_v36, %v3036_v33  ;;  %v3101_v40 = vpop.f32.mrb[5].mxu1  ;;  %v3039_v41 = vpop.f32.mrb[6].mxu0 }
 0x417   : > { %v3102_v42 = vadd.f32 %v3101_v40, %v3100_v34  ;;  %v3103_v43 = vpop.f32.mrb[6].mxu1  ;;  %v3040_v44 = vpop.f32.mrb[7].mxu0 }
 0x418   : > { %v2188_v45 = vadd.f32 %v3038_v39, %v4807_v15  ;;  %v3041_v46 = vadd.f32 %v3040_v44, %v3039_v41  ;;  %v3104_v47 = vpop.f32.mrb[7].mxu1  ;;  %v2355_v48 = vpack.c.bf16 %v2340_v38, %v2339_v37 }
 0x419   : > { %v3105_v49 = vadd.f32 %v3104_v47, %v3103_v43 }
 0x41a   : > { %v2285_v50 = vadd.f32 %v3102_v42, %v2188_v45  ;;  %v2191_v51 = vadd.f32 %v3041_v46, %v4807_v15  ;;  %3174 = vmatprep.mubr.bf16.mxu0 %v2355_v48 }
 0x41c   : > { %v2288_v52 = vadd.f32 %v3105_v49, %v2191_v51  ;;  %v3042_v53 = vpop.f32.mrb[8].mxu0  ;;  %v2341_v56 = vmax.f32 %v2285_v50, 0.0 }
 0x41d   : > { %v3106_v54 = vpop.f32.mrb[8].mxu1  ;;  %v3043_v55 = vpop.f32.mrb[9].mxu0 }
 0x41e   : > { %v2342_v57 = vmax.f32 %v2288_v52, 0.0  ;;  %v3044_v58 = vadd.f32 %v3043_v55, %v3042_v53  ;;  %v3107_v59 = vpop.f32.mrb[9].mxu1  ;;  %v3045_v60 = vpop.f32.mrb[10].mxu0 }
 0x41f   : > { %v3108_v61 = vadd.f32 %v3107_v59, %v3106_v54  ;;  %v3109_v62 = vpop.f32.mrb[10].mxu1  ;;  %v3046_v29 = vpop.f32.mrb[11].mxu0 }
 0x420   : > { %v2356_v63 = vpack.c.bf16 %v2342_v57, %v2341_v56  ;;  %v2196_v0 = vadd.f32 %v3044_v58, %v4807_v15  ;;  %v3047_v1 = vadd.f32 %v3046_v29, %v3045_v60  ;;  %v3110_v2 = vpop.f32.mrb[11].mxu1 }
 0x421   : > { %v3111_v3 = vadd.f32 %v3110_v2, %v3109_v62 }
 0x422   : > { %v2293_v30 = vadd.f32 %v3108_v61, %v2196_v0  ;;  %v2199_v4 = vadd.f32 %v3047_v1, %v4807_v15  ;;  %3175 = vmatmul.mubr.bf16.vlgmr.msra.gmra.mrb[32].mxu0 %v2356_v63 }
 0x424   : > { %v2296_v5 = vadd.f32 %v3111_v3, %v2199_v4  ;;  %v3048_v6 = vpop.f32.mrb[12].mxu0  ;;  %v2343_v7 = vmax.f32 %v2293_v30, 0.0 }
 0x425   : > { %v3112_v32 = vpop.f32.mrb[12].mxu1  ;;  %v3049_v35 = vpop.f32.mrb[13].mxu0 }
 0x426   : > { %v2344_v8 = vmax.f32 %v2296_v5, 0.0  ;;  %v3050_v9 = vadd.f32 %v3049_v35, %v3048_v6  ;;  %v3113_v10 = vpop.f32.mrb[13].mxu1  ;;  %v3051_v11 = vpop.f32.mrb[14].mxu0 }
 0x427   : > { %v3114_v12 = vadd.f32 %v3113_v10, %v3112_v32  ;;  %v3115_v13 = vpop.f32.mrb[14].mxu1  ;;  %v3052_v14 = vpop.f32.mrb[15].mxu0 }
 0x428   : > { %v2204_v16 = vadd.f32 %v3050_v9, %v4807_v15  ;;  %v3053_v17 = vadd.f32 %v3052_v14, %v3051_v11  ;;  %v3116_v18 = vpop.f32.mrb[15].mxu1  ;;  %v2357_v19 = vpack.c.bf16 %v2344_v8, %v2343_v7 }
 0x429   : > { %v3117_v20 = vadd.f32 %v3116_v18, %v3115_v13 }
 0x42a   : > { %v2301_v21 = vadd.f32 %v3114_v12, %v2204_v16  ;;  %v2207_v22 = vadd.f32 %v3053_v17, %v4807_v15  ;;  %3178 = vmatprep.mubr.bf16.mxu0 %v2357_v19 }
 0x42c   : > { %v2304_v23 = vadd.f32 %v3117_v20, %v2207_v22  ;;  %v3054_v24 = vpop.f32.mrb[16].mxu0  ;;  %v2345_v27 = vmax.f32 %v2301_v21, 0.0 }
 0x42d   : > { %v3118_v25 = vpop.f32.mrb[16].mxu1  ;;  %v3055_v26 = vpop.f32.mrb[17].mxu0 }
 0x42e   : > { %v2346_v28 = vmax.f32 %v2304_v23, 0.0  ;;  %v3056_v31 = vadd.f32 %v3055_v26, %v3054_v24  ;;  %v3119_v33 = vpop.f32.mrb[17].mxu1  ;;  %v3057_v34 = vpop.f32.mrb[18].mxu0 }
 0x42f   : > { %v3120_v36 = vadd.f32 %v3119_v33, %v3118_v25  ;;  %v3121_v37 = vpop.f32.mrb[18].mxu1  ;;  %v3058_v38 = vpop.f32.mrb[19].mxu0 }
 0x430   : > { %v2212_v39 = vadd.f32 %v3056_v31, %v4807_v15  ;;  %v3059_v40 = vadd.f32 %v3058_v38, %v3057_v34  ;;  %v3122_v41 = vpop.f32.mrb[19].mxu1  ;;  %v2358_v42 = vpack.c.bf16 %v2346_v28, %v2345_v27 }
 0x431   : > { %v3123_v43 = vadd.f32 %v3122_v41, %v3121_v37 }
 0x432   : > { %v2309_v44 = vadd.f32 %v3120_v36, %v2212_v39  ;;  %v2215_v45 = vadd.f32 %v3059_v40, %v4807_v15  ;;  %3179 = vmatmul.mubr.bf16.gmra.mrb[36].mxu0 %v2358_v42 }
 0x434   : > { %v2312_v46 = vadd.f32 %v3123_v43, %v2215_v45  ;;  %v3060_v47 = vpop.f32.mrb[20].mxu0  ;;  %v2347_v50 = vmax.f32 %v2309_v44, 0.0  ;;  %v2365_v44 = vld [vmem:[%s4527_s19 + $0x10] sm:$0xff]  ;;  %v2363_v45 = vld [vmem:[%s4527_s19] sm:$0xff] }
 0x435   : > { %v3124_v48 = vpop.f32.mrb[20].mxu1  ;;  %v3061_v49 = vpop.f32.mrb[21].mxu0 }
 0x436   : > { %v2348_v51 = vmax.f32 %v2312_v46, 0.0  ;;  %v3062_v52 = vadd.f32 %v3061_v49, %v3060_v47  ;;  %v3125_v53 = vpop.f32.mrb[21].mxu1  ;;  %v3063_v54 = vpop.f32.mrb[22].mxu0  ;;  %v2366_v47 = vld [vmem:[%s4527_s19 + $0x18] sm:$0xff] }
 0x437   : > { %v3126_v55 = vadd.f32 %v3125_v53, %v3124_v48  ;;  %v3127_v56 = vpop.f32.mrb[22].mxu1  ;;  %v3064_v57 = vpop.f32.mrb[23].mxu0 }
 0x438   : > { %v2220_v58 = vadd.f32 %v3062_v52, %v4807_v15  ;;  %v3065_v59 = vadd.f32 %v3064_v57, %v3063_v54  ;;  %v3128_v60 = vpop.f32.mrb[23].mxu1  ;;  %v2359_v61 = vpack.c.bf16 %v2348_v51, %v2347_v50 }
 0x439   : > { %v3129_v62 = vadd.f32 %v3128_v60, %v3127_v56  ;;  %v2367_v56 = vld [vmem:[%s4527_s19 + $0x20] sm:$0xff] }
 0x43a   : > { %v2317_v29 = vadd.f32 %v3126_v55, %v2220_v58  ;;  %v2223_v63 = vadd.f32 %v3065_v59, %v4807_v15  ;;  %3182 = vmatprep.mubr.bf16.mxu1 %v2359_v61  ;;  %v2369_v55 = vld [vmem:[%s4527_s19 + $0x30] sm:$0xff]  ;;  %v2370_v58 = vld [vmem:[%s4527_s19 + $0x38] sm:$0xff]  ;;  %v2368_v61 = vld [vmem:[%s4527_s19 + $0x28] sm:$0xff] }
 0x43c   : > { %v2320_v0 = vadd.f32 %v3129_v62, %v2223_v63  ;;  %v3066_v1 = vpop.f32.mrb[24].mxu0  ;;  %v2349_v30 = vmax.f32 %v2317_v29, 0.0 }
 0x43d   : > { %v3130_v2 = vpop.f32.mrb[24].mxu1  ;;  %v3067_v3 = vpop.f32.mrb[25].mxu0 }
 0x43e   : > { %v2350_v4 = vmax.f32 %v2320_v0, 0.0  ;;  %v3068_v5 = vadd.f32 %v3067_v3, %v3066_v1  ;;  %v3131_v6 = vpop.f32.mrb[25].mxu1  ;;  %v3069_v32 = vpop.f32.mrb[26].mxu0  ;;  %v2371_v3 = vld [vmem:[%s4527_s19 + $0x40] sm:$0xff] }
 0x43f   : > { %v3132_v35 = vadd.f32 %v3131_v6, %v3130_v2  ;;  %v3133_v7 = vpop.f32.mrb[26].mxu1  ;;  %v3070_v8 = vpop.f32.mrb[27].mxu0  ;;  %v2373_v2 = vld [vmem:[%s4527_s19 + $0x50] sm:$0xff] }
 0x440   : > { %v2360_v9 = vpack.c.bf16 %v2350_v4, %v2349_v30  ;;  %v2228_v10 = vadd.f32 %v3068_v5, %v4807_v15  ;;  %v3071_v11 = vadd.f32 %v3070_v8, %v3069_v32  ;;  %v3134_v12 = vpop.f32.mrb[27].mxu1  ;;  %v2374_v4 = vld [vmem:[%s4527_s19 + $0x58] sm:$0xff]  ;;  %v2372_v32 = vld [vmem:[%s4527_s19 + $0x48] sm:$0xff] }
 0x441   : > { %v3135_v13 = vadd.f32 %v3134_v12, %v3133_v7  ;;  %v2375_v12 = vld [vmem:[%s4527_s19 + $0x60] sm:$0xff] }
 0x442   : > { %v2325_v14 = vadd.f32 %v3132_v35, %v2228_v10  ;;  %v2231_v16 = vadd.f32 %v3071_v11, %v4807_v15  ;;  %3183 = vmatmul.mubr.bf16.vlgmr.msra.gmra.mrb[32].mxu1 %v2360_v9  ;;  %v2377_v11 = vld [vmem:[%s4527_s19 + $0x70] sm:$0xff] }
 0x444   : > { %v2328_v17 = vadd.f32 %v3135_v13, %v2231_v16  ;;  %v3072_v18 = vpop.f32.mrb[28].mxu0  ;;  %v2351_v21 = vmax.f32 %v2325_v14, 0.0  ;;  %v2378_v14 = vld [vmem:[%s4527_s19 + $0x78] sm:$0xff] }
 0x445   : > { %v3136_v19 = vpop.f32.mrb[28].mxu1  ;;  %v3073_v20 = vpop.f32.mrb[29].mxu0 }
 0x446   : > { %v2352_v22 = vmax.f32 %v2328_v17, 0.0  ;;  %v3074_v23 = vadd.f32 %v3073_v20, %v3072_v18  ;;  %v3137_v24 = vpop.f32.mrb[29].mxu1  ;;  %v3075_v25 = vpop.f32.mrb[30].mxu0  ;;  %v2376_v18 = vld [vmem:[%s4527_s19 + $0x68] sm:$0xff] }
 0x447   : > { %v3138_v26 = vadd.f32 %v3137_v24, %v3136_v19  ;;  %v3139_v27 = vpop.f32.mrb[30].mxu1  ;;  %v3076_v28 = vpop.f32.mrb[31].mxu0 }
 0x448   : > { %v2236_v31 = vadd.f32 %v3074_v23, %v4807_v15  ;;  %v3077_v33 = vadd.f32 %v3076_v28, %v3075_v25  ;;  %v3140_v34 = vpop.f32.mrb[31].mxu1  ;;  %v2361_v36 = vpack.c.bf16 %v2352_v22, %v2351_v21 }
 0x449   : > { %v3141_v37 = vadd.f32 %v3140_v34, %v3139_v27 }
 0x44a   : > { %v2333_v38 = vadd.f32 %v3138_v26, %v2236_v31  ;;  %v2239_v39 = vadd.f32 %v3077_v33, %v4807_v15  ;;  %3186 = vmatprep.mubr.bf16.mxu1 %v2361_v36  ;;  %v2364_v15 = vld [vmem:[%s4527_s19 + $0x8] sm:$0xff] }
 0x44c   : > { %v2336_v40 = vadd.f32 %v3141_v37, %v2239_v39  ;;  %v2353_v41 = vmax.f32 %v2333_v38, 0.0 }
 0x44e   : > { %v2354_v42 = vmax.f32 %v2336_v40, 0.0 }
 0x450   : > { %v2362_v43 = vpack.c.bf16 %v2354_v42, %v2353_v41 }
 0x452   : > { %3187 = vmatmul.mubr.bf16.gmra.mrb[36].mxu1 %v2362_v43 }
 0x4f5   : > { %v3176_v46 = vpop.f32.mrb[32].mxu0 }
 0x4f6   : > { %v2542_v48 = vadd.f32 %v3176_v46, %v2365_v44  ;;  %v2477_v49 = vpop.f32.mrb[33].mxu0 }
 0x4f7   : > { %v2540_v50 = vadd.f32 %v2477_v49, %v2363_v45  ;;  %v3177_v51 = vpop.f32.mrb[34].mxu0 }
 0x4f8   : > { %2558 = vst [vmem:[%s4527_s19 + $0x10] sm:$0xff] %v2542_v48  ;;  %v2543_v52 = vadd.f32 %v3177_v51, %v2366_v47  ;;  %v2480_v53 = vpop.f32.mrb[35].mxu0 }
 0x4f9   : > { %2556 = vst [vmem:[%s4527_s19] sm:$0xff] %v2540_v50  ;;  %v2541_v54 = vadd.f32 %v2480_v53, %v2364_v15 }
 0x4fa   : > { %2559 = vst [vmem:[%s4527_s19 + $0x18] sm:$0xff] %v2543_v52 }
 0x4fb   : > { %2557 = vst [vmem:[%s4527_s19 + $0x8] sm:$0xff] %v2541_v54 }
 0x505   : > { %v3180_v57 = vpop.f32.mrb[36].mxu0 }
 0x506   : > { %v2546_v59 = vadd.f32 %v3180_v57, %v2369_v55  ;;  %v2493_v60 = vpop.f32.mrb[37].mxu0 }
 0x507   : > { %v2544_v62 = vadd.f32 %v2493_v60, %v2367_v56  ;;  %v3181_v29 = vpop.f32.mrb[38].mxu0 }
 0x508   : > { %2562 = vst [vmem:[%s4527_s19 + $0x30] sm:$0xff] %v2546_v59  ;;  %v2547_v63 = vadd.f32 %v3181_v29, %v2370_v58  ;;  %v2496_v0 = vpop.f32.mrb[39].mxu0 }
 0x509   : > { %2560 = vst [vmem:[%s4527_s19 + $0x20] sm:$0xff] %v2544_v62  ;;  %v2545_v1 = vadd.f32 %v2496_v0, %v2368_v61 }
 0x50a   : > { %2563 = vst [vmem:[%s4527_s19 + $0x38] sm:$0xff] %v2547_v63 }
 0x50b   : > { %2561 = vst [vmem:[%s4527_s19 + $0x28] sm:$0xff] %v2545_v1 }
 0x515   : > { %v3184_v30 = vpop.f32.mrb[32].mxu1 }
 0x516   : > { %v2550_v5 = vadd.f32 %v3184_v30, %v2373_v2  ;;  %v2509_v6 = vpop.f32.mrb[33].mxu1 }
 0x517   : > { %v2548_v35 = vadd.f32 %v2509_v6, %v2371_v3  ;;  %v3185_v7 = vpop.f32.mrb[34].mxu1 }
 0x518   : > { %2566 = vst [vmem:[%s4527_s19 + $0x50] sm:$0xff] %v2550_v5  ;;  %v2551_v8 = vadd.f32 %v3185_v7, %v2374_v4  ;;  %v2512_v9 = vpop.f32.mrb[35].mxu1 }
 0x519   : > { %2564 = vst [vmem:[%s4527_s19 + $0x40] sm:$0xff] %v2548_v35  ;;  %v2549_v10 = vadd.f32 %v2512_v9, %v2372_v32 }
 0x51a   : > { %2567 = vst [vmem:[%s4527_s19 + $0x58] sm:$0xff] %v2551_v8 }
 0x51b   : > { %2565 = vst [vmem:[%s4527_s19 + $0x48] sm:$0xff] %v2549_v10 }
 0x525   : > { %v3188_v13 = vpop.f32.mrb[36].mxu1 }
 0x526   : > { %v2554_v16 = vadd.f32 %v3188_v13, %v2377_v11  ;;  %v2525_v17 = vpop.f32.mrb[37].mxu1 }
 0x527   : > { %v2552_v19 = vadd.f32 %v2525_v17, %v2375_v12  ;;  %v3189_v20 = vpop.f32.mrb[38].mxu1 }
 0x528   : > { %2570 = vst [vmem:[%s4527_s19 + $0x70] sm:$0xff] %v2554_v16  ;;  %v2555_v21 = vadd.f32 %v3189_v20, %v2378_v14  ;;  %v2528_v22 = vpop.f32.mrb[39].mxu1 }
 0x529   : > { %2568 = vst [vmem:[%s4527_s19 + $0x60] sm:$0xff] %v2552_v19  ;;  %v2553_v23 = vadd.f32 %v2528_v22, %v2376_v18 }
 0x52a   : > { %2571 = vst [vmem:[%s4527_s19 + $0x78] sm:$0xff] %v2555_v21 }
 0x52b   : > { %2569 = vst [vmem:[%s4527_s19 + $0x68] sm:$0xff] %v2553_v23 }
 0x52c PF: > { %s5088_s28 = sld [smem:[#allocation30_spill]]  ;;  %s5090_s24 = sld [smem:[#allocation37_spill]] }
 0x52d   : > { %s5091_s1 = sld [smem:[#allocation51_spill]]  ;;  %s2586_s11 = sshll.u32 %s4527_s19, 4  ;;  %s4864_s11 = int_to_ptr.vmem [resolvable:$true] %s2586_s11 }
 0x52e   : > { %s4868_s25 = scalar_lea.sflag [#allocation6], %s543_s4  ;;  %s3772_s2 = scalar_lea.vmem %s4864_s11, 2048 }
 0x52f   : > { %p3773_p7 = scmp.ne.s32.totalorder %s4864_s11, %s3772_s2  ;;  %s3978_s29 = smov [#allocation16]  }
 0x530   : > { %s3776_s15 = sshll.u32 %s3978_s29, 4  ;;  %s3777_s15 = int_to_ptr.vmem [resolvable:$false] %s3776_s15 }
 0x531   : > { %s3778_s6 = scalar_lea.vmem %s3777_s15, 4096  ;;  %p3779_p12 = scmp.lt.s32.totalorder %s4864_s11, %s3777_s15 }
 0x532   : > { %s3013_s18 = sshll.u32 %s5088_s28, 11  ;;  %p5092_p3 = scmp.ne.s32.totalorder %s5090_s24, 0 }
 0x533   : > { %s4861_s16 = scalar_lea.hbm %s5091_s1, %s3013_s18  ;;  %p3780_p9 = scmp.lt.s32.totalorder %s3778_s6, %s3772_s2 }
 0x534   : > { %p3774_p0 = pnand %p3773_p7, %p5092_p3 }
 0x535   : > { %p3781_p6 = por %p3780_p9, %p3779_p12 }
 0x536   : > { %p3775_p5 = pneg %p3774_p0 }
 0x538   : > { %p3782_p2 = pnand %p3781_p6, %p3775_p5 }
 0x53a   : > { %3785 = shalt.err (!%p3782_p2)
}
 0x53b   : > { %s3786_s4 = scalar_lea.hbm %s4861_s16, 2048  ;;  %s3790_s3 = scalar_lea.hbm %s5091_s1, 4096 }
 0x53c   : > { %p3787_p8 = scmp.ne.s32.totalorder %s4861_s16, %s3786_s4  ;;  %p3791_p11 = scmp.lt.u32.totalorder %s4861_s16, %s5091_s1 }
 0x53d   : > { %p3792_p10 = scmp.lt.u32.totalorder %s3790_s3, %s3786_s4  ;;  %p3794_p7 = scmp.lt.u32.totalorder %s3786_s4, %s4861_s16 }
 0x53e   : > { %p3788_p4 = pnand %p3787_p8, %p5092_p3 }
 0x53f   : > { %p3793_p1 = por %p3792_p10, %p3791_p11 }
 0x540   : > { %p3789_p13 = pneg %p3788_p4 }
 0x541   : > { %p3795_p0 = por %p3794_p7, %p3793_p1 }
 0x543   : > { %p3796_p5 = pnand %p3795_p0, %p3789_p13 }
 0x545   : > { %3799 = shalt.err (!%p3796_p5)
}
 0x546   : > { %s3979_s0 = smov 128   ;;  %s3980_s28 = smov 8  }
 0x547   : > { %3224 = dma.vmem_to_hbm [thread:$0]  (%p5092_p3), %s4864_s11, 2048, %s4861_s16, %s4868_s25, %s3979_s0, %s3979_s0, %s3980_s28  }
 0x548 PF: > { %s5093_s10 = sld [smem:[#allocation24_spill]]  ;;  %p3258_p12 = scmp.ge.s32.totalorder %s3962_s17, 2 }
 0x549   : > { %s5094_s18 = sld [smem:[#allocation38_spill]] }
 0x54e   : > { %s2601_s23 = sand.u32 1, %s5093_s10  }
 0x54f   : > { %p5095_p9 = scmp.ne.s32.totalorder %s5094_s18, 0  ;;  %s2602_s20 = scalar_lea.sflag [#allocation6], %s2601_s23 }
 0x551   : > { %p3250_p6 = pnand %p3258_p12, %p5095_p9 }
 0x553   : > { %3893 = dma.done.wait (!%p3250_p6), %s2602_s20, 2048  }
 0x554   : > { %3895 = vsyncadd (!%p3250_p6), %s2602_s20, 4294965248  ;;  %s32_s17 = sadd.s32 1, %s3962_s17   ;;  %s5097_s24 = sld [smem:[#allocation25_spill]] }
 0x555   : > { %p4897_p2 = scmp.ge.s32.totalorder %s32_s17, 14   ;;  %s5098_s27 = sld [smem:[#allocation26_spill]] }
 0x556   : > { %s5099_s28 = sld [smem:[#allocation27_spill]]  ;;  %s5100_s29 = sld [smem:[#allocation41_spill]] }
 0x557   : > { %s5101_s10 = sld [smem:[#allocation28_spill]]  ;;  %s5102_s16 = sld [smem:[#allocation31_spill]] }
 0x558   : > { %s5103_s15 = sld [smem:[#allocation32_spill]]  ;;  %s5104_s6 = sld [smem:[#allocation40_spill]] }
 0x559   : > { %s5105_s4 = sld [smem:[#allocation43_spill]]  ;;  %s5106_s25 = smov %s3906_s26 }
 0x55a   : > { %s5107_s26 = smov %s4324_s13  ;;  %s5108_s30 = smov %s3926_s8 }
 0x55b   : > { %s5109_s8 = smov %s3930_s9  ;;  %s5110_s9 = smov %s4377_s14 }
 0x55c   : > { %s5111_s11 = smov %s3942_s12  ;;  %s5112_s12 = smov %s4319_s7 }
 0x55d   : > { %s5113_s13 = smov %s5102_s16  ;;  %31 = sbr.rel (!%p4897_p2) target bundleno = 27 (0x1b), region = 167 }
 0x55e   : > { %s5114_s14 = smov %s5103_s15  ;;  %s5115_s15 = smov %s5104_s6 }
 0x55f   : > { %s5116_s16 = smov %s5105_s4 }
 0x564   :  { %2607 = vsyncpa [#allocation5], 1 }
 0x565   :  { %2609 = vsyncpa [#allocation5 + $0x1], 1 }
 0x566   :  { %2610 = vsyncpa [#allocation8], 1 }
 0x567   :  { %2612 = vsyncpa [#allocation8 + $0x1], 1 }
 0x568   :  { %2613 = vsyncpa [#allocation11], 1 }
 0x569   :  { %2615 = vsyncpa [#allocation11 + $0x1], 1 }
 0x56a   :  { %2616 = vsyncpa [#allocation14], 1 }
 0x56b   :  { %2618 = vsyncpa [#allocation14 + $0x1], 1 }
 0x56c   :  { %2619 = vsyncpa [#allocation6], 1 }
 0x56d   :  { %2621 = vsyncpa [#allocation6 + $0x1], 1 }

// kernel: tpu_custom_call.1
= control target key start
LH: loop header
LB: loop body
LE: loop exit
PB: predicated region body
PF: predicated region fallthrough
CT: control target
= control target key end

     0   :  { %s4953_s0 = inlined_call_operand.hbm [shape: bf16[256,512], index: 0, kind: input, shape index: {}]   ;;  %s4954_s1 = inlined_call_operand.hbm [shape: bf16[512,512], index: 1, kind: input, shape index: {}]   ;;  %s4955_s2 = inlined_call_operand.hbm [shape: f32[1,512], index: 2, kind: input, shape index: {}]   ;;  %s4956_s3 = inlined_call_operand.hbm [shape: bf16[512,512], index: 3, kind: input, shape index: {}]   ;;  %s4957_s4 = inlined_call_operand.hbm [shape: f32[1,512], index: 4, kind: input, shape index: {}]   ;;  %s4958_s5 = inlined_call_operand.hbm [shape: bf16[512,128], index: 5, kind: input, shape index: {}]   ;;  %s4959_s6 = inlined_call_operand.hbm [shape: f32[1,128], index: 6, kind: input, shape index: {}]   ;;  %s4960_s7 = inlined_call_operand.hbm [shape: f32[256,128], index: 7, kind: output, shape index: {}]  }
   0x1   :  { %5003 = sst [smem:[#allocation44_spill]] %s4953_s0 }
   0x2   :  { %5004 = sst [smem:[#allocation45_spill]] %s4954_s1 }
   0x3   :  { %5005 = sst [smem:[#allocation46_spill]] %s4955_s2 }
   0x4   :  { %5006 = sst [smem:[#allocation47_spill]] %s4956_s3 }
   0x5   :  { %5007 = sst [smem:[#allocation48_spill]] %s4957_s4 }
   0x6   :  { %5008 = sst [smem:[#allocation49_spill]] %s4958_s5 }
   0x7   :  { %5009 = sst [smem:[#allocation50_spill]] %s4959_s6 }
   0x8   :  { %5010 = sst [smem:[#allocation51_spill]] %s4960_s7 }
   0x9   :  { %12 = vsyncpa [#allocation5], 0 }
   0xa   :  { %14 = vsyncpa [#allocation5 + $0x1], 0 }
   0xb   :  { %15 = vsyncpa [#allocation8], 0 }
   0xc   :  { %17 = vsyncpa [#allocation8 + $0x1], 0 }
   0xd   :  { %18 = vsyncpa [#allocation11], 0 }
   0xe   :  { %20 = vsyncpa [#allocation11 + $0x1], 0 }
   0xf   :  { %21 = vsyncpa [#allocation14], 0 }
  0x10   :  { %23 = vsyncpa [#allocation14 + $0x1], 0 }
  0x11   :  { %24 = vsyncpa [#allocation6], 0 }
  0x12   :  { %26 = vsyncpa [#allocation6 + $0x1], 0  ;;  %s4021_s24 = smov 0   ;;  %s4023_s25 = smov 0  }
  0x13   :  { %s4025_s26 = smov 0   ;;  %s4027_s27 = smov 0  }
  0x14   :  { %s4029_s28 = smov 0   ;;  %s4031_s29 = smov 0  }
  0x15   :  { %s4033_s30 = smov 0   ;;  %s4035_s8 = smov 0  }
  0x16   :  { %s4037_s9 = smov 0   ;;  %s4039_s10 = smov 0  }
  0x17   :  { %s4041_s11 = smov 0   ;;  %s4043_s12 = smov 0  }
  0x18   :  { %s4045_s13 = smov 0   ;;  %s4047_s14 = smov 0  }
  0x19   :  { %s4049_s15 = smov 0   ;;  %s4051_s16 = smov 0  }
  0x1a   :  { %s4053_s17 = smov 0  }
  0x1b LB: > { %5011 = sst [smem:[#allocation24_spill]] %s3898_s24  ;;  %s4101_s18 = sadd.s32 4294967295, %s3962_s17   ;;  %s3962_s17 = sphi %s4053_s17, %s32_s17   ;;  %s3958_s16 = sphi %s4051_s16, %s5116_s16   ;;  %s3954_s15 = sphi %s4049_s15, %s5115_s15   ;;  %s3950_s14 = sphi %s4047_s14, %s5114_s14   ;;  %s3946_s13 = sphi %s4045_s13, %s5113_s13   ;;  %s3942_s12 = sphi %s4043_s12, %s5112_s12   ;;  %s3938_s11 = sphi %s4041_s11, %s5111_s11   ;;  %s3934_s10 = sphi %s4039_s10, %s5101_s10   ;;  %s3930_s9 = sphi %s4037_s9, %s5110_s9   ;;  %s3926_s8 = sphi %s4035_s8, %s5109_s8   ;;  %s3922_s30 = sphi %s4033_s30, %s5108_s30   ;;  %s3918_s29 = sphi %s4031_s29, %s5100_s29   ;;  %s3914_s28 = sphi %s4029_s28, %s5099_s28   ;;  %s3910_s27 = sphi %s4027_s27, %s5098_s27   ;;  %s3906_s26 = sphi %s4025_s26, %s5107_s26   ;;  %s3902_s25 = sphi %s4023_s25, %s5106_s25   ;;  %s3898_s24 = sphi %s4021_s24, %s5097_s24  }
  0x1c   : > { %5012 = sst [smem:[#allocation25_spill]] %s3902_s25  ;;  %s2778_s19 = sadd.s32 4294967294, %s3962_s17  }
  0x1d   : > { %5013 = sst [smem:[#allocation26_spill]] %s3914_s28  ;;  %p70_p0 = scmp.ne.s32.totalorder %s3938_s11, %s3934_s10 }
  0x1e   : > { %5014 = sst [smem:[#allocation27_spill]] %s3918_s29  ;;  %p4972_p1 = scmp.eq.s32.totalorder %s4101_s18, 0 }
  0x1f   : > { %5015 = sst [smem:[#allocation28_spill]] %s3938_s11  ;;  %p100_p2 = scmp.ne.s32.totalorder %s3926_s8, %s3922_s30 }
  0x20   : > { %5016 = sst [smem:[#allocation29_spill]] %s3946_s13  ;;  %p157_p3 = scmp.ne.s32.totalorder %s3914_s28, %s3910_s27 }
  0x21   : > { %5017 = sst [smem:[#allocation30_spill]] %s3950_s14  ;;  %p4110_p4 = por %p4972_p1, %p70_p0 }
  0x22   : > { %5018 = sst [smem:[#allocation31_spill]] %s3954_s15  ;;  %p4117_p5 = por %p100_p2, %p4972_p1 }
  0x23   : > { %5019 = sst [smem:[#allocation32_spill]] %s3958_s16  ;;  %p4123_p6 = por %p157_p3, %p4972_p1 }
  0x24   : > { %5020 = sst [smem:[#allocation33_spill]] %s4101_s18  ;;  %p273_p7 = scmp.ne.s32.totalorder %s3906_s26, %s3902_s25 }
  0x25   : > { %s5021_s20 = scalar_select %p4110_p4, 1, 0 }
  0x26   : > { %s5023_s22 = scalar_select %p4117_p5, 1, 0 }
  0x27   : > { %5022 = sst [smem:[#allocation34_spill]] %s5021_s20  ;;  %p274_p8 = scmp.eq.s32.totalorder %s4101_s18, 11 }
  0x28   : > { %5024 = sst [smem:[#allocation35_spill]] %s5023_s22  ;;  %p279_p9 = scmp.ne.s32.totalorder %s3902_s25, %s3898_s24 }
  0x29   : > { %s5025_s23 = scalar_select %p4123_p6, 1, 0 }
  0x2a   : > { %p280_p10 = scmp.eq.s32.totalorder %s2778_s19, 11  ;;  %p4132_p11 = por %p274_p8, %p273_p7 }
  0x2b   : > { %5026 = sst [smem:[#allocation36_spill]] %s5025_s23  ;;  %p2815_p12 = scmp.ge.s32.totalorder %s3962_s17, 1 }
  0x2c   : > { %s5027_s27 = scalar_select %p4132_p11, 1, 0 }
  0x2d   : > { %p4137_p13 = por %p280_p10, %p279_p9  ;;  %p287_p0 = scmp.lt.s32.totalorder %s3962_s17, 13 }
  0x2e   : > { %5028 = sst [smem:[#allocation37_spill]] %s5027_s27  ;;  %s3964_s21 = smov [#allocation9]  }
  0x2f   : > { %s5029_s30 = scalar_select %p4137_p13, 1, 0 }
  0x30   : > { %p4142_p2 = pnand %p2815_p12, %p287_p0  ;;  %s300_s7 = sshll.u32 %s3964_s21, 4  ;;  %s301_s7 = int_to_ptr.vmem [resolvable:$true] %s300_s7 }
  0x31   : > { %5030 = sst [smem:[#allocation38_spill]] %s5029_s30  ;;  %s3965_s19 = smov [#allocation15]  }
  0x32   : > { %s5031_s10 = scalar_select %p4142_p2, 1, 0 }
  0x33   : > { %p3226_p3 = pneg %p4142_p2  ;;  %s311_s24 = sshll.u32 %s3965_s19, 4  ;;  %s4154_s24 = int_to_ptr.vmem [resolvable:$true] %s311_s24 }
  0x34   : > { %5032 = sst [smem:[#allocation39_spill]] %s5031_s10 }
  0x35   : > { %p4150_p7 = pnand %p3226_p3, %p4972_p1  ;;  %s5034_s2 = sld [smem:[#allocation46_spill]] }
  0x37   : > { %p3568_p9 = pneg %p4150_p7 }
  0x3b   : > { %s3566_s13 = scalar_lea.hbm %s5034_s2, 64 }
  0x3c   : > { %p3567_p8 = scmp.ne.s32.totalorder %s5034_s2, %s3566_s13  ;;  %p3573_p0 = scmp.lt.u32.totalorder %s3566_s13, %s5034_s2 }
  0x3e   : > { %p3569_p10 = pnand %p3568_p9, %p3567_p8 }
  0x40   : > { %p3570_p12 = pneg %p3569_p10 }
  0x42   : > { %p3575_p3 = pnand %p3573_p0, %p3570_p12 }
  0x44   : > { %3578 = shalt.err (!%p3575_p3)
}
  0x45   : > { %s3579_s22 = scalar_lea.vmem %s301_s7, 64  ;;  %p3587_p6 = scmp.lt.s32.totalorder %s301_s7, %s301_s7 }
  0x46   : > { %p3580_p1 = scmp.ne.s32.totalorder %s301_s7, %s3579_s22  ;;  %p3588_p5 = scmp.lt.s32.totalorder %s3579_s22, %s3579_s22 }
  0x48   : > { %p3582_p13 = pnand %p3580_p1, %p3568_p9  ;;  %p3589_p4 = por %p3588_p5, %p3587_p6 }
  0x4a   : > { %p3583_p11 = pneg %p3582_p13 }
  0x4c   : > { %p3590_p2 = pnand %p3589_p4, %p3583_p11 }
  0x4e   : > { %3593 = shalt.err (!%p3590_p2)
}
  0x4f   : > { %3229 = dma.hbm_to_vmem [thread:$0]  (!%p4150_p7), %s5034_s2, 64, %s301_s7, [#allocation8]  }
  0x50   : > { %s5035_s6 = sld [smem:[#allocation50_spill]] }
  0x56   : > { %s3594_s30 = scalar_lea.hbm %s5035_s6, 16 }
  0x57   : > { %p3595_p1 = scmp.ne.s32.totalorder %s5035_s6, %s3594_s30  ;;  %p3601_p6 = scmp.lt.u32.totalorder %s3594_s30, %s5035_s6 }
  0x59   : > { %p3597_p5 = pnand %p3595_p1, %p3568_p9 }
  0x5b   : > { %p3598_p4 = pneg %p3597_p5 }
  0x5d   : > { %p3603_p11 = pnand %p3601_p6, %p3598_p4 }
  0x5f   : > { %3606 = shalt.err (!%p3603_p11)
}
  0x60   : > { %s3607_s7 = scalar_lea.vmem %s4154_s24, 16  ;;  %s3614_s25 = scalar_lea.vmem %s4154_s24, 32 }
  0x61   : > { %p3608_p13 = scmp.ne.s32.totalorder %s4154_s24, %s3607_s7  ;;  %p3615_p10 = scmp.lt.s32.totalorder %s4154_s24, %s4154_s24 }
  0x62   : > { %p3616_p12 = scmp.lt.s32.totalorder %s3614_s25, %s3607_s7 }
  0x63   : > { %p3610_p2 = pnand %p3608_p13, %p3568_p9 }
  0x64   : > { %p3617_p0 = por %p3616_p12, %p3615_p10 }
  0x65   : > { %p3611_p8 = pneg %p3610_p2 }
  0x67   : > { %p3618_p3 = pnand %p3617_p0, %p3611_p8 }
  0x69   : > { %3621 = shalt.err (!%p3618_p3)
}
  0x6a   : > { %3232 = dma.hbm_to_vmem [thread:$0]  (!%p4150_p7), %s5035_s6, 16, %s4154_s24, [#allocation14]  }
  0x6b   : > { %s41_s13 = sadd.s32 1, %s3954_s15  ;;  %p4985_p9 = scmp.eq.s32.totalorder %s3962_s17, 0 }
  0x6c   : > { %p4206_p1 = scmp.ge.s32.totalorder %s41_s13, 6  ;;  %s2779_s27 = sadd.s32 4294967294, %s3954_s15 }
  0x6d   : > { %p132_p5 = scmp.gt.s32.totalorder %s2779_s27, 0  ;;  %p2780_p4 = scmp.lt.s32.totalorder %s2779_s27, 3 }
  0x6e   : > { %s5036_s23 = scalar_select %p4206_p1, 1, 0 }
  0x6f   : > { %s5118_s13 = smov (%p4206_p1, %s41_s13), 0  ;;  %s5120_s27 = smov (!%p132_p5, %s2779_s27), 0 }
  0x70   : > { %5037 = sst [smem:[#allocation40_spill]] %s5118_s13  ;;  %s2785_s30 = sadd.s32 4294967294, %s5118_s13 }
  0x71   : > { %s144_s24 = sadd.s32 1, %s3918_s29  ;;  %s5122_s27 = smov (!%p2780_p4, %s5120_s27), 3 }
  0x72   : > { %p137_p7 = scmp.gt.s32.totalorder %s2785_s30, 0  ;;  %p2786_p6 = scmp.lt.s32.totalorder %s2785_s30, 3 }
  0x73   : > { %p151_p11 = scmp.ne.s32.totalorder %s3918_s29, %s3914_s28  ;;  %p4984_p13 = scmp.lt.s32.totalorder %s3962_s17, 12 }
  0x74   : > { %s5124_s30 = smov (!%p137_p7, %s2785_s30), 0  ;;  %s4229_s19 = sand.u32 1, %s3962_s17  }
  0x75   : > { %p4224_p2 = por %p151_p11, %p4985_p9  ;;  %s5126_s30 = smov (!%p2786_p6, %s5124_s30), 3 }
  0x76   : > { %s4232_s22 = sand.u32 1, %s3918_s29   ;;  %s141_s7 = ssub.s32 %s5122_s27, %s5126_s30 }
  0x77   : > { %p142_p8 = scmp.eq.s32.totalorder %s141_s7, 0  ;;  %s2828_s25 = sshll.u32 %s4232_s22, 8 }
  0x78   : > { %s2835_s18 = sshll.u32 %s5122_s27, 6  ;;  %s5040_s3 = sld [smem:[#allocation47_spill]] }
  0x79   : > { %s4238_s14 = scalar_select %p142_p8, %s3918_s29, %s144_s24  }
  0x7a   : > { %s376_s20 = scalar_lea.vmem [#allocation10], %s2828_s25  ;;  %p4251_p10 = pnand %p4984_p13, %p4224_p2 }
  0x7b   : > { %5039 = sst [smem:[#allocation41_spill]] %s4238_s14  ;;  %s387_s10 = sshll.u32 %s376_s20, 4  ;;  %s4245_s10 = int_to_ptr.vmem [resolvable:$true] %s387_s10 }
  0x7c   : > { %s5041_s30 = scalar_select %p4251_p10, 1, 0 }
  0x7d   : > { %p4260_p0 = pneg %p4251_p10 }
  0x7e   : > { %s4243_s28 = scalar_lea.hbm %s5040_s3, %s2835_s18  ;;  %5042 = sst [smem:[#allocation42_spill]] %s5041_s30 }
  0x7f   : > { %s3622_s7 = scalar_lea.hbm %s4243_s28, 4096  ;;  %s3627_s21 = scalar_lea.hbm %s5040_s3, 16384 }
  0x80   : > { %p3623_p12 = scmp.ne.s32.totalorder %s4243_s28, %s3622_s7  ;;  %p3628_p4 = scmp.lt.u32.totalorder %s4243_s28, %s5040_s3 }
  0x81   : > { %p3629_p7 = scmp.lt.u32.totalorder %s3627_s21, %s3622_s7  ;;  %p3631_p11 = scmp.lt.u32.totalorder %s3622_s7, %s4243_s28 }
  0x82   : > { %p3625_p3 = pnand %p4260_p0, %p3623_p12 }
  0x83   : > { %p3630_p6 = por %p3629_p7, %p3628_p4 }
  0x84   : > { %p3626_p5 = pneg %p3625_p3 }
  0x85   : > { %p3632_p2 = por %p3631_p11, %p3630_p6 }
  0x87   : > { %p3633_p8 = pnand %p3632_p2, %p3626_p5 }
  0x89   : > { %3636 = shalt.err (!%p3633_p8)
}
  0x8a   : > { %s3637_s24 = scalar_lea.vmem %s4245_s10, 4096  ;;  %s3966_s6 = smov [#allocation10]  }
  0x8b   : > { %p3638_p12 = scmp.ne.s32.totalorder %s4245_s10, %s3637_s24  ;;  %s3642_s20 = sshll.u32 %s3966_s6, 4  ;;  %s3643_s20 = int_to_ptr.vmem [resolvable:$false] %s3642_s20 }
  0x8c   : > { %s3644_s25 = scalar_lea.vmem %s3643_s20, 8192  ;;  %p3645_p9 = scmp.lt.s32.totalorder %s4245_s10, %s3643_s20 }
  0x8d   : > { %p3640_p3 = pnand %p3638_p12, %p4260_p0  ;;  %p3646_p1 = scmp.lt.s32.totalorder %s3644_s25, %s3637_s24 }
  0x8f   : > { %p3641_p13 = pneg %p3640_p3  ;;  %p3647_p4 = por %p3646_p1, %p3645_p9 }
  0x91   : > { %p3648_p7 = pnand %p3647_p4, %p3641_p13 }
  0x93   : > { %3651 = shalt.err (!%p3648_p7)
}
  0x94   : > { %s4989_s7 = smov 256   ;;  %s4987_s24 = smov 64  }
  0x95   : > { %s4988_s21 = smov 4   ;;  %s5044_s18 = scalar_lea.sflag [#allocation11], %s4229_s19 }
  0x96   : > { %3242 = dma.hbm_to_vmem [thread:$0]  (!%p4251_p10), %s4243_s28, 4096, %s4245_s10, %s5044_s18, %s4989_s7, %s4987_s24, %s4988_s21  }
  0x97   : > { %p48_p9 = scmp.lt.s32.totalorder %s3954_s15, 1  ;;  %s44_s6 = sadd.s32 1, %s3958_s16 }
  0x98   : > { %p50_p1 = scmp.lt.s32.totalorder %s5118_s13, 1  ;;  %p5045_p13 = scmp.ne.s32.totalorder %s5036_s23, 0 }
  0x99   : > { %s4295_s20 = scalar_select %p48_p9, %s3954_s15, 1 }
  0x9a   : > { %s5128_s6 = smov (!%p5045_p13, %s44_s6), %s3958_s16  ;;  %s57_s25 = sadd.s32 1, %s3942_s12 }
  0x9b   : > { %p46_p5 = scmp.ge.s32.totalorder %s5128_s6, 2  ;;  %p64_p6 = scmp.ne.s32.totalorder %s3942_s12, %s3938_s11 }
  0x9c   : > { %s51_s3 = scalar_select %p50_p1, %s5118_s13, 1 }
  0x9d   : > { %s5130_s6 = smov (%p46_p5, %s5128_s6), 0  ;;  %p5047_p2 = scmp.eq.s32.totalorder %s3962_s17, 0 }
  0x9e   : > { %5046 = sst [smem:[#allocation43_spill]] %s5130_s6  ;;  %s4302_s28 = ssub.s32 %s4295_s20, %s51_s3 }
  0x9f   : > { %s52_s10 = ssub.s32 %s3958_s16, %s5130_s6  ;;  %p4312_p8 = por %p5047_p2, %p64_p6 }
  0xa0   : > { %s54_s23 = sor.u32 %s4302_s28, %s52_s10  ;;  %p261_p3 = scmp.eq.s32.totalorder %s52_s10, 0 }
  0xa1   : > { %p55_p12 = scmp.eq.s32.totalorder %s54_s23, 0  ;;  %s322_s24 = sand.u32 1, %s3942_s12  }
  0xa2   : > { %s2821_s21 = sshll.u32 %s4295_s20, 1  ;;  %s5049_s3 = sadd.s32 1, %s3906_s26 }
  0xa3   : > { %s4319_s7 = scalar_select %p55_p12, %s3942_s12, %s57_s25  }
  0xa4   : > { %s4324_s13 = scalar_select %p261_p3, %s3906_s26, %s5049_s3  }
  0xa5   : > { %s2819_s15 = sshll.u32 %s322_s24, 7  ;;  %s3003_s6 = sshll.u32 %s3958_s16, 6 }
  0xa6   : > { %s335_s14 = sadd.s32 %s3003_s6, %s2821_s21  ;;  %s326_s29 = scalar_lea.vmem [#allocation4], %s2819_s15 }
  0xa7   : > { %s338_s11 = sshll.u32 %s326_s29, 4  ;;  %s2823_s5 = sshll.u32 %s335_s14, 6  ;;  %s4327_s11 = int_to_ptr.vmem [resolvable:$true] %s338_s11 }
  0xa8   : > { %s5050_s0 = sld [smem:[#allocation44_spill]]  ;;  %p5051_p4 = scmp.lt.s32.totalorder %s3962_s17, 12 }
  0xa9   : > { %s4342_s29 = scalar_lea.sflag [#allocation5], %s322_s24 }
  0xaa   : > { %p4338_p7 = pnand %p5051_p4, %p4312_p8 }
  0xac   : > { %p3654_p1 = pneg %p4338_p7 }
  0xae   : > { %s4332_s23 = scalar_lea.hbm %s5050_s0, %s2823_s5  ;;  %s3657_s14 = scalar_lea.hbm %s5050_s0, 8192 }
  0xaf   : > { %s3652_s15 = scalar_lea.hbm %s4332_s23, 2048  ;;  %p3658_p6 = scmp.lt.u32.totalorder %s4332_s23, %s5050_s0 }
  0xb0   : > { %p3653_p9 = scmp.ne.s32.totalorder %s4332_s23, %s3652_s15  ;;  %p3659_p2 = scmp.lt.u32.totalorder %s3657_s14, %s3652_s15 }
  0xb1   : > { %p3661_p12 = scmp.lt.u32.totalorder %s3652_s15, %s4332_s23 }
  0xb2   : > { %p3655_p13 = pnand %p3654_p1, %p3653_p9  ;;  %p3660_p8 = por %p3659_p2, %p3658_p6 }
  0xb4   : > { %p3656_p5 = pneg %p3655_p13  ;;  %p3662_p3 = por %p3661_p12, %p3660_p8 }
  0xb6   : > { %p3663_p4 = pnand %p3662_p3, %p3656_p5 }
  0xb8   : > { %3666 = shalt.err (!%p3663_p4)
}
  0xb9   : > { %s3667_s24 = scalar_lea.vmem %s4327_s11, 2048  ;;  %s3970_s6 = smov [#allocation4]  }
  0xba   : > { %p3668_p9 = scmp.ne.s32.totalorder %s4327_s11, %s3667_s24  ;;  %s3672_s10 = sshll.u32 %s3970_s6, 4  ;;  %s3673_s10 = int_to_ptr.vmem [resolvable:$false] %s3672_s10 }
  0xbb   : > { %s3674_s18 = scalar_lea.vmem %s3673_s10, 4096  ;;  %p3675_p10 = scmp.lt.s32.totalorder %s4327_s11, %s3673_s10 }
  0xbc   : > { %p3670_p13 = pnand %p3668_p9, %p3654_p1  ;;  %p3676_p6 = scmp.lt.s32.totalorder %s3674_s18, %s3667_s24 }
  0xbe   : > { %p3671_p11 = pneg %p3670_p13  ;;  %p3677_p2 = por %p3676_p6, %p3675_p10 }
  0xc0   : > { %p3678_p8 = pnand %p3677_p2, %p3671_p11 }
  0xc2   : > { %3681 = shalt.err (!%p3678_p8)
}
  0xc3   : > { %s3971_s3 = smov 128   ;;  %s3972_s15 = smov 8  }
  0xc4   : > { %s5053_s4 = smov 256   ;;  %s87_s5 = sadd.s32 1, %s3930_s9 }
  0xc5   : > { %3236 = dma.hbm_to_vmem [thread:$0]  (!%p4338_p7), %s4332_s23, 2048, %s4327_s11, %s4342_s29, %s5053_s4, %s3971_s3, %s3972_s15  }
  0xc6   : > { %p94_p10 = scmp.ne.s32.totalorder %s3930_s9, %s3926_s8  ;;  %p5054_p11 = scmp.eq.s32.totalorder %s4302_s28, 0 }
  0xc7   : > { %p5055_p1 = scmp.eq.s32.totalorder %s3962_s17, 0  ;;  %s350_s30 = sand.u32 1, %s3930_s9  }
  0xc8   : > { %s4377_s14 = scalar_select %p5054_p11, %s3930_s9, %s87_s5  }
  0xc9   : > { %p96_p5 = por %p94_p10, %p5055_p1  ;;  %s2824_s21 = sshll.u32 %s350_s30, 9 }
  0xca   : > { %s3005_s24 = sshll.u32 %s4295_s20, 13  ;;  %s5056_s1 = sld [smem:[#allocation45_spill]] }
  0xcb   : > { %s352_s11 = scalar_lea.vmem [#allocation7], %s2824_s21  ;;  %p5057_p7 = scmp.lt.s32.totalorder %s3962_s17, 12 }
  0xcc   : > { %s362_s23 = sshll.u32 %s352_s11, 4  ;;  %s349_s20 = scalar_lea.sflag [#allocation8], %s4229_s19  ;;  %s4394_s23 = int_to_ptr.vmem [resolvable:$true] %s362_s23 }
  0xcd   : > { %p4390_p12 = pnand %p5057_p7, %p96_p5 }
  0xcf   : > { %p3684_p4 = pneg %p4390_p12 }
  0xd0   : > { %s4386_s18 = scalar_lea.hbm %s5056_s1, %s3005_s24  ;;  %s3687_s15 = scalar_lea.hbm %s5056_s1, 16384 }
  0xd1   : > { %s3682_s25 = scalar_lea.hbm %s4386_s18, 8192  ;;  %p3688_p6 = scmp.lt.u32.totalorder %s4386_s18, %s5056_s1 }
  0xd2   : > { %p3683_p3 = scmp.ne.s32.totalorder %s4386_s18, %s3682_s25  ;;  %p3689_p2 = scmp.lt.u32.totalorder %s3687_s15, %s3682_s25 }
  0xd3   : > { %p3691_p10 = scmp.lt.u32.totalorder %s3682_s25, %s4386_s18 }
  0xd4   : > { %p3685_p9 = pnand %p3684_p4, %p3683_p3  ;;  %p3690_p8 = por %p3689_p2, %p3688_p6 }
  0xd6   : > { %p3686_p13 = pneg %p3685_p9  ;;  %p3692_p11 = por %p3691_p10, %p3690_p8 }
  0xd8   : > { %p3693_p1 = pnand %p3692_p11, %p3686_p13 }
  0xda   : > { %3696 = shalt.err (!%p3693_p1)
}
  0xdb   : > { %s3697_s21 = scalar_lea.vmem %s4394_s23, 8192  ;;  %s3973_s24 = smov [#allocation7]  }
  0xdc   : > { %p3698_p5 = scmp.ne.s32.totalorder %s4394_s23, %s3697_s21  ;;  %s3702_s6 = sshll.u32 %s3973_s24, 4  ;;  %s3703_s6 = int_to_ptr.vmem [resolvable:$false] %s3702_s6 }
  0xdd   : > { %s3704_s10 = scalar_lea.vmem %s3703_s6, 16384  ;;  %p3705_p9 = scmp.lt.s32.totalorder %s4394_s23, %s3703_s6 }
  0xde   : > { %p3700_p7 = pnand %p3698_p5, %p3684_p4  ;;  %p3706_p6 = scmp.lt.s32.totalorder %s3704_s10, %s3697_s21 }
  0xe0   : > { %p3701_p3 = pneg %p3700_p7  ;;  %p3707_p2 = por %p3706_p6, %p3705_p9 }
  0xe2   : > { %p3708_p8 = pnand %p3707_p2, %p3701_p3 }
  0xe4   : > { %3711 = shalt.err (!%p3708_p8)
}
  0xe5   : > { %s3974_s11 = smov 16   ;;  %s2842_s25 = sshll.u32 %s5122_s27, 4 }
  0xe6   : > { %3239 = dma.hbm_to_vmem [thread:$0]  (!%p4390_p12), %s4386_s18, 8192, %s4394_s23, %s349_s20, %s5053_s4, %s5053_s4, %s3974_s11  }
  0xe7   : > { %s400_s29 = scalar_lea.vmem [#allocation12], %s4232_s22  ;;  %s5059_s30 = sld [smem:[#allocation48_spill]] }
  0xe8   : > { %s412_s3 = sshll.u32 %s400_s29, 4  ;;  %s413_s3 = int_to_ptr.vmem [resolvable:$true] %s412_s3 }
  0xed   : > { %s5060_s21 = smov %s5059_s30  ;;  %s410_s24 = scalar_lea.hbm %s5059_s30, %s2842_s25 }
  0xee   : > { %s3712_s6 = scalar_lea.hbm %s410_s24, 16  ;;  %s3717_s0 = scalar_lea.hbm %s5060_s21, 64 }
  0xef   : > { %p3713_p4 = scmp.ne.s32.totalorder %s410_s24, %s3712_s6  ;;  %p3718_p12 = scmp.lt.u32.totalorder %s410_s24, %s5060_s21 }
  0xf0   : > { %p3719_p11 = scmp.lt.u32.totalorder %s3717_s0, %s3712_s6  ;;  %p3721_p5 = scmp.lt.u32.totalorder %s3712_s6, %s410_s24 }
  0xf1   : > { %p3715_p13 = pnand %p3713_p4, %p4260_p0 }
  0xf2   : > { %p3720_p1 = por %p3719_p11, %p3718_p12 }
  0xf3   : > { %p3716_p10 = pneg %p3715_p13 }
  0xf4   : > { %p3722_p7 = por %p3721_p5, %p3720_p1 }
  0xf6   : > { %p3723_p3 = pnand %p3722_p7, %p3716_p10 }
  0xf8   : > { %3726 = shalt.err (!%p3723_p3)
}
  0xf9   : > { %s3727_s4 = scalar_lea.vmem %s413_s3, 16  ;;  %s3975_s18 = smov [#allocation12]  }
  0xfa   : > { %p3728_p9 = scmp.ne.s32.totalorder %s413_s3, %s3727_s4  ;;  %s3732_s23 = sshll.u32 %s3975_s18, 4  ;;  %s3733_s23 = int_to_ptr.vmem [resolvable:$false] %s3732_s23 }
  0xfb   : > { %s3734_s20 = scalar_lea.vmem %s3733_s23, 32  ;;  %p3735_p8 = scmp.lt.s32.totalorder %s413_s3, %s3733_s23 }
  0xfc   : > { %p3730_p6 = pnand %p3728_p9, %p4260_p0  ;;  %p3736_p4 = scmp.lt.s32.totalorder %s3734_s20, %s3727_s4 }
  0xfe   : > { %p3731_p2 = pneg %p3730_p6  ;;  %p3737_p13 = por %p3736_p4, %p3735_p8 }
 0x100   : > { %p3738_p11 = pnand %p3737_p13, %p3731_p2 }
 0x102   : > { %3741 = shalt.err (!%p3738_p11)
}
 0x103   : > { %s5061_s0 = sld [smem:[#allocation42_spill]]  ;;  %s5063_s1 = scalar_lea.sflag [#allocation11], %s4229_s19 }
 0x104   : > { %s2843_s16 = sshll.u32 %s4232_s22, 6  ;;  %s3012_s11 = sshll.u32 %s5122_s27, 10 }
 0x105   : > { %s5064_s15 = sld [smem:[#allocation49_spill]]  ;;  %s423_s6 = scalar_lea.vmem [#allocation13], %s2843_s16 }
 0x106   : > { %s435_s28 = sshll.u32 %s423_s6, 4  ;;  %s420_s10 = scalar_lea.sflag [#allocation14], %s4229_s19  ;;  %s4452_s28 = int_to_ptr.vmem [resolvable:$true] %s435_s28 }
 0x109   : > { %p5062_p12 = scmp.ne.s32.totalorder %s5061_s0, 0 }
 0x10b   : > { %3245 = dma.hbm_to_vmem [thread:$0]  (!%p5062_p12), %s410_s24, 16, %s413_s3, %s5063_s1  }
 0x10c   : > { %s5065_s5 = smov %s5064_s15  ;;  %s4450_s30 = scalar_lea.hbm %s5064_s15, %s3012_s11 }
 0x10d   : > { %s3742_s4 = scalar_lea.hbm %s4450_s30, 1024  ;;  %s3747_s3 = scalar_lea.hbm %s5065_s5, 4096 }
 0x10e   : > { %p3743_p10 = scmp.ne.s32.totalorder %s4450_s30, %s3742_s4  ;;  %p3748_p7 = scmp.lt.u32.totalorder %s4450_s30, %s5065_s5 }
 0x10f   : > { %p3749_p3 = scmp.lt.u32.totalorder %s3747_s3, %s3742_s4  ;;  %p3751_p6 = scmp.lt.u32.totalorder %s3742_s4, %s4450_s30 }
 0x110   : > { %p3745_p1 = pnand %p3743_p10, %p4260_p0 }
 0x111   : > { %p3750_p9 = por %p3749_p3, %p3748_p7 }
 0x112   : > { %p3746_p5 = pneg %p3745_p1 }
 0x113   : > { %p3752_p2 = por %p3751_p6, %p3750_p9 }
 0x115   : > { %p3753_p8 = pnand %p3752_p2, %p3746_p5 }
 0x117   : > { %3756 = shalt.err (!%p3753_p8)
}
 0x118   : > { %s3757_s23 = scalar_lea.vmem %s4452_s28, 1024  ;;  %s3976_s20 = smov [#allocation13]  }
 0x119   : > { %p3758_p4 = scmp.ne.s32.totalorder %s4452_s28, %s3757_s23  ;;  %s3762_s1 = sshll.u32 %s3976_s20, 4  ;;  %s3763_s1 = int_to_ptr.vmem [resolvable:$false] %s3762_s1 }
 0x11a   : > { %s3764_s16 = scalar_lea.vmem %s3763_s1, 2048  ;;  %p3765_p10 = scmp.lt.s32.totalorder %s4452_s28, %s3763_s1 }
 0x11b   : > { %p3760_p13 = pnand %p3758_p4, %p4260_p0  ;;  %p3766_p1 = scmp.lt.s32.totalorder %s3764_s16, %s3757_s23 }
 0x11d   : > { %p3761_p11 = pneg %p3760_p13  ;;  %p3767_p7 = por %p3766_p1, %p3765_p10 }
 0x11f   : > { %p3768_p3 = pnand %p3767_p7, %p3761_p11 }
 0x121   : > { %3771 = shalt.err (!%p3768_p3)
}
 0x122   : > { %s5066_s11 = smov 4   ;;  %s5067_s25 = smov 64  }
 0x123   : > { %3248 = dma.hbm_to_vmem [thread:$0]  (!%p5062_p12), %s4450_s30, 1024, %s4452_s28, %s420_s10, %s5067_s25, %s5067_s25, %s5066_s11  }
 0x124   : > { %s5068_s2 = sld [smem:[#allocation39_spill]] }
 0x12a   : > { %p5069_p0 = scmp.ne.s32.totalorder %s5068_s2, 0 }
 0x12b   : > { %s5070_s29 = sld [smem:[#allocation28_spill]] (!%p5069_p0)  ;;  %s5071_s15 = sld [smem:[#allocation34_spill]] (!%p5069_p0) }
 0x12c   : > { %447 = sbr.rel (%p5069_p0) target bundleno = 1352 (0x548), region = 48 }
 0x131   : > { %s449_s6 = sand.u32 (!%p5069_p0), 1, %s5070_s29   ;;  %p5072_p5 = scmp.ne.s32.totalorder (!%p5069_p0), %s5071_s15, 0 }
 0x132   : > { %s2853_s4 = sshll.u32 (!%p5069_p0), %s449_s6, 7  ;;  %s450_s27 = scalar_lea.sflag (!%p5069_p0), [#allocation5], %s449_s6 }
 0x133   : > { %s4484_s22 = scalar_lea.vmem [#allocation4], %s2853_s4 }
 0x134   : > { %3869 = dma.done.wait (%p5072_p5), %s450_s27, 2048  }
 0x135   : > { %3871 = vsyncadd (%p5072_p5), %s450_s27, 4294965248  ;;  %s5073_s0 = sld [smem:[#allocation33_spill]]  ;;  %s5074_s19 = sld [smem:[#allocation35_spill]] }
 0x136   : > { %s460_s30 = sand.u32 1, %s3926_s8  }
 0x137   : > { %s2854_s28 = sshll.u32 %s460_s30, 9 }
 0x138   : > { %s4492_s24 = scalar_lea.vmem [#allocation7], %s2854_s28 }
 0x13b   : > { %s458_s3 = sand.u32 1, %s5073_s0   ;;  %p5075_p12 = scmp.ne.s32.totalorder %s5074_s19, 0 }
 0x13c   : > { %s459_s10 = scalar_lea.sflag [#allocation8], %s458_s3 }
 0x13d   : > { %3873 = dma.done.wait (%p5075_p12), %s459_s10, 8192  }
 0x13e   : > { %3875 = vsyncadd (%p5075_p12), %s459_s10, 4294959104  ;;  %p5076_p9 = scmp.eq.s32.totalorder %s5073_s0, 0 }
 0x140   : > { %3877 = dma.done.wait (%p5076_p9), [#allocation8], 64   ;;  %p5077_p6 = pmov %p5076_p9 }
 0x141   : > { %s5078_s18 = sld [smem:[#allocation26_spill]]  ;;  %s5079_s23 = sld [smem:[#allocation36_spill]] }
 0x142   : > { %3879 = vsyncadd (%p5077_p6), [#allocation8], 4294967232  ;;  %s472_s16 = scalar_lea.sflag [#allocation11], %s458_s3 }
 0x147   : > { %s4503_s20 = sand.u32 1, %s5078_s18   ;;  %p5080_p2 = scmp.ne.s32.totalorder %s5079_s23, 0 }
 0x148   : > { %s2856_s1 = sshll.u32 %s4503_s20, 8 }
 0x149   : > { %s4506_s11 = scalar_lea.vmem [#allocation10], %s2856_s1 }
 0x14a   : > { %3881 = dma.done.wait (%p5080_p2), %s472_s16, 4112  }
 0x14b   : > { %3883 = vsyncadd (%p5080_p2), %s472_s16, 4294963184  ;;  %s2857_s25 = sshll.u32 %s4503_s20, 6  ;;  %s483_s2 = scalar_lea.vmem [#allocation12], %s4503_s20 }
 0x14c   : > { %s489_s29 = scalar_lea.sflag [#allocation14], %s458_s3  ;;  %s4514_s15 = scalar_lea.vmem [#allocation13], %s2857_s25 }
 0x14d   : > { %3885 = dma.done.wait (%p5080_p2), %s489_s29, 1024  }
 0x14e   : > { %3887 = vsyncadd (%p5080_p2), %s489_s29, 4294966272  ;;  %p5081_p8 = pmov %p5077_p6 }
 0x14f   : > { %p5082_p4 = pmov %p5077_p6 }
 0x150   : > { %3889 = dma.done.wait (%p5081_p8), [#allocation14], 16  }
 0x151   : > { %3891 = vsyncadd (%p5082_p4), [#allocation14], 4294967280  ;;  %s5083_s6 = sld [smem:[#allocation25_spill]]  ;;  %s5084_s3 = sld [smem:[#allocation29_spill]] }
 0x157   : > { %s543_s4 = sand.u32 1, %s5083_s6   ;;  %p2860_p13 = scmp.ge.s32.totalorder %s5084_s3, 2 }
 0x158   : > { %s2859_s27 = sshll.u32 %s543_s4, 7  ;;  %s5085_s30 = sld [smem:[#allocation29_spill]] (!%p2860_p13) }
 0x159   : > { %s4527_s19 = scalar_lea.vmem [#allocation16], %s2859_s27  ;;  %574 = sbr.rel (%p2860_p13) target bundleno = 724 (0x2d4), region = 80 }
 0x15e   : > { %p2861_p11 = scmp.ne.s32.totalorder (!%p2860_p13), %s5085_s30, 0 }
 0x160   : > { %578 = sbr.rel (%p2861_p11) target bundleno = 385 (0x181), region = 84  ;;  %v3977_v0 = vmov (!%p2861_p11), 0.0  }
 0x161   : > { %579 = vst [vmem:[#allocation2] sm:$0xff] (!%p2861_p11), %v3977_v0  ;;  %580 = vst [vmem:[#allocation2 + $0x8] sm:$0xff] (!%p2861_p11), %v3977_v0 }
 0x162   : > { %581 = vst [vmem:[#allocation2 + $0x10] sm:$0xff] (!%p2861_p11), %v3977_v0  ;;  %582 = vst [vmem:[#allocation2 + $0x18] sm:$0xff] (!%p2861_p11), %v3977_v0 }
 0x163   : > { %583 = vst [vmem:[#allocation2 + $0x20] sm:$0xff] (!%p2861_p11), %v3977_v0  ;;  %584 = vst [vmem:[#allocation2 + $0x28] sm:$0xff] (!%p2861_p11), %v3977_v0 }
 0x164   : > { %585 = vst [vmem:[#allocation2 + $0x30] sm:$0xff] (!%p2861_p11), %v3977_v0  ;;  %586 = vst [vmem:[#allocation2 + $0x38] sm:$0xff] (!%p2861_p11), %v3977_v0 }
 0x165   : > { %587 = vst [vmem:[#allocation2 + $0x40] sm:$0xff] (!%p2861_p11), %v3977_v0  ;;  %588 = vst [vmem:[#allocation2 + $0x48] sm:$0xff] (!%p2861_p11), %v3977_v0 }
 0x166   : > { %589 = vst [vmem:[#allocation2 + $0x50] sm:$0xff] (!%p2861_p11), %v3977_v0  ;;  %590 = vst [vmem:[#allocation2 + $0x58] sm:$0xff] (!%p2861_p11), %v3977_v0 }
 0x167   : > { %591 = vst [vmem:[#allocation2 + $0x60] sm:$0xff] %v3977_v0  ;;  %592 = vst [vmem:[#allocation2 + $0x68] sm:$0xff] %v3977_v0 }
 0x168   : > { %593 = vst [vmem:[#allocation2 + $0x70] sm:$0xff] %v3977_v0  ;;  %594 = vst [vmem:[#allocation2 + $0x78] sm:$0xff] %v3977_v0 }
 0x169   : > { %595 = vst [vmem:[#allocation2 + $0x80] sm:$0xff] %v3977_v0  ;;  %596 = vst [vmem:[#allocation2 + $0x88] sm:$0xff] %v3977_v0 }
 0x16a   : > { %597 = vst [vmem:[#allocation2 + $0x90] sm:$0xff] %v3977_v0  ;;  %598 = vst [vmem:[#allocation2 + $0x98] sm:$0xff] %v3977_v0 }
 0x16b   : > { %599 = vst [vmem:[#allocation2 + $0xa0] sm:$0xff] %v3977_v0  ;;  %600 = vst [vmem:[#allocation2 + $0xa8] sm:$0xff] %v3977_v0 }
 0x16c   : > { %601 = vst [vmem:[#allocation2 + $0xb0] sm:$0xff] %v3977_v0  ;;  %602 = vst [vmem:[#allocation2 + $0xb8] sm:$0xff] %v3977_v0 }
 0x16d   : > { %603 = vst [vmem:[#allocation2 + $0xc0] sm:$0xff] %v3977_v0  ;;  %604 = vst [vmem:[#allocation2 + $0xc8] sm:$0xff] %v3977_v0 }
 0x16e   : > { %605 = vst [vmem:[#allocation2 + $0xd0] sm:$0xff] %v3977_v0  ;;  %606 = vst [vmem:[#allocation2 + $0xd8] sm:$0xff] %v3977_v0 }
 0x16f   : > { %607 = vst [vmem:[#allocation2 + $0xe0] sm:$0xff] %v3977_v0  ;;  %608 = vst [vmem:[#allocation2 + $0xe8] sm:$0xff] %v3977_v0 }
 0x170   : > { %609 = vst [vmem:[#allocation2 + $0xf0] sm:$0xff] %v3977_v0  ;;  %610 = vst [vmem:[#allocation2 + $0xf8] sm:$0xff] %v3977_v0 }
 0x171   : > { %611 = vst [vmem:[#allocation2 + $0x100] sm:$0xff] %v3977_v0  ;;  %612 = vst [vmem:[#allocation2 + $0x108] sm:$0xff] %v3977_v0 }
 0x172   : > { %613 = vst [vmem:[#allocation2 + $0x110] sm:$0xff] %v3977_v0  ;;  %614 = vst [vmem:[#allocation2 + $0x118] sm:$0xff] %v3977_v0 }
 0x173   : > { %615 = vst [vmem:[#allocation2 + $0x120] sm:$0xff] %v3977_v0  ;;  %616 = vst [vmem:[#allocation2 + $0x128] sm:$0xff] %v3977_v0 }
 0x174   : > { %617 = vst [vmem:[#allocation2 + $0x130] sm:$0xff] %v3977_v0  ;;  %618 = vst [vmem:[#allocation2 + $0x138] sm:$0xff] %v3977_v0 }
 0x175   : > { %619 = vst [vmem:[#allocation2 + $0x140] sm:$0xff] %v3977_v0  ;;  %620 = vst [vmem:[#allocation2 + $0x148] sm:$0xff] %v3977_v0 }
 0x176   : > { %621 = vst [vmem:[#allocation2 + $0x150] sm:$0xff] %v3977_v0  ;;  %622 = vst [vmem:[#allocation2 + $0x158] sm:$0xff] %v3977_v0 }
 0x177   : > { %623 = vst [vmem:[#allocation2 + $0x160] sm:$0xff] %v3977_v0  ;;  %624 = vst [vmem:[#allocation2 + $0x168] sm:$0xff] %v3977_v0 }
 0x178   : > { %625 = vst [vmem:[#allocation2 + $0x170] sm:$0xff] %v3977_v0  ;;  %626 = vst [vmem:[#allocation2 + $0x178] sm:$0xff] %v3977_v0 }
 0x179   : > { %627 = vst [vmem:[#allocation2 + $0x180] sm:$0xff] %v3977_v0  ;;  %628 = vst [vmem:[#allocation2 + $0x188] sm:$0xff] %v3977_v0 }
 0x17a   : > { %629 = vst [vmem:[#allocation2 + $0x190] sm:$0xff] %v3977_v0  ;;  %630 = vst [vmem:[#allocation2 + $0x198] sm:$0xff] %v3977_v0 }
 0x17b   : > { %631 = vst [vmem:[#allocation2 + $0x1a0] sm:$0xff] %v3977_v0  ;;  %632 = vst [vmem:[#allocation2 + $0x1a8] sm:$0xff] %v3977_v0 }
 0x17c   : > { %633 = vst [vmem:[#allocation2 + $0x1b0] sm:$0xff] %v3977_v0  ;;  %634 = vst [vmem:[#allocation2 + $0x1b8] sm:$0xff] %v3977_v0 }
 0x17d   : > { %635 = vst [vmem:[#allocation2 + $0x1c0] sm:$0xff] %v3977_v0  ;;  %636 = vst [vmem:[#allocation2 + $0x1c8] sm:$0xff] %v3977_v0 }
 0x17e   : > { %637 = vst [vmem:[#allocation2 + $0x1d0] sm:$0xff] %v3977_v0  ;;  %638 = vst [vmem:[#allocation2 + $0x1d8] sm:$0xff] %v3977_v0 }
 0x17f   : > { %639 = vst [vmem:[#allocation2 + $0x1e0] sm:$0xff] %v3977_v0  ;;  %640 = vst [vmem:[#allocation2 + $0x1e8] sm:$0xff] %v3977_v0 }
 0x180   : > { %641 = vst [vmem:[#allocation2 + $0x1f0] sm:$0xff] %v3977_v0  ;;  %642 = vst [vmem:[#allocation2 + $0x1f8] sm:$0xff] %v3977_v0 }
 0x181 PF: > { %v3406_v1 = vld [vmem:[%s4492_s24 + $0x4] ss:$16 sps:$4 sm:$0xff]   ;;  %v3408_v2 = vld [vmem:[%s4492_s24 + $0xc] ss:$16 sps:$4 sm:$0xff]   ;;  %v3410_v3 = vld [vmem:[%s4492_s24] ss:$16 sps:$4 sm:$0xff]  }
 0x182   : > { %1187 = vmatprep.subr.bf16.mxu0 %v3406_v1  ;;  %v3411_v4 = vld [vmem:[%s4492_s24 + $0x8] ss:$16 sps:$4 sm:$0xff]   ;;  %1300 = vmatprep.subr.bf16.mxu1 %v3408_v2  ;;  %v3412_v5 = vld [vmem:[%s4492_s24 + $0x24] ss:$16 sps:$4 sm:$0xff]   ;;  %v3414_v6 = vld [vmem:[%s4492_s24 + $0x2c] ss:$16 sps:$4 sm:$0xff]  }
 0x183   : > { %1188 = vmatpush1.bf16.msra.mxu0 %v3410_v3  ;;  %1301 = vmatpush1.bf16.msra.mxu1 %v3411_v4  ;;  %v3416_v7 = vld [vmem:[%s4492_s24 + $0x20] ss:$16 sps:$4 sm:$0xff]   ;;  %v3417_v8 = vld [vmem:[%s4492_s24 + $0x28] ss:$16 sps:$4 sm:$0xff]   ;;  %v3418_v9 = vld [vmem:[%s4492_s24 + $0x44] ss:$16 sps:$4 sm:$0xff]  }
 0x184   : > { %1189 = vmatprep.subr.bf16.mxu0 %v3412_v5  ;;  %1302 = vmatprep.subr.bf16.mxu1 %v3414_v6  ;;  %v3420_v10 = vld [vmem:[%s4492_s24 + $0x4c] ss:$16 sps:$4 sm:$0xff]   ;;  %v3422_v11 = vld [vmem:[%s4492_s24 + $0x40] ss:$16 sps:$4 sm:$0xff]   ;;  %v3423_v12 = vld [vmem:[%s4492_s24 + $0x48] ss:$16 sps:$4 sm:$0xff]  }
 0x185   : > { %v3424_v13 = vld [vmem:[%s4492_s24 + $0x64] ss:$16 sps:$4 sm:$0xff]   ;;  %v3426_v14 = vld [vmem:[%s4492_s24 + $0x6c] ss:$16 sps:$4 sm:$0xff]   ;;  %v3428_v15 = vld [vmem:[%s4492_s24 + $0x60] ss:$16 sps:$4 sm:$0xff]  }
 0x186   : > { %v3429_v16 = vld [vmem:[%s4492_s24 + $0x68] ss:$16 sps:$4 sm:$0xff]   ;;  %v3430_v17 = vld [vmem:[%s4492_s24 + $0x84] ss:$16 sps:$4 sm:$0xff]   ;;  %v3432_v18 = vld [vmem:[%s4492_s24 + $0x8c] ss:$16 sps:$4 sm:$0xff]  }
 0x187   : > { %1190 = vmatpush1.bf16.msra.mxu0 %v3416_v7  ;;  %1303 = vmatpush1.bf16.msra.mxu1 %v3417_v8  ;;  %v3434_v19 = vld [vmem:[%s4492_s24 + $0x80] ss:$16 sps:$4 sm:$0xff]   ;;  %v3435_v20 = vld [vmem:[%s4492_s24 + $0x88] ss:$16 sps:$4 sm:$0xff]   ;;  %v3436_v21 = vld [vmem:[%s4492_s24 + $0xa4] ss:$16 sps:$4 sm:$0xff]  }
 0x188   : > { %1191 = vmatprep.subr.bf16.mxu0 %v3418_v9  ;;  %1304 = vmatprep.subr.bf16.mxu1 %v3420_v10  ;;  %v3438_v22 = vld [vmem:[%s4492_s24 + $0xac] ss:$16 sps:$4 sm:$0xff]   ;;  %v3440_v23 = vld [vmem:[%s4492_s24 + $0xa0] ss:$16 sps:$4 sm:$0xff]   ;;  %v3441_v24 = vld [vmem:[%s4492_s24 + $0xa8] ss:$16 sps:$4 sm:$0xff]  }
 0x189   : > { %v3442_v25 = vld [vmem:[%s4492_s24 + $0xc4] ss:$16 sps:$4 sm:$0xff]   ;;  %v3444_v26 = vld [vmem:[%s4492_s24 + $0xcc] ss:$16 sps:$4 sm:$0xff]   ;;  %v3446_v27 = vld [vmem:[%s4492_s24 + $0xc0] ss:$16 sps:$4 sm:$0xff]  }
 0x18a   : > { %v3447_v28 = vld [vmem:[%s4492_s24 + $0xc8] ss:$16 sps:$4 sm:$0xff]   ;;  %v3448_v29 = vld [vmem:[%s4492_s24 + $0xe4] ss:$16 sps:$4 sm:$0xff]   ;;  %v3450_v30 = vld [vmem:[%s4492_s24 + $0xec] ss:$16 sps:$4 sm:$0xff]  }
 0x18b   : > { %1192 = vmatpush1.bf16.msra.mxu0 %v3422_v11  ;;  %1305 = vmatpush1.bf16.msra.mxu1 %v3423_v12  ;;  %v3452_v31 = vld [vmem:[%s4492_s24 + $0xe0] ss:$16 sps:$4 sm:$0xff]   ;;  %v3453_v32 = vld [vmem:[%s4492_s24 + $0xe8] ss:$16 sps:$4 sm:$0xff]   ;;  %v3454_v33 = vld [vmem:[%s4492_s24 + $0x104] ss:$16 sps:$4 sm:$0xff]  }
 0x18c   : > { %1193 = vmatprep.subr.bf16.mxu0 %v3424_v13  ;;  %1306 = vmatprep.subr.bf16.mxu1 %v3426_v14  ;;  %v3456_v34 = vld [vmem:[%s4492_s24 + $0x10c] ss:$16 sps:$4 sm:$0xff]   ;;  %v3458_v35 = vld [vmem:[%s4492_s24 + $0x100] ss:$16 sps:$4 sm:$0xff]   ;;  %v3459_v36 = vld [vmem:[%s4492_s24 + $0x108] ss:$16 sps:$4 sm:$0xff]  }
 0x18d   : > { %v3460_v37 = vld [vmem:[%s4492_s24 + $0x124] ss:$16 sps:$4 sm:$0xff]   ;;  %v3462_v38 = vld [vmem:[%s4492_s24 + $0x12c] ss:$16 sps:$4 sm:$0xff]   ;;  %v3464_v39 = vld [vmem:[%s4492_s24 + $0x120] ss:$16 sps:$4 sm:$0xff]  }
 0x18e   : > { %v3465_v40 = vld [vmem:[%s4492_s24 + $0x128] ss:$16 sps:$4 sm:$0xff]   ;;  %v3466_v41 = vld [vmem:[%s4492_s24 + $0x144] ss:$16 sps:$4 sm:$0xff]   ;;  %v3468_v42 = vld [vmem:[%s4492_s24 + $0x14c] ss:$16 sps:$4 sm:$0xff]  }
 0x18f   : > { %1194 = vmatpush1.bf16.msra.mxu0 %v3428_v15  ;;  %1307 = vmatpush1.bf16.msra.mxu1 %v3429_v16  ;;  %v3470_v43 = vld [vmem:[%s4492_s24 + $0x140] ss:$16 sps:$4 sm:$0xff]   ;;  %v3471_v44 = vld [vmem:[%s4492_s24 + $0x148] ss:$16 sps:$4 sm:$0xff]   ;;  %v3472_v45 = vld [vmem:[%s4492_s24 + $0x164] ss:$16 sps:$4 sm:$0xff]  }
 0x190   : > { %1195 = vmatprep.subr.bf16.mxu0 %v3430_v17  ;;  %1308 = vmatprep.subr.bf16.mxu1 %v3432_v18  ;;  %v3474_v46 = vld [vmem:[%s4492_s24 + $0x16c] ss:$16 sps:$4 sm:$0xff]   ;;  %v3476_v47 = vld [vmem:[%s4492_s24 + $0x160] ss:$16 sps:$4 sm:$0xff]   ;;  %v3477_v48 = vld [vmem:[%s4492_s24 + $0x168] ss:$16 sps:$4 sm:$0xff]  }
 0x191   : > { %v3504_v49 = vld [vmem:[%s4484_s22 + $0x4] ss:$8 sps:$4 sm:$0xff]   ;;  %v3482_v52 = vld [vmem:[%s4492_s24 + $0x180] ss:$16 sps:$4 sm:$0xff]   ;;  %v3483_v53 = vld [vmem:[%s4492_s24 + $0x188] ss:$16 sps:$4 sm:$0xff]  }
 0x192   : > { %v3478_v50 = vld [vmem:[%s4492_s24 + $0x184] ss:$16 sps:$4 sm:$0xff]   ;;  %v3480_v51 = vld [vmem:[%s4492_s24 + $0x18c] ss:$16 sps:$4 sm:$0xff]   ;;  %1219 = vmatprep.mubr.bf16.mxu0 %v3504_v49  ;;  %1332 = vmatprep.mubr.bf16.mxu1 %v3504_v49  ;;  %v3488_v56 = vld [vmem:[%s4492_s24 + $0x1a0] ss:$16 sps:$4 sm:$0xff]  }
 0x193   : > { %1196 = vmatpush1.bf16.msra.mxu0 %v3434_v19  ;;  %1309 = vmatpush1.bf16.msra.mxu1 %v3435_v20  ;;  %v3484_v54 = vld [vmem:[%s4492_s24 + $0x1a4] ss:$16 sps:$4 sm:$0xff]   ;;  %v3486_v55 = vld [vmem:[%s4492_s24 + $0x1ac] ss:$16 sps:$4 sm:$0xff]   ;;  %v3489_v57 = vld [vmem:[%s4492_s24 + $0x1a8] ss:$16 sps:$4 sm:$0xff]  }
 0x194   : > { %1197 = vmatprep.subr.bf16.mxu0 %v3436_v21  ;;  %1310 = vmatprep.subr.bf16.mxu1 %v3438_v22  ;;  %v3490_v58 = vld [vmem:[%s4492_s24 + $0x1c4] ss:$16 sps:$4 sm:$0xff]   ;;  %v3492_v59 = vld [vmem:[%s4492_s24 + $0x1cc] ss:$16 sps:$4 sm:$0xff]   ;;  %v3494_v60 = vld [vmem:[%s4492_s24 + $0x1c0] ss:$16 sps:$4 sm:$0xff]  }
 0x195   : > { %v3495_v61 = vld [vmem:[%s4492_s24 + $0x1c8] ss:$16 sps:$4 sm:$0xff]   ;;  %v3496_v62 = vld [vmem:[%s4492_s24 + $0x1e4] ss:$16 sps:$4 sm:$0xff]   ;;  %v3498_v63 = vld [vmem:[%s4492_s24 + $0x1ec] ss:$16 sps:$4 sm:$0xff]  }
 0x196   : > { %v3500_v0 = vld [vmem:[%s4492_s24 + $0x1e0] ss:$16 sps:$4 sm:$0xff]   ;;  %v3501_v1 = vld [vmem:[%s4492_s24 + $0x1e8] ss:$16 sps:$4 sm:$0xff]   ;;  %v3505_v3 = vld [vmem:[%s4484_s22 + $0x14] ss:$8 sps:$4 sm:$0xff]  }
 0x197   : > { %1198 = vmatpush1.bf16.msra.mxu0 %v3440_v23  ;;  %1311 = vmatpush1.bf16.msra.mxu1 %v3441_v24  ;;  %v3502_v2 = vld [vmem:[%s4484_s22] ss:$8 sps:$4 sm:$0xff]   ;;  %v3507_v4 = vld [vmem:[%s4484_s22 + $0x10] ss:$8 sps:$4 sm:$0xff]   ;;  %v3508_v5 = vld [vmem:[%s4484_s22 + $0x24] ss:$8 sps:$4 sm:$0xff]  }
 0x198   : > { %1199 = vmatprep.subr.bf16.mxu0 %v3442_v25  ;;  %1312 = vmatprep.subr.bf16.mxu1 %v3444_v26  ;;  %v3510_v6 = vld [vmem:[%s4484_s22 + $0x20] ss:$8 sps:$4 sm:$0xff]   ;;  %v3511_v7 = vld [vmem:[%s4484_s22 + $0x34] ss:$8 sps:$4 sm:$0xff]   ;;  %v3513_v8 = vld [vmem:[%s4484_s22 + $0x30] ss:$8 sps:$4 sm:$0xff]  }
 0x199   : > { %v3514_v9 = vld [vmem:[%s4484_s22 + $0x44] ss:$8 sps:$4 sm:$0xff]   ;;  %v3516_v10 = vld [vmem:[%s4484_s22 + $0x40] ss:$8 sps:$4 sm:$0xff]   ;;  %v3517_v11 = vld [vmem:[%s4484_s22 + $0x54] ss:$8 sps:$4 sm:$0xff]  }
 0x19a   : > { %v3519_v12 = vld [vmem:[%s4484_s22 + $0x50] ss:$8 sps:$4 sm:$0xff]   ;;  %v3520_v13 = vld [vmem:[%s4484_s22 + $0x64] ss:$8 sps:$4 sm:$0xff]   ;;  %v3522_v14 = vld [vmem:[%s4484_s22 + $0x60] ss:$8 sps:$4 sm:$0xff]  }
 0x19b   : > { %1200 = vmatpush1.bf16.msra.mxu0 %v3446_v27  ;;  %1313 = vmatpush1.bf16.msra.mxu1 %v3447_v28  ;;  %v3523_v15 = vld [vmem:[%s4484_s22 + $0x74] ss:$8 sps:$4 sm:$0xff]   ;;  %v3525_v16 = vld [vmem:[%s4484_s22 + $0x70] ss:$8 sps:$4 sm:$0xff]   ;;  %v643_v17 = vld [vmem:[#allocation2] sm:$0xff] }
 0x19c   : > { %1201 = vmatprep.subr.bf16.mxu0 %v3448_v29  ;;  %1314 = vmatprep.subr.bf16.mxu1 %v3450_v30  ;;  %v645_v18 = vld [vmem:[#allocation2 + $0x10] sm:$0xff]  ;;  %v644_v19 = vld [vmem:[#allocation2 + $0x8] sm:$0xff]  ;;  %v646_v20 = vld [vmem:[#allocation2 + $0x18] sm:$0xff] }
 0x19d   : > { %v647_v23 = vld [vmem:[#allocation2 + $0x20] sm:$0xff]  ;;  %v649_v24 = vld [vmem:[#allocation2 + $0x30] sm:$0xff]  ;;  %v648_v29 = vld [vmem:[#allocation2 + $0x28] sm:$0xff] }
 0x19e   : > { %v650_v30 = vld [vmem:[#allocation2 + $0x38] sm:$0xff] }
 0x19f   : > { %1202 = vmatpush1.bf16.msra.mxu0 %v3452_v31  ;;  %1315 = vmatpush1.bf16.msra.mxu1 %v3453_v32 }
 0x1a0   : > { %1203 = vmatprep.subr.bf16.mxu0 %v3454_v33  ;;  %1316 = vmatprep.subr.bf16.mxu1 %v3456_v34 }
 0x1a3   : > { %1204 = vmatpush1.bf16.msra.mxu0 %v3458_v35  ;;  %1317 = vmatpush1.bf16.msra.mxu1 %v3459_v36 }
 0x1a4   : > { %1205 = vmatprep.subr.bf16.mxu0 %v3460_v37  ;;  %1318 = vmatprep.subr.bf16.mxu1 %v3462_v38 }
 0x1a7   : > { %1206 = vmatpush1.bf16.msra.mxu0 %v3464_v39  ;;  %1319 = vmatpush1.bf16.msra.mxu1 %v3465_v40 }
 0x1a8   : > { %1207 = vmatprep.subr.bf16.mxu0 %v3466_v41  ;;  %1320 = vmatprep.subr.bf16.mxu1 %v3468_v42  ;;  %v651_v41 = vld [vmem:[#allocation2 + $0x40] sm:$0xff]  ;;  %v653_v42 = vld [vmem:[#allocation2 + $0x50] sm:$0xff] }
 0x1ab   : > { %1208 = vmatpush1.bf16.msra.mxu0 %v3470_v43  ;;  %1321 = vmatpush1.bf16.msra.mxu1 %v3471_v44  ;;  %v652_v43 = vld [vmem:[#allocation2 + $0x48] sm:$0xff]  ;;  %v654_v44 = vld [vmem:[#allocation2 + $0x58] sm:$0xff] }
 0x1ac   : > { %1209 = vmatprep.subr.bf16.mxu0 %v3472_v45  ;;  %1322 = vmatprep.subr.bf16.mxu1 %v3474_v46 }
 0x1af   : > { %1210 = vmatpush1.bf16.msra.mxu0 %v3476_v47  ;;  %1323 = vmatpush1.bf16.msra.mxu1 %v3477_v48  ;;  %v655_v47 = vld [vmem:[#allocation2 + $0x60] sm:$0xff]  ;;  %v657_v48 = vld [vmem:[#allocation2 + $0x70] sm:$0xff] }
 0x1b0   : > { %1211 = vmatprep.subr.bf16.mxu0 %v3478_v50  ;;  %1324 = vmatprep.subr.bf16.mxu1 %v3480_v51 }
 0x1b3   : > { %1212 = vmatpush1.bf16.msra.mxu0 %v3482_v52  ;;  %1325 = vmatpush1.bf16.msra.mxu1 %v3483_v53  ;;  %v656_v53 = vld [vmem:[#allocation2 + $0x68] sm:$0xff] }
 0x1b4   : > { %1213 = vmatprep.subr.bf16.mxu0 %v3484_v54  ;;  %1326 = vmatprep.subr.bf16.mxu1 %v3486_v55  ;;  %v658_v54 = vld [vmem:[#allocation2 + $0x78] sm:$0xff] }
 0x1b7   : > { %1214 = vmatpush1.bf16.msra.mxu0 %v3488_v56  ;;  %1327 = vmatpush1.bf16.msra.mxu1 %v3489_v57 }
 0x1b8   : > { %1215 = vmatprep.subr.bf16.mxu0 %v3490_v58  ;;  %1328 = vmatprep.subr.bf16.mxu1 %v3492_v59 }
 0x1bb   : > { %1216 = vmatpush1.bf16.msra.mxu0 %v3494_v60  ;;  %1329 = vmatpush1.bf16.msra.mxu1 %v3495_v61 }
 0x1bc   : > { %1217 = vmatprep.subr.bf16.mxu0 %v3496_v62  ;;  %1330 = vmatprep.subr.bf16.mxu1 %v3498_v63 }
 0x1bf   : > { %1218 = vmatpush1.bf16.msra.mxu0 %v3500_v0  ;;  %1331 = vmatpush1.bf16.msra.mxu1 %v3501_v1  ;;  %v659_v1 = vld [vmem:[#allocation2 + $0x80] sm:$0xff] }
 0x1c2   : > { %1220 = vmatmul.mubr.bf16.vlgmr.msra.gmra.mrb[0].mxu0 %v3502_v2  ;;  %1333 = vmatmul.mubr.bf16.vlgmr.msra.gmra.mrb[0].mxu1 %v3502_v2  ;;  %v661_v2 = vld [vmem:[#allocation2 + $0x90] sm:$0xff] }
 0x1c3   : > { %1229 = vmatprep.mubr.bf16.mxu0 %v3505_v3  ;;  %1342 = vmatprep.mubr.bf16.mxu1 %v3505_v3  ;;  %v660_v3 = vld [vmem:[#allocation2 + $0x88] sm:$0xff] }
 0x1ca   : > { %1230 = vmatmul.mubr.bf16.gmra.mrb[4].mxu0 %v3507_v4  ;;  %1343 = vmatmul.mubr.bf16.gmra.mrb[4].mxu1 %v3507_v4  ;;  %v662_v4 = vld [vmem:[#allocation2 + $0x98] sm:$0xff] }
 0x1cb   : > { %1239 = vmatprep.mubr.bf16.mxu0 %v3508_v5  ;;  %1352 = vmatprep.mubr.bf16.mxu1 %v3508_v5 }
 0x1d2   : > { %1240 = vmatmul.mubr.bf16.gmra.mrb[8].mxu0 %v3510_v6  ;;  %1353 = vmatmul.mubr.bf16.gmra.mrb[8].mxu1 %v3510_v6 }
 0x1d3   : > { %1249 = vmatprep.mubr.bf16.mxu0 %v3511_v7  ;;  %1362 = vmatprep.mubr.bf16.mxu1 %v3511_v7  ;;  %v663_v7 = vld [vmem:[#allocation2 + $0xa0] sm:$0xff] }
 0x1da   : > { %1250 = vmatmul.mubr.bf16.gmra.mrb[12].mxu0 %v3513_v8  ;;  %1363 = vmatmul.mubr.bf16.gmra.mrb[12].mxu1 %v3513_v8  ;;  %v665_v8 = vld [vmem:[#allocation2 + $0xb0] sm:$0xff] }
 0x1db   : > { %1259 = vmatprep.mubr.bf16.mxu0 %v3514_v9  ;;  %1372 = vmatprep.mubr.bf16.mxu1 %v3514_v9 }
 0x1e2   : > { %1260 = vmatmul.mubr.bf16.gmra.mrb[16].mxu0 %v3516_v10  ;;  %1373 = vmatmul.mubr.bf16.gmra.mrb[16].mxu1 %v3516_v10 }
 0x1e3   : > { %1269 = vmatprep.mubr.bf16.mxu0 %v3517_v11  ;;  %1382 = vmatprep.mubr.bf16.mxu1 %v3517_v11 }
 0x1ea   : > { %1270 = vmatmul.mubr.bf16.gmra.mrb[20].mxu0 %v3519_v12  ;;  %1383 = vmatmul.mubr.bf16.gmra.mrb[20].mxu1 %v3519_v12 }
 0x1eb   : > { %1279 = vmatprep.mubr.bf16.mxu0 %v3520_v13  ;;  %1392 = vmatprep.mubr.bf16.mxu1 %v3520_v13  ;;  %v664_v13 = vld [vmem:[#allocation2 + $0xa8] sm:$0xff] }
 0x1f2   : > { %1280 = vmatmul.mubr.bf16.gmra.mrb[24].mxu0 %v3522_v14  ;;  %1393 = vmatmul.mubr.bf16.gmra.mrb[24].mxu1 %v3522_v14  ;;  %v666_v14 = vld [vmem:[#allocation2 + $0xb8] sm:$0xff] }
 0x1f3   : > { %1289 = vmatprep.mubr.bf16.mxu0 %v3523_v15  ;;  %1402 = vmatprep.mubr.bf16.mxu1 %v3523_v15 }
 0x1fa   : > { %1290 = vmatmul.mubr.bf16.gmra.mrb[28].mxu0 %v3525_v16  ;;  %1403 = vmatmul.mubr.bf16.gmra.mrb[28].mxu1 %v3525_v16 }
 0x295   : > { %v1221_v21 = vpop.f32.mrb[0].mxu0  ;;  %v1334_v22 = vpop.f32.mrb[0].mxu1 }
 0x296   : > { %v1413_v25 = vadd.f32 %v1221_v21, %v643_v17  ;;  %v1415_v26 = vadd.f32 %v1334_v22, %v645_v18  ;;  %v1223_v27 = vpop.f32.mrb[1].mxu0  ;;  %v1336_v28 = vpop.f32.mrb[1].mxu1 }
 0x297   : > { %v1414_v31 = vadd.f32 %v1223_v27, %v644_v19  ;;  %v1416_v32 = vadd.f32 %v1336_v28, %v646_v20  ;;  %v1225_v33 = vpop.f32.mrb[2].mxu0  ;;  %v1338_v34 = vpop.f32.mrb[2].mxu1  ;;  %v668_v27 = vld [vmem:[#allocation2 + $0xc8] sm:$0xff]  ;;  %v670_v28 = vld [vmem:[#allocation2 + $0xd8] sm:$0xff] }
 0x298   : > { %1477 = vst [vmem:[#allocation2] sm:$0xff] %v1413_v25  ;;  %1479 = vst [vmem:[#allocation2 + $0x10] sm:$0xff] %v1415_v26  ;;  %v1417_v35 = vadd.f32 %v1225_v33, %v647_v23  ;;  %v1419_v36 = vadd.f32 %v1338_v34, %v649_v24  ;;  %v1227_v37 = vpop.f32.mrb[3].mxu0  ;;  %v1340_v38 = vpop.f32.mrb[3].mxu1  ;;  %v667_v25 = vld [vmem:[#allocation2 + $0xc0] sm:$0xff]  ;;  %v669_v26 = vld [vmem:[#allocation2 + $0xd0] sm:$0xff] }
 0x299   : > { %1478 = vst [vmem:[#allocation2 + $0x8] sm:$0xff] %v1414_v31  ;;  %1480 = vst [vmem:[#allocation2 + $0x18] sm:$0xff] %v1416_v32  ;;  %v1418_v39 = vadd.f32 %v1227_v37, %v648_v29  ;;  %v1420_v40 = vadd.f32 %v1340_v38, %v650_v30  ;;  %v671_v31 = vld [vmem:[#allocation2 + $0xe0] sm:$0xff]  ;;  %v673_v32 = vld [vmem:[#allocation2 + $0xf0] sm:$0xff] }
 0x29a   : > { %1481 = vst [vmem:[#allocation2 + $0x20] sm:$0xff] %v1417_v35  ;;  %1483 = vst [vmem:[#allocation2 + $0x30] sm:$0xff] %v1419_v36  ;;  %v672_v37 = vld [vmem:[#allocation2 + $0xe8] sm:$0xff]  ;;  %v674_v38 = vld [vmem:[#allocation2 + $0xf8] sm:$0xff] }
 0x29b   : > { %1482 = vst [vmem:[#allocation2 + $0x28] sm:$0xff] %v1418_v39  ;;  %1484 = vst [vmem:[#allocation2 + $0x38] sm:$0xff] %v1420_v40 }
 0x29d   : > { %v1231_v45 = vpop.f32.mrb[4].mxu0  ;;  %v1344_v46 = vpop.f32.mrb[4].mxu1 }
 0x29e   : > { %v1421_v49 = vadd.f32 %v1231_v45, %v651_v41  ;;  %v1423_v50 = vadd.f32 %v1344_v46, %v653_v42  ;;  %v1233_v51 = vpop.f32.mrb[5].mxu0  ;;  %v1346_v52 = vpop.f32.mrb[5].mxu1 }
 0x29f   : > { %v1422_v55 = vadd.f32 %v1233_v51, %v652_v43  ;;  %v1424_v56 = vadd.f32 %v1346_v52, %v654_v44  ;;  %v1235_v57 = vpop.f32.mrb[6].mxu0  ;;  %v1348_v58 = vpop.f32.mrb[6].mxu1  ;;  %v676_v51 = vld [vmem:[#allocation2 + $0x108] sm:$0xff]  ;;  %v678_v52 = vld [vmem:[#allocation2 + $0x118] sm:$0xff] }
 0x2a0   : > { %1485 = vst [vmem:[#allocation2 + $0x40] sm:$0xff] %v1421_v49  ;;  %1487 = vst [vmem:[#allocation2 + $0x50] sm:$0xff] %v1423_v50  ;;  %v1425_v59 = vadd.f32 %v1235_v57, %v655_v47  ;;  %v1427_v60 = vadd.f32 %v1348_v58, %v657_v48  ;;  %v1237_v61 = vpop.f32.mrb[7].mxu0  ;;  %v1350_v62 = vpop.f32.mrb[7].mxu1  ;;  %v675_v49 = vld [vmem:[#allocation2 + $0x100] sm:$0xff]  ;;  %v677_v50 = vld [vmem:[#allocation2 + $0x110] sm:$0xff] }
 0x2a1   : > { %1486 = vst [vmem:[#allocation2 + $0x48] sm:$0xff] %v1422_v55  ;;  %1488 = vst [vmem:[#allocation2 + $0x58] sm:$0xff] %v1424_v56  ;;  %v1426_v63 = vadd.f32 %v1237_v61, %v656_v53  ;;  %v1428_v0 = vadd.f32 %v1350_v62, %v658_v54  ;;  %v679_v55 = vld [vmem:[#allocation2 + $0x120] sm:$0xff]  ;;  %v681_v56 = vld [vmem:[#allocation2 + $0x130] sm:$0xff] }
 0x2a2   : > { %1489 = vst [vmem:[#allocation2 + $0x60] sm:$0xff] %v1425_v59  ;;  %1491 = vst [vmem:[#allocation2 + $0x70] sm:$0xff] %v1427_v60  ;;  %v680_v61 = vld [vmem:[#allocation2 + $0x128] sm:$0xff]  ;;  %v682_v62 = vld [vmem:[#allocation2 + $0x138] sm:$0xff] }
 0x2a3   : > { %1490 = vst [vmem:[#allocation2 + $0x68] sm:$0xff] %v1426_v63  ;;  %1492 = vst [vmem:[#allocation2 + $0x78] sm:$0xff] %v1428_v0 }
 0x2a5   : > { %v1241_v5 = vpop.f32.mrb[8].mxu0  ;;  %v1354_v6 = vpop.f32.mrb[8].mxu1 }
 0x2a6   : > { %v1429_v9 = vadd.f32 %v1241_v5, %v659_v1  ;;  %v1431_v10 = vadd.f32 %v1354_v6, %v661_v2  ;;  %v1243_v11 = vpop.f32.mrb[9].mxu0  ;;  %v1356_v12 = vpop.f32.mrb[9].mxu1 }
 0x2a7   : > { %v1430_v15 = vadd.f32 %v1243_v11, %v660_v3  ;;  %v1432_v16 = vadd.f32 %v1356_v12, %v662_v4  ;;  %v1245_v17 = vpop.f32.mrb[10].mxu0  ;;  %v1358_v18 = vpop.f32.mrb[10].mxu1  ;;  %v684_v11 = vld [vmem:[#allocation2 + $0x148] sm:$0xff]  ;;  %v686_v12 = vld [vmem:[#allocation2 + $0x158] sm:$0xff] }
 0x2a8   : > { %1493 = vst [vmem:[#allocation2 + $0x80] sm:$0xff] %v1429_v9  ;;  %1495 = vst [vmem:[#allocation2 + $0x90] sm:$0xff] %v1431_v10  ;;  %v1433_v19 = vadd.f32 %v1245_v17, %v663_v7  ;;  %v1435_v20 = vadd.f32 %v1358_v18, %v665_v8  ;;  %v1247_v21 = vpop.f32.mrb[11].mxu0  ;;  %v1360_v22 = vpop.f32.mrb[11].mxu1  ;;  %v683_v9 = vld [vmem:[#allocation2 + $0x140] sm:$0xff]  ;;  %v685_v10 = vld [vmem:[#allocation2 + $0x150] sm:$0xff] }
 0x2a9   : > { %1494 = vst [vmem:[#allocation2 + $0x88] sm:$0xff] %v1430_v15  ;;  %1496 = vst [vmem:[#allocation2 + $0x98] sm:$0xff] %v1432_v16  ;;  %v1434_v23 = vadd.f32 %v1247_v21, %v664_v13  ;;  %v1436_v24 = vadd.f32 %v1360_v22, %v666_v14  ;;  %v687_v15 = vld [vmem:[#allocation2 + $0x160] sm:$0xff]  ;;  %v689_v16 = vld [vmem:[#allocation2 + $0x170] sm:$0xff] }
 0x2aa   : > { %1497 = vst [vmem:[#allocation2 + $0xa0] sm:$0xff] %v1433_v19  ;;  %1499 = vst [vmem:[#allocation2 + $0xb0] sm:$0xff] %v1435_v20  ;;  %v688_v21 = vld [vmem:[#allocation2 + $0x168] sm:$0xff]  ;;  %v690_v22 = vld [vmem:[#allocation2 + $0x178] sm:$0xff] }
 0x2ab   : > { %1498 = vst [vmem:[#allocation2 + $0xa8] sm:$0xff] %v1434_v23  ;;  %1500 = vst [vmem:[#allocation2 + $0xb8] sm:$0xff] %v1436_v24 }
 0x2ad   : > { %v1251_v29 = vpop.f32.mrb[12].mxu0  ;;  %v1364_v30 = vpop.f32.mrb[12].mxu1 }
 0x2ae   : > { %v1437_v33 = vadd.f32 %v1251_v29, %v667_v25  ;;  %v1439_v34 = vadd.f32 %v1364_v30, %v669_v26  ;;  %v1253_v35 = vpop.f32.mrb[13].mxu0  ;;  %v1366_v36 = vpop.f32.mrb[13].mxu1 }
 0x2af   : > { %v1438_v39 = vadd.f32 %v1253_v35, %v668_v27  ;;  %v1440_v40 = vadd.f32 %v1366_v36, %v670_v28  ;;  %v1255_v41 = vpop.f32.mrb[14].mxu0  ;;  %v1368_v42 = vpop.f32.mrb[14].mxu1  ;;  %v692_v35 = vld [vmem:[#allocation2 + $0x188] sm:$0xff]  ;;  %v694_v36 = vld [vmem:[#allocation2 + $0x198] sm:$0xff] }
 0x2b0   : > { %1501 = vst [vmem:[#allocation2 + $0xc0] sm:$0xff] %v1437_v33  ;;  %1503 = vst [vmem:[#allocation2 + $0xd0] sm:$0xff] %v1439_v34  ;;  %v1441_v43 = vadd.f32 %v1255_v41, %v671_v31  ;;  %v1443_v44 = vadd.f32 %v1368_v42, %v673_v32  ;;  %v1257_v45 = vpop.f32.mrb[15].mxu0  ;;  %v1370_v46 = vpop.f32.mrb[15].mxu1  ;;  %v691_v33 = vld [vmem:[#allocation2 + $0x180] sm:$0xff]  ;;  %v693_v34 = vld [vmem:[#allocation2 + $0x190] sm:$0xff] }
 0x2b1   : > { %1502 = vst [vmem:[#allocation2 + $0xc8] sm:$0xff] %v1438_v39  ;;  %1504 = vst [vmem:[#allocation2 + $0xd8] sm:$0xff] %v1440_v40  ;;  %v1442_v47 = vadd.f32 %v1257_v45, %v672_v37  ;;  %v1444_v48 = vadd.f32 %v1370_v46, %v674_v38  ;;  %v695_v39 = vld [vmem:[#allocation2 + $0x1a0] sm:$0xff]  ;;  %v697_v40 = vld [vmem:[#allocation2 + $0x1b0] sm:$0xff] }
 0x2b2   : > { %1505 = vst [vmem:[#allocation2 + $0xe0] sm:$0xff] %v1441_v43  ;;  %1507 = vst [vmem:[#allocation2 + $0xf0] sm:$0xff] %v1443_v44  ;;  %v696_v45 = vld [vmem:[#allocation2 + $0x1a8] sm:$0xff]  ;;  %v698_v46 = vld [vmem:[#allocation2 + $0x1b8] sm:$0xff] }
 0x2b3   : > { %1506 = vst [vmem:[#allocation2 + $0xe8] sm:$0xff] %v1442_v47  ;;  %1508 = vst [vmem:[#allocation2 + $0xf8] sm:$0xff] %v1444_v48 }
 0x2b5   : > { %v1261_v53 = vpop.f32.mrb[16].mxu0  ;;  %v1374_v54 = vpop.f32.mrb[16].mxu1 }
 0x2b6   : > { %v1445_v57 = vadd.f32 %v1261_v53, %v675_v49  ;;  %v1447_v58 = vadd.f32 %v1374_v54, %v677_v50  ;;  %v1263_v59 = vpop.f32.mrb[17].mxu0  ;;  %v1376_v60 = vpop.f32.mrb[17].mxu1 }
 0x2b7   : > { %v1446_v63 = vadd.f32 %v1263_v59, %v676_v51  ;;  %v1448_v0 = vadd.f32 %v1376_v60, %v678_v52  ;;  %v1265_v1 = vpop.f32.mrb[18].mxu0  ;;  %v1378_v2 = vpop.f32.mrb[18].mxu1  ;;  %v700_v59 = vld [vmem:[#allocation2 + $0x1c8] sm:$0xff]  ;;  %v702_v60 = vld [vmem:[#allocation2 + $0x1d8] sm:$0xff] }
 0x2b8   : > { %1509 = vst [vmem:[#allocation2 + $0x100] sm:$0xff] %v1445_v57  ;;  %1511 = vst [vmem:[#allocation2 + $0x110] sm:$0xff] %v1447_v58  ;;  %v1449_v3 = vadd.f32 %v1265_v1, %v679_v55  ;;  %v1451_v4 = vadd.f32 %v1378_v2, %v681_v56  ;;  %v1267_v5 = vpop.f32.mrb[19].mxu0  ;;  %v1380_v6 = vpop.f32.mrb[19].mxu1  ;;  %v699_v57 = vld [vmem:[#allocation2 + $0x1c0] sm:$0xff]  ;;  %v701_v58 = vld [vmem:[#allocation2 + $0x1d0] sm:$0xff] }
 0x2b9   : > { %1510 = vst [vmem:[#allocation2 + $0x108] sm:$0xff] %v1446_v63  ;;  %1512 = vst [vmem:[#allocation2 + $0x118] sm:$0xff] %v1448_v0  ;;  %v1450_v7 = vadd.f32 %v1267_v5, %v680_v61  ;;  %v1452_v8 = vadd.f32 %v1380_v6, %v682_v62  ;;  %v703_v63 = vld [vmem:[#allocation2 + $0x1e0] sm:$0xff]  ;;  %v705_v0 = vld [vmem:[#allocation2 + $0x1f0] sm:$0xff] }
 0x2ba   : > { %1513 = vst [vmem:[#allocation2 + $0x120] sm:$0xff] %v1449_v3  ;;  %1515 = vst [vmem:[#allocation2 + $0x130] sm:$0xff] %v1451_v4  ;;  %v704_v5 = vld [vmem:[#allocation2 + $0x1e8] sm:$0xff]  ;;  %v706_v6 = vld [vmem:[#allocation2 + $0x1f8] sm:$0xff] }
 0x2bb   : > { %1514 = vst [vmem:[#allocation2 + $0x128] sm:$0xff] %v1450_v7  ;;  %1516 = vst [vmem:[#allocation2 + $0x138] sm:$0xff] %v1452_v8 }
 0x2bd   : > { %v1271_v13 = vpop.f32.mrb[20].mxu0  ;;  %v1384_v14 = vpop.f32.mrb[20].mxu1 }
 0x2be   : > { %v1453_v17 = vadd.f32 %v1271_v13, %v683_v9  ;;  %v1455_v18 = vadd.f32 %v1384_v14, %v685_v10  ;;  %v1273_v19 = vpop.f32.mrb[21].mxu0  ;;  %v1386_v20 = vpop.f32.mrb[21].mxu1 }
 0x2bf   : > { %v1454_v23 = vadd.f32 %v1273_v19, %v684_v11  ;;  %v1456_v24 = vadd.f32 %v1386_v20, %v686_v12  ;;  %v1275_v25 = vpop.f32.mrb[22].mxu0  ;;  %v1388_v26 = vpop.f32.mrb[22].mxu1 }
 0x2c0   : > { %1517 = vst [vmem:[#allocation2 + $0x140] sm:$0xff] %v1453_v17  ;;  %1519 = vst [vmem:[#allocation2 + $0x150] sm:$0xff] %v1455_v18  ;;  %v1457_v27 = vadd.f32 %v1275_v25, %v687_v15  ;;  %v1459_v28 = vadd.f32 %v1388_v26, %v689_v16  ;;  %v1277_v29 = vpop.f32.mrb[23].mxu0  ;;  %v1390_v30 = vpop.f32.mrb[23].mxu1 }
 0x2c1   : > { %1518 = vst [vmem:[#allocation2 + $0x148] sm:$0xff] %v1454_v23  ;;  %1520 = vst [vmem:[#allocation2 + $0x158] sm:$0xff] %v1456_v24  ;;  %v1458_v31 = vadd.f32 %v1277_v29, %v688_v21  ;;  %v1460_v32 = vadd.f32 %v1390_v30, %v690_v22 }
 0x2c2   : > { %1521 = vst [vmem:[#allocation2 + $0x160] sm:$0xff] %v1457_v27  ;;  %1523 = vst [vmem:[#allocation2 + $0x170] sm:$0xff] %v1459_v28 }
 0x2c3   : > { %1522 = vst [vmem:[#allocation2 + $0x168] sm:$0xff] %v1458_v31  ;;  %1524 = vst [vmem:[#allocation2 + $0x178] sm:$0xff] %v1460_v32 }
 0x2c5   : > { %v1281_v37 = vpop.f32.mrb[24].mxu0  ;;  %v1394_v38 = vpop.f32.mrb[24].mxu1 }
 0x2c6   : > { %v1461_v41 = vadd.f32 %v1281_v37, %v691_v33  ;;  %v1463_v42 = vadd.f32 %v1394_v38, %v693_v34  ;;  %v1283_v43 = vpop.f32.mrb[25].mxu0  ;;  %v1396_v44 = vpop.f32.mrb[25].mxu1 }
 0x2c7   : > { %v1462_v47 = vadd.f32 %v1283_v43, %v692_v35  ;;  %v1464_v48 = vadd.f32 %v1396_v44, %v694_v36  ;;  %v1285_v49 = vpop.f32.mrb[26].mxu0  ;;  %v1398_v50 = vpop.f32.mrb[26].mxu1 }
 0x2c8   : > { %1525 = vst [vmem:[#allocation2 + $0x180] sm:$0xff] %v1461_v41  ;;  %1527 = vst [vmem:[#allocation2 + $0x190] sm:$0xff] %v1463_v42  ;;  %v1465_v51 = vadd.f32 %v1285_v49, %v695_v39  ;;  %v1467_v52 = vadd.f32 %v1398_v50, %v697_v40  ;;  %v1287_v53 = vpop.f32.mrb[27].mxu0  ;;  %v1400_v54 = vpop.f32.mrb[27].mxu1 }
 0x2c9   : > { %1526 = vst [vmem:[#allocation2 + $0x188] sm:$0xff] %v1462_v47  ;;  %1528 = vst [vmem:[#allocation2 + $0x198] sm:$0xff] %v1464_v48  ;;  %v1466_v55 = vadd.f32 %v1287_v53, %v696_v45  ;;  %v1468_v56 = vadd.f32 %v1400_v54, %v698_v46 }
 0x2ca   : > { %1529 = vst [vmem:[#allocation2 + $0x1a0] sm:$0xff] %v1465_v51  ;;  %1531 = vst [vmem:[#allocation2 + $0x1b0] sm:$0xff] %v1467_v52 }
 0x2cb   : > { %1530 = vst [vmem:[#allocation2 + $0x1a8] sm:$0xff] %v1466_v55  ;;  %1532 = vst [vmem:[#allocation2 + $0x1b8] sm:$0xff] %v1468_v56 }
 0x2cd   : > { %v1291_v61 = vpop.f32.mrb[28].mxu0  ;;  %v1404_v62 = vpop.f32.mrb[28].mxu1 }
 0x2ce   : > { %v1469_v1 = vadd.f32 %v1291_v61, %v699_v57  ;;  %v1471_v2 = vadd.f32 %v1404_v62, %v701_v58  ;;  %v1293_v3 = vpop.f32.mrb[29].mxu0  ;;  %v1406_v4 = vpop.f32.mrb[29].mxu1 }
 0x2cf   : > { %v1470_v7 = vadd.f32 %v1293_v3, %v700_v59  ;;  %v1472_v8 = vadd.f32 %v1406_v4, %v702_v60  ;;  %v1295_v9 = vpop.f32.mrb[30].mxu0  ;;  %v1408_v10 = vpop.f32.mrb[30].mxu1 }
 0x2d0   : > { %1533 = vst [vmem:[#allocation2 + $0x1c0] sm:$0xff] %v1469_v1  ;;  %1535 = vst [vmem:[#allocation2 + $0x1d0] sm:$0xff] %v1471_v2  ;;  %v1473_v11 = vadd.f32 %v1295_v9, %v703_v63  ;;  %v1475_v12 = vadd.f32 %v1408_v10, %v705_v0  ;;  %v1297_v13 = vpop.f32.mrb[31].mxu0  ;;  %v1410_v14 = vpop.f32.mrb[31].mxu1 }
 0x2d1   : > { %1534 = vst [vmem:[#allocation2 + $0x1c8] sm:$0xff] %v1470_v7  ;;  %1536 = vst [vmem:[#allocation2 + $0x1d8] sm:$0xff] %v1472_v8  ;;  %v1474_v15 = vadd.f32 %v1297_v13, %v704_v5  ;;  %v1476_v16 = vadd.f32 %v1410_v14, %v706_v6 }
 0x2d2   : > { %1537 = vst [vmem:[#allocation2 + $0x1e0] sm:$0xff] %v1473_v11  ;;  %1539 = vst [vmem:[#allocation2 + $0x1f0] sm:$0xff] %v1475_v12 }
 0x2d3   : > { %1538 = vst [vmem:[#allocation2 + $0x1e8] sm:$0xff] %v1474_v15  ;;  %1540 = vst [vmem:[#allocation2 + $0x1f8] sm:$0xff] %v1476_v16 }
 0x2d4 PF: > { %s5086_s22 = sld [smem:[#allocation29_spill]] }
 0x2da   : > { %p2942_p10 = scmp.lt.s32.totalorder %s5086_s22, 2 }
 0x2db   : > { %s5087_s0 = sld [smem:[#allocation29_spill]] (!%p2942_p10) }
 0x2dc   : > { %1544 = sbr.rel (%p2942_p10) target bundleno = 1324 (0x52c), region = 88 }
 0x2e1   : > { %p2943_p1 = scmp.ne.s32.totalorder (!%p2942_p10), %s5087_s0, 2 }
 0x2e3   : > { %1548 = sbr.rel (%p2943_p1) target bundleno = 791 (0x317), region = 92  ;;  %v1615_v17 = vlaneseq (!%p2943_p1)  ;;  %v1613_v19 = vld [vmem:[#allocation9] sm:$0xf] (!%p2943_p1)  ;;  %v1550_v26 = vld [vmem:[#allocation2 + $0x8] sm:$0xff] (!%p2943_p1)  ;;  %v1551_v28 = vld [vmem:[#allocation2 + $0x10] sm:$0xff] (!%p2943_p1) }
 0x2e4   : > { %v1549_v20 = vld [vmem:[#allocation2] sm:$0xff] (!%p2943_p1)  ;;  %v1554_v27 = vld [vmem:[#allocation2 + $0x28] sm:$0xff] (!%p2943_p1)  ;;  %v1555_v31 = vld [vmem:[#allocation2 + $0x30] sm:$0xff] (!%p2943_p1) }
 0x2e5   : > { %v1616_v18 = vshrl.u32 (!%p2943_p1), %v1615_v17, 7  ;;  %v1553_v21 = vld [vmem:[#allocation2 + $0x20] sm:$0xff] (!%p2943_p1)  ;;  %v1552_v33 = vld [vmem:[#allocation2 + $0x18] sm:$0xff] (!%p2943_p1)  ;;  %v1558_v50 = vld [vmem:[#allocation2 + $0x48] sm:$0xff] (!%p2943_p1) }
 0x2e6   : > { %v1556_v34 = vld [vmem:[#allocation2 + $0x38] sm:$0xff] (!%p2943_p1)  ;;  %v1557_v44 = vld [vmem:[#allocation2 + $0x40] sm:$0xff] (!%p2943_p1)  ;;  %v1562_v51 = vld [vmem:[#allocation2 + $0x68] sm:$0xff] (!%p2943_p1) }
 0x2e7   : > { %v1617_v22 = vsub.s32 (!%p2943_p1), 0, %v1616_v18  ;;  %v1621_v23 = vsub.s32 (!%p2943_p1), 1, %v1616_v18  ;;  %v1625_v24 = vsub.s32 (!%p2943_p1), 2, %v1616_v18  ;;  %v1629_v25 = vsub.s32 (!%p2943_p1), 3, %v1616_v18  ;;  %v1561_v45 = vld [vmem:[#allocation2 + $0x60] sm:$0xff] (!%p2943_p1)  ;;  %v1559_v56 = vld [vmem:[#allocation2 + $0x50] sm:$0xff] (!%p2943_p1) }
 0x2e8   : > { %v1563_v57 = vld [vmem:[#allocation2 + $0x70] sm:$0xff] (!%p2943_p1)  ;;  %v1560_v62 = vld [vmem:[#allocation2 + $0x58] sm:$0xff] (!%p2943_p1)  ;;  %v1565_v4 = vld [vmem:[#allocation2 + $0x80] sm:$0xff] (!%p2943_p1) }
 0x2e9   : > { %v4677_v29 = vrot.slane (!%p2943_p1), %v1613_v19, %v1617_v22  ;;  %v4679_v30 = vrot.slane (!%p2943_p1), %v1613_v19, %v1621_v23  ;;  %v4681_v32 = vrot.slane (!%p2943_p1), %v1613_v19, %v1625_v24  ;;  %v4683_v35 = vrot.slane (!%p2943_p1), %v1613_v19, %v1629_v25  ;;  %v1564_v63 = vld [vmem:[#allocation2 + $0x78] sm:$0xff] (!%p2943_p1)  ;;  %v1569_v9 = vld [vmem:[#allocation2 + $0xa0] sm:$0xff] (!%p2943_p1)  ;;  %v1566_v14 = vld [vmem:[#allocation2 + $0x88] sm:$0xff] (!%p2943_p1) }
 0x2ea   : > { %v1570_v15 = vld [vmem:[#allocation2 + $0xa8] sm:$0xff] }
 0x2eb   : > { %v1635_v36 = vadd.f32 %v4677_v29, %v1549_v20  ;;  %v1639_v37 = vadd.f32 %v4677_v29, %v1553_v21  ;;  %v1636_v38 = vadd.f32 %v4679_v30, %v1550_v26  ;;  %v1640_v39 = vadd.f32 %v4679_v30, %v1554_v27  ;;  %v1567_v20 = vld [vmem:[#allocation2 + $0x90] sm:$0xff]  ;;  %v1568_v26 = vld [vmem:[#allocation2 + $0x98] sm:$0xff] }
 0x2ec   : > { %v1637_v40 = vadd.f32 %v4681_v32, %v1551_v28  ;;  %v1641_v41 = vadd.f32 %v4681_v32, %v1555_v31  ;;  %v1638_v42 = vadd.f32 %v4683_v35, %v1552_v33  ;;  %v1642_v43 = vadd.f32 %v4683_v35, %v1556_v34  ;;  %v1571_v21 = vld [vmem:[#allocation2 + $0xb0] sm:$0xff]  ;;  %v1572_v27 = vld [vmem:[#allocation2 + $0xb8] sm:$0xff] }
 0x2ed   : > { %v1699_v46 = vmax.f32 %v1635_v36, 0.0  ;;  %v1703_v47 = vmax.f32 %v1639_v37, 0.0  ;;  %v1700_v48 = vmax.f32 %v1636_v38, 0.0  ;;  %v1704_v49 = vmax.f32 %v1640_v39, 0.0  ;;  %v1573_v36 = vld [vmem:[#allocation2 + $0xc0] sm:$0xff] }
 0x2ee   : > { %v1701_v52 = vmax.f32 %v1637_v40, 0.0  ;;  %v1705_v53 = vmax.f32 %v1641_v41, 0.0  ;;  %v1702_v54 = vmax.f32 %v1638_v42, 0.0  ;;  %v1706_v55 = vmax.f32 %v1642_v43, 0.0  ;;  %v1577_v41 = vld [vmem:[#allocation2 + $0xe0] sm:$0xff] }
 0x2ef   : > { %v1763_v58 = vpack.c.bf16 %v1703_v47, %v1699_v46  ;;  %v1764_v59 = vpack.c.bf16 %v1704_v49, %v1700_v48  ;;  %v1643_v60 = vadd.f32 %v4677_v29, %v1557_v44  ;;  %v1647_v61 = vadd.f32 %v4677_v29, %v1561_v45  ;;  %v1574_v46 = vld [vmem:[#allocation2 + $0xc8] sm:$0xff] }
 0x2f0   : > { %v1765_v0 = vpack.c.bf16 %v1705_v53, %v1701_v52  ;;  %v1766_v1 = vpack.c.bf16 %v1706_v55, %v1702_v54  ;;  %v1644_v2 = vadd.f32 %v4679_v30, %v1558_v50  ;;  %v1648_v3 = vadd.f32 %v4679_v30, %v1562_v51  ;;  %v1578_v47 = vld [vmem:[#allocation2 + $0xe8] sm:$0xff]  ;;  %v1575_v52 = vld [vmem:[#allocation2 + $0xd0] sm:$0xff] }
 0x2f1   : > { %1795 = vst [vmem:[#allocation3] sm:$0xff] %v1763_v58  ;;  %1796 = vst [vmem:[#allocation3 + $0x8] sm:$0xff] %v1764_v59  ;;  %v1707_v5 = vmax.f32 %v1643_v60, 0.0  ;;  %v1711_v6 = vmax.f32 %v1647_v61, 0.0  ;;  %v1645_v7 = vadd.f32 %v4681_v32, %v1559_v56  ;;  %v1649_v8 = vadd.f32 %v4681_v32, %v1563_v57  ;;  %v1579_v53 = vld [vmem:[#allocation2 + $0xf0] sm:$0xff]  ;;  %v1576_v58 = vld [vmem:[#allocation2 + $0xd8] sm:$0xff] }
 0x2f2   : > { %1797 = vst [vmem:[#allocation3 + $0x10] sm:$0xff] %v1765_v0  ;;  %1798 = vst [vmem:[#allocation3 + $0x18] sm:$0xff] %v1766_v1  ;;  %v1708_v10 = vmax.f32 %v1644_v2, 0.0  ;;  %v1712_v11 = vmax.f32 %v1648_v3, 0.0  ;;  %v1646_v12 = vadd.f32 %v4683_v35, %v1560_v62  ;;  %v1650_v13 = vadd.f32 %v4683_v35, %v1564_v63  ;;  %v1580_v59 = vld [vmem:[#allocation2 + $0xf8] sm:$0xff]  ;;  %v1581_v1 = vld [vmem:[#allocation2 + $0x100] sm:$0xff] }
 0x2f3   : > { %v1767_v16 = vpack.c.bf16 %v1711_v6, %v1707_v5  ;;  %v1709_v17 = vmax.f32 %v1645_v7, 0.0  ;;  %v1713_v18 = vmax.f32 %v1649_v8, 0.0  ;;  %v1651_v19 = vadd.f32 %v4677_v29, %v1565_v4  ;;  %v2944_v60 = vld [vmem:[#allocation15] ss:$0 sm:$0xff] }
 0x2f4   : > { %v1768_v22 = vpack.c.bf16 %v1712_v11, %v1708_v10  ;;  %v1710_v23 = vmax.f32 %v1646_v12, 0.0  ;;  %v1714_v24 = vmax.f32 %v1650_v13, 0.0  ;;  %v1655_v25 = vadd.f32 %v4677_v29, %v1569_v9  ;;  %1834 = vst [vmem:[%s4527_s19] sm:$0xff] %v2944_v60  ;;  %1835 = vst [vmem:[%s4527_s19 + $0x8] sm:$0xff] %v2944_v60  ;;  %v1585_v6 = vld [vmem:[#allocation2 + $0x120] sm:$0xff]  ;;  %v1582_v11 = vld [vmem:[#allocation2 + $0x108] sm:$0xff] }
 0x2f5   : > { %1799 = vst [vmem:[#allocation3 + $0x20] sm:$0xff] %v1767_v16  ;;  %v1769_v28 = vpack.c.bf16 %v1713_v18, %v1709_v17  ;;  %v1715_v31 = vmax.f32 %v1651_v19, 0.0  ;;  %v1652_v33 = vadd.f32 %v4679_v30, %v1566_v14  ;;  %v1656_v34 = vadd.f32 %v4679_v30, %v1570_v15  ;;  %1836 = vst [vmem:[%s4527_s19 + $0x10] sm:$0xff] %v2944_v60  ;;  %v1586_v12 = vld [vmem:[#allocation2 + $0x128] sm:$0xff]  ;;  %v1583_v17 = vld [vmem:[#allocation2 + $0x110] sm:$0xff] }
 0x2f6   : > { %1800 = vst [vmem:[#allocation3 + $0x28] sm:$0xff] %v1768_v22  ;;  %v1770_v37 = vpack.c.bf16 %v1714_v24, %v1710_v23  ;;  %v1719_v38 = vmax.f32 %v1655_v25, 0.0  ;;  %v1653_v39 = vadd.f32 %v4681_v32, %v1567_v20  ;;  %v1657_v40 = vadd.f32 %v4681_v32, %v1571_v21  ;;  %1837 = vst [vmem:[%s4527_s19 + $0x18] sm:$0xff] %v2944_v60  ;;  %v1587_v18 = vld [vmem:[#allocation2 + $0x130] sm:$0xff]  ;;  %v1584_v23 = vld [vmem:[#allocation2 + $0x118] sm:$0xff] }
 0x2f7   : > { %1801 = vst [vmem:[#allocation3 + $0x30] sm:$0xff] %v1769_v28  ;;  %v1716_v42 = vmax.f32 %v1652_v33, 0.0  ;;  %v1720_v43 = vmax.f32 %v1656_v34, 0.0  ;;  %v1654_v44 = vadd.f32 %v4683_v35, %v1568_v26  ;;  %v1658_v45 = vadd.f32 %v4683_v35, %v1572_v27  ;;  %1838 = vst [vmem:[%s4527_s19 + $0x20] sm:$0xff] %v2944_v60  ;;  %v1588_v24 = vld [vmem:[#allocation2 + $0x138] sm:$0xff] }
 0x2f8   : > { %1802 = vst [vmem:[#allocation3 + $0x38] sm:$0xff] %v1770_v37  ;;  %v1771_v48 = vpack.c.bf16 %v1719_v38, %v1715_v31  ;;  %v1717_v49 = vmax.f32 %v1653_v39, 0.0  ;;  %v1721_v50 = vmax.f32 %v1657_v40, 0.0  ;;  %v1659_v51 = vadd.f32 %v4677_v29, %v1573_v36  ;;  %1839 = vst [vmem:[%s4527_s19 + $0x28] sm:$0xff] %v2944_v60  ;;  %v1589_v31 = vld [vmem:[#allocation2 + $0x140] sm:$0xff] }
 0x2f9   : > { %v1772_v54 = vpack.c.bf16 %v1720_v43, %v1716_v42  ;;  %v1718_v55 = vmax.f32 %v1654_v44, 0.0  ;;  %v1722_v56 = vmax.f32 %v1658_v45, 0.0  ;;  %v1663_v57 = vadd.f32 %v4677_v29, %v1577_v41  ;;  %1840 = vst [vmem:[%s4527_s19 + $0x30] sm:$0xff] %v2944_v60  ;;  %1841 = vst [vmem:[%s4527_s19 + $0x38] sm:$0xff] %v2944_v60  ;;  %v1593_v38 = vld [vmem:[#allocation2 + $0x160] sm:$0xff]  ;;  %v1590_v43 = vld [vmem:[#allocation2 + $0x148] sm:$0xff] }
 0x2fa   : > { %1803 = vst [vmem:[#allocation3 + $0x40] sm:$0xff] %v1771_v48  ;;  %v1773_v61 = vpack.c.bf16 %v1721_v50, %v1717_v49  ;;  %v1723_v62 = vmax.f32 %v1659_v51, 0.0  ;;  %v1660_v63 = vadd.f32 %v4679_v30, %v1574_v46  ;;  %v1664_v0 = vadd.f32 %v4679_v30, %v1578_v47  ;;  %1842 = vst [vmem:[%s4527_s19 + $0x40] sm:$0xff] %v2944_v60  ;;  %v1594_v44 = vld [vmem:[#allocation2 + $0x168] sm:$0xff]  ;;  %v1591_v49 = vld [vmem:[#allocation2 + $0x150] sm:$0xff] }
 0x2fb   : > { %1843 = vst [vmem:[%s4527_s19 + $0x48] sm:$0xff] %v2944_v60  ;;  %1844 = vst [vmem:[%s4527_s19 + $0x50] sm:$0xff] %v2944_v60  ;;  %v1774_v2 = vpack.c.bf16 %v1722_v56, %v1718_v55  ;;  %v1727_v3 = vmax.f32 %v1663_v57, 0.0  ;;  %v1661_v4 = vadd.f32 %v4681_v32, %v1575_v52  ;;  %v1665_v5 = vadd.f32 %v4681_v32, %v1579_v53  ;;  %v1595_v50 = vld [vmem:[#allocation2 + $0x170] sm:$0xff]  ;;  %v1592_v55 = vld [vmem:[#allocation2 + $0x158] sm:$0xff] }
 0x2fc   : > { %1845 = vst [vmem:[%s4527_s19 + $0x58] sm:$0xff] %v2944_v60  ;;  %1846 = vst [vmem:[%s4527_s19 + $0x60] sm:$0xff] %v2944_v60  ;;  %v1724_v7 = vmax.f32 %v1660_v63, 0.0  ;;  %v1728_v8 = vmax.f32 %v1664_v0, 0.0  ;;  %v1662_v9 = vadd.f32 %v4683_v35, %v1576_v58  ;;  %v1666_v10 = vadd.f32 %v4683_v35, %v1580_v59  ;;  %v1596_v56 = vld [vmem:[#allocation2 + $0x178] sm:$0xff] }
 0x2fd   : > { %1847 = vst [vmem:[%s4527_s19 + $0x68] sm:$0xff] %v2944_v60  ;;  %1848 = vst [vmem:[%s4527_s19 + $0x70] sm:$0xff] %v2944_v60  ;;  %v1775_v13 = vpack.c.bf16 %v1727_v3, %v1723_v62  ;;  %v1725_v14 = vmax.f32 %v1661_v4, 0.0  ;;  %v1729_v15 = vmax.f32 %v1665_v5, 0.0  ;;  %v1667_v16 = vadd.f32 %v4677_v29, %v1581_v1 }
 0x2fe   : > { %1849 = vst [vmem:[%s4527_s19 + $0x78] sm:$0xff] %v2944_v60  ;;  %1804 = vst [vmem:[#allocation3 + $0x48] sm:$0xff] %v1772_v54  ;;  %v1776_v19 = vpack.c.bf16 %v1728_v8, %v1724_v7  ;;  %v1726_v20 = vmax.f32 %v1662_v9, 0.0  ;;  %v1730_v21 = vmax.f32 %v1666_v10, 0.0  ;;  %v1671_v22 = vadd.f32 %v4677_v29, %v1585_v6  ;;  %v1598_v7 = vld [vmem:[#allocation2 + $0x188] sm:$0xff] }
 0x2ff   : > { %1805 = vst [vmem:[#allocation3 + $0x50] sm:$0xff] %v1773_v61  ;;  %1806 = vst [vmem:[#allocation3 + $0x58] sm:$0xff] %v1774_v2  ;;  %v1777_v25 = vpack.c.bf16 %v1729_v15, %v1725_v14  ;;  %v1731_v26 = vmax.f32 %v1667_v16, 0.0  ;;  %v1668_v27 = vadd.f32 %v4679_v30, %v1582_v11  ;;  %v1672_v28 = vadd.f32 %v4679_v30, %v1586_v12  ;;  %v1597_v61 = vld [vmem:[#allocation2 + $0x180] sm:$0xff]  ;;  %v1602_v8 = vld [vmem:[#allocation2 + $0x1a8] sm:$0xff] }
 0x300   : > { %1807 = vst [vmem:[#allocation3 + $0x60] sm:$0xff] %v1775_v13  ;;  %1808 = vst [vmem:[#allocation3 + $0x68] sm:$0xff] %v1776_v19  ;;  %v1778_v33 = vpack.c.bf16 %v1730_v21, %v1726_v20  ;;  %v1735_v34 = vmax.f32 %v1671_v22, 0.0  ;;  %v1669_v36 = vadd.f32 %v4681_v32, %v1583_v17  ;;  %v1673_v37 = vadd.f32 %v4681_v32, %v1587_v18  ;;  %v1601_v2 = vld [vmem:[#allocation2 + $0x1a0] sm:$0xff]  ;;  %v1599_v13 = vld [vmem:[#allocation2 + $0x190] sm:$0xff] }
 0x301   : > { %1809 = vst [vmem:[#allocation3 + $0x70] sm:$0xff] %v1777_v25  ;;  %v1732_v39 = vmax.f32 %v1668_v27, 0.0  ;;  %v1736_v40 = vmax.f32 %v1672_v28, 0.0  ;;  %v1670_v41 = vadd.f32 %v4683_v35, %v1584_v23  ;;  %v1674_v42 = vadd.f32 %v4683_v35, %v1588_v24  ;;  %v1603_v14 = vld [vmem:[#allocation2 + $0x1b0] sm:$0xff]  ;;  %v1600_v19 = vld [vmem:[#allocation2 + $0x198] sm:$0xff]  ;;  %v1605_v25 = vld [vmem:[#allocation2 + $0x1c0] sm:$0xff] }
 0x302   : > { %1810 = vst [vmem:[#allocation3 + $0x78] sm:$0xff] %v1778_v33  ;;  %v1779_v45 = vpack.c.bf16 %v1735_v34, %v1731_v26  ;;  %v1733_v46 = vmax.f32 %v1669_v36, 0.0  ;;  %v1737_v47 = vmax.f32 %v1673_v37, 0.0  ;;  %v1675_v48 = vadd.f32 %v4677_v29, %v1589_v31  ;;  %v1604_v20 = vld [vmem:[#allocation2 + $0x1b8] sm:$0xff]  ;;  %v1609_v33 = vld [vmem:[#allocation2 + $0x1e0] sm:$0xff] }
 0x303   : > { %v1780_v51 = vpack.c.bf16 %v1736_v40, %v1732_v39  ;;  %v1734_v52 = vmax.f32 %v1670_v41, 0.0  ;;  %v1738_v53 = vmax.f32 %v1674_v42, 0.0  ;;  %v1679_v54 = vadd.f32 %v4677_v29, %v1593_v38  ;;  %v1606_v39 = vld [vmem:[#allocation2 + $0x1c8] sm:$0xff] }
 0x304   : > { %1811 = vst [vmem:[#allocation3 + $0x80] sm:$0xff] %v1779_v45  ;;  %v1781_v57 = vpack.c.bf16 %v1737_v47, %v1733_v46  ;;  %v1739_v58 = vmax.f32 %v1675_v48, 0.0  ;;  %v1676_v59 = vadd.f32 %v4679_v30, %v1590_v43  ;;  %v1680_v60 = vadd.f32 %v4679_v30, %v1594_v44  ;;  %v1610_v40 = vld [vmem:[#allocation2 + $0x1e8] sm:$0xff]  ;;  %v1607_v45 = vld [vmem:[#allocation2 + $0x1d0] sm:$0xff] }
 0x305   : > { %1812 = vst [vmem:[#allocation3 + $0x88] sm:$0xff] %v1780_v51  ;;  %v1782_v62 = vpack.c.bf16 %v1738_v53, %v1734_v52  ;;  %v1743_v63 = vmax.f32 %v1679_v54, 0.0  ;;  %v1677_v0 = vadd.f32 %v4681_v32, %v1591_v49  ;;  %v1681_v1 = vadd.f32 %v4681_v32, %v1595_v50  ;;  %v1611_v46 = vld [vmem:[#allocation2 + $0x1f0] sm:$0xff]  ;;  %v1608_v51 = vld [vmem:[#allocation2 + $0x1d8] sm:$0xff] }
 0x306   : > { %1813 = vst [vmem:[#allocation3 + $0x90] sm:$0xff] %v1781_v57  ;;  %v1740_v3 = vmax.f32 %v1676_v59, 0.0  ;;  %v1744_v4 = vmax.f32 %v1680_v60, 0.0  ;;  %v1678_v5 = vadd.f32 %v4683_v35, %v1592_v55  ;;  %v1682_v6 = vadd.f32 %v4683_v35, %v1596_v56  ;;  %v1612_v52 = vld [vmem:[#allocation2 + $0x1f8] sm:$0xff] }
 0x307   : > { %1814 = vst [vmem:[#allocation3 + $0x98] sm:$0xff] %v1782_v62  ;;  %v1783_v9 = vpack.c.bf16 %v1743_v63, %v1739_v58  ;;  %v1741_v10 = vmax.f32 %v1677_v0, 0.0  ;;  %v1745_v11 = vmax.f32 %v1681_v1, 0.0  ;;  %v1683_v12 = vadd.f32 %v4677_v29, %v1597_v61 }
 0x308   : > { %v1784_v15 = vpack.c.bf16 %v1744_v4, %v1740_v3  ;;  %v1742_v16 = vmax.f32 %v1678_v5, 0.0  ;;  %v1746_v17 = vmax.f32 %v1682_v6, 0.0  ;;  %v1687_v18 = vadd.f32 %v4677_v29, %v1601_v2 }
 0x309   : > { %1815 = vst [vmem:[#allocation3 + $0xa0] sm:$0xff] %v1783_v9  ;;  %v1785_v21 = vpack.c.bf16 %v1745_v11, %v1741_v10  ;;  %v1747_v22 = vmax.f32 %v1683_v12, 0.0  ;;  %v1684_v23 = vadd.f32 %v4679_v30, %v1598_v7  ;;  %v1688_v24 = vadd.f32 %v4679_v30, %v1602_v8 }
 0x30a   : > { %1816 = vst [vmem:[#allocation3 + $0xa8] sm:$0xff] %v1784_v15  ;;  %v1786_v26 = vpack.c.bf16 %v1746_v17, %v1742_v16  ;;  %v1751_v27 = vmax.f32 %v1687_v18, 0.0  ;;  %v1685_v28 = vadd.f32 %v4681_v32, %v1599_v13  ;;  %v1689_v31 = vadd.f32 %v4681_v32, %v1603_v14 }
 0x30b   : > { %1817 = vst [vmem:[#allocation3 + $0xb0] sm:$0xff] %v1785_v21  ;;  %v1748_v34 = vmax.f32 %v1684_v23, 0.0  ;;  %v1752_v36 = vmax.f32 %v1688_v24, 0.0  ;;  %v1686_v37 = vadd.f32 %v4683_v35, %v1600_v19  ;;  %v1690_v38 = vadd.f32 %v4683_v35, %v1604_v20 }
 0x30c   : > { %1818 = vst [vmem:[#allocation3 + $0xb8] sm:$0xff] %v1786_v26  ;;  %v1787_v41 = vpack.c.bf16 %v1751_v27, %v1747_v22  ;;  %v1749_v42 = vmax.f32 %v1685_v28, 0.0  ;;  %v1753_v43 = vmax.f32 %v1689_v31, 0.0  ;;  %v1691_v44 = vadd.f32 %v4677_v29, %v1605_v25 }
 0x30d   : > { %v1788_v47 = vpack.c.bf16 %v1752_v36, %v1748_v34  ;;  %v1750_v48 = vmax.f32 %v1686_v37, 0.0  ;;  %v1754_v49 = vmax.f32 %v1690_v38, 0.0  ;;  %v1695_v50 = vadd.f32 %v4677_v29, %v1609_v33 }
 0x30e   : > { %1819 = vst [vmem:[#allocation3 + $0xc0] sm:$0xff] %v1787_v41  ;;  %v1789_v53 = vpack.c.bf16 %v1753_v43, %v1749_v42  ;;  %v1755_v54 = vmax.f32 %v1691_v44, 0.0  ;;  %v1692_v55 = vadd.f32 %v4679_v30, %v1606_v39  ;;  %v1696_v56 = vadd.f32 %v4679_v30, %v1610_v40 }
 0x30f   : > { %1820 = vst [vmem:[#allocation3 + $0xc8] sm:$0xff] %v1788_v47  ;;  %v1790_v57 = vpack.c.bf16 %v1754_v49, %v1750_v48  ;;  %v1759_v58 = vmax.f32 %v1695_v50, 0.0  ;;  %v1693_v59 = vadd.f32 %v4681_v32, %v1607_v45  ;;  %v1697_v60 = vadd.f32 %v4681_v32, %v1611_v46 }
 0x310   : > { %1821 = vst [vmem:[#allocation3 + $0xd0] sm:$0xff] %v1789_v53  ;;  %v1756_v61 = vmax.f32 %v1692_v55, 0.0  ;;  %v1760_v62 = vmax.f32 %v1696_v56, 0.0  ;;  %v1694_v29 = vadd.f32 %v4683_v35, %v1608_v51  ;;  %v1698_v63 = vadd.f32 %v4683_v35, %v1612_v52 }
 0x311   : > { %1822 = vst [vmem:[#allocation3 + $0xd8] sm:$0xff] %v1790_v57  ;;  %v1791_v0 = vpack.c.bf16 %v1759_v58, %v1755_v54  ;;  %v1757_v1 = vmax.f32 %v1693_v59, 0.0  ;;  %v1761_v2 = vmax.f32 %v1697_v60, 0.0 }
 0x312   : > { %v1792_v3 = vpack.c.bf16 %v1760_v62, %v1756_v61  ;;  %v1758_v30 = vmax.f32 %v1694_v29, 0.0  ;;  %v1762_v4 = vmax.f32 %v1698_v63, 0.0 }
 0x313   : > { %1823 = vst [vmem:[#allocation3 + $0xe0] sm:$0xff] %v1791_v0  ;;  %v1793_v5 = vpack.c.bf16 %v1761_v2, %v1757_v1 }
 0x314   : > { %1824 = vst [vmem:[#allocation3 + $0xe8] sm:$0xff] %v1792_v3  ;;  %v1794_v6 = vpack.c.bf16 %v1762_v4, %v1758_v30 }
 0x315   : > { %1825 = vst [vmem:[#allocation3 + $0xf0] sm:$0xff] %v1793_v5 }
 0x316   : > { %1826 = vst [vmem:[#allocation3 + $0xf8] sm:$0xff] %v1794_v6 }
 0x317 PF: > { %v3526_v32 = vld [vmem:[%s4506_s11 + $0x40] sm:$0xff]   ;;  %v3530_v9 = vld [vmem:[%s4506_s11 + $0x48] sm:$0xff]   ;;  %v3534_v13 = vld [vmem:[%s4506_s11 + $0x50] sm:$0xff]  }
 0x318   : > { %v3527_v35 = vld [vmem:[%s4506_s11 + $0xc0] sm:$0xff]   ;;  %3014 = vmatprep.subr.bf16.mxu0 %v3526_v32  ;;  %v3531_v10 = vld [vmem:[%s4506_s11 + $0xc8] sm:$0xff]   ;;  %v3535_v14 = vld [vmem:[%s4506_s11 + $0xd0] sm:$0xff]  }
 0x319   : > { %v3528_v7 = vld [vmem:[%s4506_s11] sm:$0xff]   ;;  %3078 = vmatprep.subr.bf16.mxu1 %v3527_v35  ;;  %v3532_v11 = vld [vmem:[%s4506_s11 + $0x8] sm:$0xff]   ;;  %v3536_v15 = vld [vmem:[%s4506_s11 + $0x10] sm:$0xff]  }
 0x31a   : > { %v3529_v8 = vld [vmem:[%s4506_s11 + $0x80] sm:$0xff]   ;;  %3015 = vmatpush3.bf16.msra.mxu0 %v3528_v7  ;;  %v3533_v12 = vld [vmem:[%s4506_s11 + $0x88] sm:$0xff]   ;;  %v3537_v16 = vld [vmem:[%s4506_s11 + $0x90] sm:$0xff]  }
 0x31b   : > { %3079 = vmatpush3.bf16.msra.mxu1 %v3529_v8  ;;  %3016 = vmatprep.subr.bf16.mxu0 %v3530_v9  ;;  %v3538_v17 = vld [vmem:[%s4506_s11 + $0x58] sm:$0xff]   ;;  %v3542_v21 = vld [vmem:[%s4506_s11 + $0x60] sm:$0xff]   ;;  %v3546_v25 = vld [vmem:[%s4506_s11 + $0x68] sm:$0xff]  }
 0x31c   : > { %3080 = vmatprep.subr.bf16.mxu1 %v3531_v10  ;;  %v3539_v18 = vld [vmem:[%s4506_s11 + $0xd8] sm:$0xff]   ;;  %v3543_v22 = vld [vmem:[%s4506_s11 + $0xe0] sm:$0xff]   ;;  %v3547_v26 = vld [vmem:[%s4506_s11 + $0xe8] sm:$0xff]  }
 0x31d   : > { %v3540_v19 = vld [vmem:[%s4506_s11 + $0x18] sm:$0xff]   ;;  %v3544_v23 = vld [vmem:[%s4506_s11 + $0x20] sm:$0xff]   ;;  %v3548_v27 = vld [vmem:[%s4506_s11 + $0x28] sm:$0xff]  }
 0x31e   : > { %3017 = vmatpush3.bf16.msra.mxu0 %v3532_v11  ;;  %v3541_v20 = vld [vmem:[%s4506_s11 + $0x98] sm:$0xff]   ;;  %v3545_v24 = vld [vmem:[%s4506_s11 + $0xa0] sm:$0xff]   ;;  %v3549_v28 = vld [vmem:[%s4506_s11 + $0xa8] sm:$0xff]  }
 0x31f   : > { %3081 = vmatpush3.bf16.msra.mxu1 %v3533_v12  ;;  %3018 = vmatprep.subr.bf16.mxu0 %v3534_v13  ;;  %v3550_v31 = vld [vmem:[%s4506_s11 + $0x70] sm:$0xff]   ;;  %v3554_v37 = vld [vmem:[%s4506_s11 + $0x78] sm:$0xff]   ;;  %v1851_v41 = vld [vmem:[#allocation3 + $0x8] sm:$0xff] }
 0x320   : > { %3082 = vmatprep.subr.bf16.mxu1 %v3535_v14  ;;  %v3551_v33 = vld [vmem:[%s4506_s11 + $0xf0] sm:$0xff]   ;;  %v3555_v38 = vld [vmem:[%s4506_s11 + $0xf8] sm:$0xff]   ;;  %2177 = vmatprep.mubr.bf16.mxu0 %v1851_v41  ;;  %v1855_v45 = vld [vmem:[#allocation3 + $0x28] sm:$0xff] }
 0x321   : > { %v3552_v34 = vld [vmem:[%s4506_s11 + $0x30] sm:$0xff]   ;;  %v3556_v39 = vld [vmem:[%s4506_s11 + $0x38] sm:$0xff]   ;;  %v1859_v49 = vld [vmem:[#allocation3 + $0x48] sm:$0xff] }
 0x322   : > { %3019 = vmatpush3.bf16.msra.mxu0 %v3536_v15  ;;  %v3553_v36 = vld [vmem:[%s4506_s11 + $0xb0] sm:$0xff]   ;;  %v3557_v40 = vld [vmem:[%s4506_s11 + $0xb8] sm:$0xff]   ;;  %v3558_v51 = vld [vmem:[%s4514_s15] sm:$0xff]  }
 0x323   : > { %3083 = vmatpush3.bf16.msra.mxu1 %v3537_v16  ;;  %3020 = vmatprep.subr.bf16.mxu0 %v3538_v17  ;;  %v1853_v42 = vld [vmem:[#allocation3 + $0x18] sm:$0xff]  ;;  %v1850_v43 = vld [vmem:[#allocation3] sm:$0xff]  ;;  %v1852_v44 = vld [vmem:[#allocation3 + $0x10] sm:$0xff] }
 0x324   : > { %3084 = vmatprep.subr.bf16.mxu1 %v3539_v18  ;;  %2274 = vmatprep.mubr.bf16.mxu1 %v1853_v42  ;;  %v1857_v46 = vld [vmem:[#allocation3 + $0x38] sm:$0xff]  ;;  %v1854_v47 = vld [vmem:[#allocation3 + $0x20] sm:$0xff]  ;;  %v1856_v48 = vld [vmem:[#allocation3 + $0x30] sm:$0xff] }
 0x325   : > { %v1861_v50 = vld [vmem:[#allocation3 + $0x58] sm:$0xff]  ;;  %v3559_v52 = vld [vmem:[%s4514_s15 + $0x8] sm:$0xff]   ;;  %v1858_v54 = vld [vmem:[#allocation3 + $0x40] sm:$0xff] }
 0x326   : > { %3021 = vmatpush3.bf16.msra.mxu0 %v3540_v19  ;;  %v3560_v53 = vld [vmem:[%s4514_s15 + $0x10] sm:$0xff]   ;;  %v1863_v56 = vld [vmem:[#allocation3 + $0x68] sm:$0xff]  ;;  %v1862_v58 = vld [vmem:[#allocation3 + $0x60] sm:$0xff] }
 0x327   : > { %3085 = vmatpush3.bf16.msra.mxu1 %v3541_v20  ;;  %3022 = vmatprep.subr.bf16.mxu0 %v3542_v21  ;;  %v1860_v55 = vld [vmem:[#allocation3 + $0x50] sm:$0xff]  ;;  %v1865_v57 = vld [vmem:[#allocation3 + $0x78] sm:$0xff]  ;;  %v1867_v60 = vld [vmem:[#allocation3 + $0x88] sm:$0xff] }
 0x328   : > { %3086 = vmatprep.subr.bf16.mxu1 %v3543_v22  ;;  %v1864_v59 = vld [vmem:[#allocation3 + $0x70] sm:$0xff]  ;;  %v1869_v61 = vld [vmem:[#allocation3 + $0x98] sm:$0xff]  ;;  %v1866_v62 = vld [vmem:[#allocation3 + $0x80] sm:$0xff] }
 0x329   : > { %v1868_v29 = vld [vmem:[#allocation3 + $0x90] sm:$0xff]  ;;  %v1871_v63 = vld [vmem:[#allocation3 + $0xa8] sm:$0xff]  ;;  %v1873_v0 = vld [vmem:[#allocation3 + $0xb8] sm:$0xff] }
 0x32a   : > { %3023 = vmatpush3.bf16.msra.mxu0 %v3544_v23  ;;  %v1870_v1 = vld [vmem:[#allocation3 + $0xa0] sm:$0xff]  ;;  %v1872_v2 = vld [vmem:[#allocation3 + $0xb0] sm:$0xff]  ;;  %v1875_v3 = vld [vmem:[#allocation3 + $0xc8] sm:$0xff] }
 0x32b   : > { %3087 = vmatpush3.bf16.msra.mxu1 %v3545_v24  ;;  %3024 = vmatprep.subr.bf16.mxu0 %v3546_v25  ;;  %v1877_v30 = vld [vmem:[#allocation3 + $0xd8] sm:$0xff]  ;;  %v1874_v4 = vld [vmem:[#allocation3 + $0xc0] sm:$0xff]  ;;  %v1876_v5 = vld [vmem:[#allocation3 + $0xd0] sm:$0xff] }
 0x32c   : > { %3088 = vmatprep.subr.bf16.mxu1 %v3547_v26  ;;  %v1879_v6 = vld [vmem:[#allocation3 + $0xe8] sm:$0xff]  ;;  %v1881_v32 = vld [vmem:[#allocation3 + $0xf8] sm:$0xff]  ;;  %v1878_v35 = vld [vmem:[#allocation3 + $0xe0] sm:$0xff] }
 0x32d   : > { %v1880_v7 = vld [vmem:[#allocation3 + $0xf0] sm:$0xff]  ;;  %v3561_v8 = vld [vmem:[%s4514_s15 + $0x18] sm:$0xff]   ;;  %v3562_v9 = vld [vmem:[%s4514_s15 + $0x20] sm:$0xff]  }
 0x32e   : > { %3025 = vmatpush3.bf16.msra.mxu0 %v3548_v27  ;;  %v3563_v10 = vld [vmem:[%s4514_s15 + $0x28] sm:$0xff]   ;;  %v3564_v11 = vld [vmem:[%s4514_s15 + $0x30] sm:$0xff]   ;;  %v3565_v12 = vld [vmem:[%s4514_s15 + $0x38] sm:$0xff]  }
 0x32f   : > { %3089 = vmatpush3.bf16.msra.mxu1 %v3549_v28  ;;  %3026 = vmatprep.subr.bf16.mxu0 %v3550_v31  ;;  %v4807_v15 = vld [vmem:[%s483_s2] ss:$0 sm:$0xff] }
 0x330   : > { %3090 = vmatprep.subr.bf16.mxu1 %v3551_v33 }
 0x332   : > { %3027 = vmatpush3.bf16.msra.mxu0 %v3552_v34 }
 0x333   : > { %3091 = vmatpush3.bf16.msra.mxu1 %v3553_v36  ;;  %3028 = vmatprep.subr.bf16.mxu0 %v3554_v37 }
 0x334   : > { %3092 = vmatprep.subr.bf16.mxu1 %v3555_v38 }
 0x336   : > { %3029 = vmatpush3.bf16.msra.mxu0 %v3556_v39 }
 0x337   : > { %3093 = vmatpush3.bf16.msra.mxu1 %v3557_v40  ;;  %3158 = vmatprep.subr.bf16.mxu0 %v3558_v51 }
 0x338   : > { %3190 = vmatprep.subr.bf16.mxu1 %v3558_v51 }
 0x339   : > { %2178 = vmatmul.mubr.bf16.vlgmr.msra.gmra.mrb[0].mxu0 %v1850_v43 }
 0x33a   : > { %2275 = vmatmul.mubr.bf16.vlgmr.msra.gmra.mrb[0].mxu1 %v1852_v44  ;;  %2185 = vmatprep.mubr.bf16.mxu0 %v1855_v45 }
 0x33b   : > { %2282 = vmatprep.mubr.bf16.mxu1 %v1857_v46  ;;  %3159 = vmatpush3.bf16.msra.mxu0 %v3558_v51 }
 0x33c   : > { %3160 = vmatprep.subr.bf16.mxu0 %v3559_v52  ;;  %3198 = vmatpush3.bf16.msra.mxu1 %v3558_v51 }
 0x33d   : > { %3191 = vmatprep.subr.bf16.mxu1 %v3559_v52 }
 0x33f   : > { %3161 = vmatpush3.bf16.msra.mxu0 %v3559_v52 }
 0x340   : > { %3162 = vmatprep.subr.bf16.mxu0 %v3560_v53  ;;  %3199 = vmatpush3.bf16.msra.mxu1 %v3559_v52 }
 0x341   : > { %2186 = vmatmul.mubr.bf16.gmra.mrb[4].mxu0 %v1854_v47  ;;  %3192 = vmatprep.subr.bf16.mxu1 %v3560_v53 }
 0x342   : > { %2283 = vmatmul.mubr.bf16.gmra.mrb[4].mxu1 %v1856_v48  ;;  %2193 = vmatprep.mubr.bf16.mxu0 %v1859_v49 }
 0x343   : > { %2290 = vmatprep.mubr.bf16.mxu1 %v1861_v50  ;;  %3163 = vmatpush3.bf16.msra.mxu0 %v3560_v53 }
 0x344   : > { %3200 = vmatpush3.bf16.msra.mxu1 %v3560_v53  ;;  %3164 = vmatprep.subr.bf16.mxu0 %v3561_v8 }
 0x345   : > { %3193 = vmatprep.subr.bf16.mxu1 %v3561_v8 }
 0x347   : > { %3165 = vmatpush3.bf16.msra.mxu0 %v3561_v8 }
 0x348   : > { %3201 = vmatpush3.bf16.msra.mxu1 %v3561_v8  ;;  %3166 = vmatprep.subr.bf16.mxu0 %v3562_v9 }
 0x349   : > { %2194 = vmatmul.mubr.bf16.gmra.mrb[8].mxu0 %v1858_v54  ;;  %3194 = vmatprep.subr.bf16.mxu1 %v3562_v9 }
 0x34a   : > { %2291 = vmatmul.mubr.bf16.gmra.mrb[8].mxu1 %v1860_v55  ;;  %2201 = vmatprep.mubr.bf16.mxu0 %v1863_v56 }
 0x34b   : > { %2298 = vmatprep.mubr.bf16.mxu1 %v1865_v57  ;;  %3167 = vmatpush3.bf16.msra.mxu0 %v3562_v9 }
 0x34c   : > { %3202 = vmatpush3.bf16.msra.mxu1 %v3562_v9  ;;  %3168 = vmatprep.subr.bf16.mxu0 %v3563_v10 }
 0x34d   : > { %3195 = vmatprep.subr.bf16.mxu1 %v3563_v10 }
 0x34f   : > { %3169 = vmatpush3.bf16.msra.mxu0 %v3563_v10 }
 0x350   : > { %3203 = vmatpush3.bf16.msra.mxu1 %v3563_v10  ;;  %3170 = vmatprep.subr.bf16.mxu0 %v3564_v11 }
 0x351   : > { %2202 = vmatmul.mubr.bf16.gmra.mrb[12].mxu0 %v1862_v58  ;;  %3196 = vmatprep.subr.bf16.mxu1 %v3564_v11 }
 0x352   : > { %2299 = vmatmul.mubr.bf16.gmra.mrb[12].mxu1 %v1864_v59  ;;  %2209 = vmatprep.mubr.bf16.mxu0 %v1867_v60 }
 0x353   : > { %2306 = vmatprep.mubr.bf16.mxu1 %v1869_v61  ;;  %3171 = vmatpush3.bf16.msra.mxu0 %v3564_v11 }
 0x354   : > { %3204 = vmatpush3.bf16.msra.mxu1 %v3564_v11  ;;  %3172 = vmatprep.subr.bf16.mxu0 %v3565_v12 }
 0x355   : > { %3197 = vmatprep.subr.bf16.mxu1 %v3565_v12 }
 0x357   : > { %3173 = vmatpush3.bf16.msra.mxu0 %v3565_v12 }
 0x358   : > { %3205 = vmatpush3.bf16.msra.mxu1 %v3565_v12 }
 0x359   : > { %2210 = vmatmul.mubr.bf16.gmra.mrb[16].mxu0 %v1866_v62 }
 0x35a   : > { %2307 = vmatmul.mubr.bf16.gmra.mrb[16].mxu1 %v1868_v29  ;;  %2217 = vmatprep.mubr.bf16.mxu0 %v1871_v63 }
 0x35b   : > { %2314 = vmatprep.mubr.bf16.mxu1 %v1873_v0 }
 0x361   : > { %2218 = vmatmul.mubr.bf16.gmra.mrb[20].mxu0 %v1870_v1 }
 0x362   : > { %2315 = vmatmul.mubr.bf16.gmra.mrb[20].mxu1 %v1872_v2  ;;  %2225 = vmatprep.mubr.bf16.mxu0 %v1875_v3 }
 0x363   : > { %2322 = vmatprep.mubr.bf16.mxu1 %v1877_v30 }
 0x369   : > { %2226 = vmatmul.mubr.bf16.gmra.mrb[24].mxu0 %v1874_v4 }
 0x36a   : > { %2323 = vmatmul.mubr.bf16.gmra.mrb[24].mxu1 %v1876_v5  ;;  %2233 = vmatprep.mubr.bf16.mxu0 %v1879_v6 }
 0x36b   : > { %2330 = vmatprep.mubr.bf16.mxu1 %v1881_v32 }
 0x371   : > { %2234 = vmatmul.mubr.bf16.gmra.mrb[28].mxu0 %v1878_v35 }
 0x372   : > { %2331 = vmatmul.mubr.bf16.gmra.mrb[28].mxu1 %v1880_v7 }
 0x40c   : > { %v3030_v13 = vpop.f32.mrb[0].mxu0 }
 0x40d   : > { %v3094_v14 = vpop.f32.mrb[0].mxu1  ;;  %v3031_v16 = vpop.f32.mrb[1].mxu0 }
 0x40e   : > { %v3032_v17 = vadd.f32 %v3031_v16, %v3030_v13  ;;  %v3095_v18 = vpop.f32.mrb[1].mxu1  ;;  %v3033_v19 = vpop.f32.mrb[2].mxu0 }
 0x40f   : > { %v3096_v20 = vadd.f32 %v3095_v18, %v3094_v14  ;;  %v3097_v21 = vpop.f32.mrb[2].mxu1  ;;  %v3034_v22 = vpop.f32.mrb[3].mxu0 }
 0x410   : > { %v2180_v23 = vadd.f32 %v3032_v17, %v4807_v15  ;;  %v3035_v24 = vadd.f32 %v3034_v22, %v3033_v19  ;;  %v3098_v25 = vpop.f32.mrb[3].mxu1 }
 0x411   : > { %v3099_v26 = vadd.f32 %v3098_v25, %v3097_v21 }
 0x412   : > { %v2277_v27 = vadd.f32 %v3096_v20, %v2180_v23  ;;  %v2183_v28 = vadd.f32 %v3035_v24, %v4807_v15 }
 0x414   : > { %v2280_v31 = vadd.f32 %v3099_v26, %v2183_v28  ;;  %v3036_v33 = vpop.f32.mrb[4].mxu0  ;;  %v2339_v37 = vmax.f32 %v2277_v27, 0.0 }
 0x415   : > { %v3100_v34 = vpop.f32.mrb[4].mxu1  ;;  %v3037_v36 = vpop.f32.mrb[5].mxu0 }
 0x416   : > { %v2340_v38 = vmax.f32 %v2280_v31, 0.0  ;;  %v3038_v39 = vadd.f32 %v3037_v36, %v3036_v33  ;;  %v3101_v40 = vpop.f32.mrb[5].mxu1  ;;  %v3039_v41 = vpop.f32.mrb[6].mxu0 }
 0x417   : > { %v3102_v42 = vadd.f32 %v3101_v40, %v3100_v34  ;;  %v3103_v43 = vpop.f32.mrb[6].mxu1  ;;  %v3040_v44 = vpop.f32.mrb[7].mxu0 }
 0x418   : > { %v2188_v45 = vadd.f32 %v3038_v39, %v4807_v15  ;;  %v3041_v46 = vadd.f32 %v3040_v44, %v3039_v41  ;;  %v3104_v47 = vpop.f32.mrb[7].mxu1  ;;  %v2355_v48 = vpack.c.bf16 %v2340_v38, %v2339_v37 }
 0x419   : > { %v3105_v49 = vadd.f32 %v3104_v47, %v3103_v43 }
 0x41a   : > { %v2285_v50 = vadd.f32 %v3102_v42, %v2188_v45  ;;  %v2191_v51 = vadd.f32 %v3041_v46, %v4807_v15  ;;  %3174 = vmatprep.mubr.bf16.mxu0 %v2355_v48 }
 0x41c   : > { %v2288_v52 = vadd.f32 %v3105_v49, %v2191_v51  ;;  %v3042_v53 = vpop.f32.mrb[8].mxu0  ;;  %v2341_v56 = vmax.f32 %v2285_v50, 0.0 }
 0x41d   : > { %v3106_v54 = vpop.f32.mrb[8].mxu1  ;;  %v3043_v55 = vpop.f32.mrb[9].mxu0 }
 0x41e   : > { %v2342_v57 = vmax.f32 %v2288_v52, 0.0  ;;  %v3044_v58 = vadd.f32 %v3043_v55, %v3042_v53  ;;  %v3107_v59 = vpop.f32.mrb[9].mxu1  ;;  %v3045_v60 = vpop.f32.mrb[10].mxu0 }
 0x41f   : > { %v3108_v61 = vadd.f32 %v3107_v59, %v3106_v54  ;;  %v3109_v62 = vpop.f32.mrb[10].mxu1  ;;  %v3046_v29 = vpop.f32.mrb[11].mxu0 }
 0x420   : > { %v2356_v63 = vpack.c.bf16 %v2342_v57, %v2341_v56  ;;  %v2196_v0 = vadd.f32 %v3044_v58, %v4807_v15  ;;  %v3047_v1 = vadd.f32 %v3046_v29, %v3045_v60  ;;  %v3110_v2 = vpop.f32.mrb[11].mxu1 }
 0x421   : > { %v3111_v3 = vadd.f32 %v3110_v2, %v3109_v62 }
 0x422   : > { %v2293_v30 = vadd.f32 %v3108_v61, %v2196_v0  ;;  %v2199_v4 = vadd.f32 %v3047_v1, %v4807_v15  ;;  %3175 = vmatmul.mubr.bf16.vlgmr.msra.gmra.mrb[32].mxu0 %v2356_v63 }
 0x424   : > { %v2296_v5 = vadd.f32 %v3111_v3, %v2199_v4  ;;  %v3048_v6 = vpop.f32.mrb[12].mxu0  ;;  %v2343_v7 = vmax.f32 %v2293_v30, 0.0 }
 0x425   : > { %v3112_v32 = vpop.f32.mrb[12].mxu1  ;;  %v3049_v35 = vpop.f32.mrb[13].mxu0 }
 0x426   : > { %v2344_v8 = vmax.f32 %v2296_v5, 0.0  ;;  %v3050_v9 = vadd.f32 %v3049_v35, %v3048_v6  ;;  %v3113_v10 = vpop.f32.mrb[13].mxu1  ;;  %v3051_v11 = vpop.f32.mrb[14].mxu0 }
 0x427   : > { %v3114_v12 = vadd.f32 %v3113_v10, %v3112_v32  ;;  %v3115_v13 = vpop.f32.mrb[14].mxu1  ;;  %v3052_v14 = vpop.f32.mrb[15].mxu0 }
 0x428   : > { %v2204_v16 = vadd.f32 %v3050_v9, %v4807_v15  ;;  %v3053_v17 = vadd.f32 %v3052_v14, %v3051_v11  ;;  %v3116_v18 = vpop.f32.mrb[15].mxu1  ;;  %v2357_v19 = vpack.c.bf16 %v2344_v8, %v2343_v7 }
 0x429   : > { %v3117_v20 = vadd.f32 %v3116_v18, %v3115_v13 }
 0x42a   : > { %v2301_v21 = vadd.f32 %v3114_v12, %v2204_v16  ;;  %v2207_v22 = vadd.f32 %v3053_v17, %v4807_v15  ;;  %3178 = vmatprep.mubr.bf16.mxu0 %v2357_v19 }
 0x42c   : > { %v2304_v23 = vadd.f32 %v3117_v20, %v2207_v22  ;;  %v3054_v24 = vpop.f32.mrb[16].mxu0  ;;  %v2345_v27 = vmax.f32 %v2301_v21, 0.0 }
 0x42d   : > { %v3118_v25 = vpop.f32.mrb[16].mxu1  ;;  %v3055_v26 = vpop.f32.mrb[17].mxu0 }
 0x42e   : > { %v2346_v28 = vmax.f32 %v2304_v23, 0.0  ;;  %v3056_v31 = vadd.f32 %v3055_v26, %v3054_v24  ;;  %v3119_v33 = vpop.f32.mrb[17].mxu1  ;;  %v3057_v34 = vpop.f32.mrb[18].mxu0 }
 0x42f   : > { %v3120_v36 = vadd.f32 %v3119_v33, %v3118_v25  ;;  %v3121_v37 = vpop.f32.mrb[18].mxu1  ;;  %v3058_v38 = vpop.f32.mrb[19].mxu0 }
 0x430   : > { %v2212_v39 = vadd.f32 %v3056_v31, %v4807_v15  ;;  %v3059_v40 = vadd.f32 %v3058_v38, %v3057_v34  ;;  %v3122_v41 = vpop.f32.mrb[19].mxu1  ;;  %v2358_v42 = vpack.c.bf16 %v2346_v28, %v2345_v27 }
 0x431   : > { %v3123_v43 = vadd.f32 %v3122_v41, %v3121_v37 }
 0x432   : > { %v2309_v44 = vadd.f32 %v3120_v36, %v2212_v39  ;;  %v2215_v45 = vadd.f32 %v3059_v40, %v4807_v15  ;;  %3179 = vmatmul.mubr.bf16.gmra.mrb[36].mxu0 %v2358_v42 }
 0x434   : > { %v2312_v46 = vadd.f32 %v3123_v43, %v2215_v45  ;;  %v3060_v47 = vpop.f32.mrb[20].mxu0  ;;  %v2347_v50 = vmax.f32 %v2309_v44, 0.0  ;;  %v2365_v44 = vld [vmem:[%s4527_s19 + $0x10] sm:$0xff]  ;;  %v2363_v45 = vld [vmem:[%s4527_s19] sm:$0xff] }
 0x435   : > { %v3124_v48 = vpop.f32.mrb[20].mxu1  ;;  %v3061_v49 = vpop.f32.mrb[21].mxu0 }
 0x436   : > { %v2348_v51 = vmax.f32 %v2312_v46, 0.0  ;;  %v3062_v52 = vadd.f32 %v3061_v49, %v3060_v47  ;;  %v3125_v53 = vpop.f32.mrb[21].mxu1  ;;  %v3063_v54 = vpop.f32.mrb[22].mxu0  ;;  %v2366_v47 = vld [vmem:[%s4527_s19 + $0x18] sm:$0xff] }
 0x437   : > { %v3126_v55 = vadd.f32 %v3125_v53, %v3124_v48  ;;  %v3127_v56 = vpop.f32.mrb[22].mxu1  ;;  %v3064_v57 = vpop.f32.mrb[23].mxu0 }
 0x438   : > { %v2220_v58 = vadd.f32 %v3062_v52, %v4807_v15  ;;  %v3065_v59 = vadd.f32 %v3064_v57, %v3063_v54  ;;  %v3128_v60 = vpop.f32.mrb[23].mxu1  ;;  %v2359_v61 = vpack.c.bf16 %v2348_v51, %v2347_v50 }
 0x439   : > { %v3129_v62 = vadd.f32 %v3128_v60, %v3127_v56  ;;  %v2367_v56 = vld [vmem:[%s4527_s19 + $0x20] sm:$0xff] }
 0x43a   : > { %v2317_v29 = vadd.f32 %v3126_v55, %v2220_v58  ;;  %v2223_v63 = vadd.f32 %v3065_v59, %v4807_v15  ;;  %3182 = vmatprep.mubr.bf16.mxu1 %v2359_v61  ;;  %v2369_v55 = vld [vmem:[%s4527_s19 + $0x30] sm:$0xff]  ;;  %v2370_v58 = vld [vmem:[%s4527_s19 + $0x38] sm:$0xff]  ;;  %v2368_v61 = vld [vmem:[%s4527_s19 + $0x28] sm:$0xff] }
 0x43c   : > { %v2320_v0 = vadd.f32 %v3129_v62, %v2223_v63  ;;  %v3066_v1 = vpop.f32.mrb[24].mxu0  ;;  %v2349_v30 = vmax.f32 %v2317_v29, 0.0 }
 0x43d   : > { %v3130_v2 = vpop.f32.mrb[24].mxu1  ;;  %v3067_v3 = vpop.f32.mrb[25].mxu0 }
 0x43e   : > { %v2350_v4 = vmax.f32 %v2320_v0, 0.0  ;;  %v3068_v5 = vadd.f32 %v3067_v3, %v3066_v1  ;;  %v3131_v6 = vpop.f32.mrb[25].mxu1  ;;  %v3069_v32 = vpop.f32.mrb[26].mxu0  ;;  %v2371_v3 = vld [vmem:[%s4527_s19 + $0x40] sm:$0xff] }
 0x43f   : > { %v3132_v35 = vadd.f32 %v3131_v6, %v3130_v2  ;;  %v3133_v7 = vpop.f32.mrb[26].mxu1  ;;  %v3070_v8 = vpop.f32.mrb[27].mxu0  ;;  %v2373_v2 = vld [vmem:[%s4527_s19 + $0x50] sm:$0xff] }
 0x440   : > { %v2360_v9 = vpack.c.bf16 %v2350_v4, %v2349_v30  ;;  %v2228_v10 = vadd.f32 %v3068_v5, %v4807_v15  ;;  %v3071_v11 = vadd.f32 %v3070_v8, %v3069_v32  ;;  %v3134_v12 = vpop.f32.mrb[27].mxu1  ;;  %v2374_v4 = vld [vmem:[%s4527_s19 + $0x58] sm:$0xff]  ;;  %v2372_v32 = vld [vmem:[%s4527_s19 + $0x48] sm:$0xff] }
 0x441   : > { %v3135_v13 = vadd.f32 %v3134_v12, %v3133_v7  ;;  %v2375_v12 = vld [vmem:[%s4527_s19 + $0x60] sm:$0xff] }
 0x442   : > { %v2325_v14 = vadd.f32 %v3132_v35, %v2228_v10  ;;  %v2231_v16 = vadd.f32 %v3071_v11, %v4807_v15  ;;  %3183 = vmatmul.mubr.bf16.vlgmr.msra.gmra.mrb[32].mxu1 %v2360_v9  ;;  %v2377_v11 = vld [vmem:[%s4527_s19 + $0x70] sm:$0xff] }
 0x444   : > { %v2328_v17 = vadd.f32 %v3135_v13, %v2231_v16  ;;  %v3072_v18 = vpop.f32.mrb[28].mxu0  ;;  %v2351_v21 = vmax.f32 %v2325_v14, 0.0  ;;  %v2378_v14 = vld [vmem:[%s4527_s19 + $0x78] sm:$0xff] }
 0x445   : > { %v3136_v19 = vpop.f32.mrb[28].mxu1  ;;  %v3073_v20 = vpop.f32.mrb[29].mxu0 }
 0x446   : > { %v2352_v22 = vmax.f32 %v2328_v17, 0.0  ;;  %v3074_v23 = vadd.f32 %v3073_v20, %v3072_v18  ;;  %v3137_v24 = vpop.f32.mrb[29].mxu1  ;;  %v3075_v25 = vpop.f32.mrb[30].mxu0  ;;  %v2376_v18 = vld [vmem:[%s4527_s19 + $0x68] sm:$0xff] }
 0x447   : > { %v3138_v26 = vadd.f32 %v3137_v24, %v3136_v19  ;;  %v3139_v27 = vpop.f32.mrb[30].mxu1  ;;  %v3076_v28 = vpop.f32.mrb[31].mxu0 }
 0x448   : > { %v2236_v31 = vadd.f32 %v3074_v23, %v4807_v15  ;;  %v3077_v33 = vadd.f32 %v3076_v28, %v3075_v25  ;;  %v3140_v34 = vpop.f32.mrb[31].mxu1  ;;  %v2361_v36 = vpack.c.bf16 %v2352_v22, %v2351_v21 }
 0x449   : > { %v3141_v37 = vadd.f32 %v3140_v34, %v3139_v27 }
 0x44a   : > { %v2333_v38 = vadd.f32 %v3138_v26, %v2236_v31  ;;  %v2239_v39 = vadd.f32 %v3077_v33, %v4807_v15  ;;  %3186 = vmatprep.mubr.bf16.mxu1 %v2361_v36  ;;  %v2364_v15 = vld [vmem:[%s4527_s19 + $0x8] sm:$0xff] }
 0x44c   : > { %v2336_v40 = vadd.f32 %v3141_v37, %v2239_v39  ;;  %v2353_v41 = vmax.f32 %v2333_v38, 0.0 }
 0x44e   : > { %v2354_v42 = vmax.f32 %v2336_v40, 0.0 }
 0x450   : > { %v2362_v43 = vpack.c.bf16 %v2354_v42, %v2353_v41 }
 0x452   : > { %3187 = vmatmul.mubr.bf16.gmra.mrb[36].mxu1 %v2362_v43 }
 0x4f5   : > { %v3176_v46 = vpop.f32.mrb[32].mxu0 }
 0x4f6   : > { %v2542_v48 = vadd.f32 %v3176_v46, %v2365_v44  ;;  %v2477_v49 = vpop.f32.mrb[33].mxu0 }
 0x4f7   : > { %v2540_v50 = vadd.f32 %v2477_v49, %v2363_v45  ;;  %v3177_v51 = vpop.f32.mrb[34].mxu0 }
 0x4f8   : > { %2558 = vst [vmem:[%s4527_s19 + $0x10] sm:$0xff] %v2542_v48  ;;  %v2543_v52 = vadd.f32 %v3177_v51, %v2366_v47  ;;  %v2480_v53 = vpop.f32.mrb[35].mxu0 }
 0x4f9   : > { %2556 = vst [vmem:[%s4527_s19] sm:$0xff] %v2540_v50  ;;  %v2541_v54 = vadd.f32 %v2480_v53, %v2364_v15 }
 0x4fa   : > { %2559 = vst [vmem:[%s4527_s19 + $0x18] sm:$0xff] %v2543_v52 }
 0x4fb   : > { %2557 = vst [vmem:[%s4527_s19 + $0x8] sm:$0xff] %v2541_v54 }
 0x505   : > { %v3180_v57 = vpop.f32.mrb[36].mxu0 }
 0x506   : > { %v2546_v59 = vadd.f32 %v3180_v57, %v2369_v55  ;;  %v2493_v60 = vpop.f32.mrb[37].mxu0 }
 0x507   : > { %v2544_v62 = vadd.f32 %v2493_v60, %v2367_v56  ;;  %v3181_v29 = vpop.f32.mrb[38].mxu0 }
 0x508   : > { %2562 = vst [vmem:[%s4527_s19 + $0x30] sm:$0xff] %v2546_v59  ;;  %v2547_v63 = vadd.f32 %v3181_v29, %v2370_v58  ;;  %v2496_v0 = vpop.f32.mrb[39].mxu0 }
 0x509   : > { %2560 = vst [vmem:[%s4527_s19 + $0x20] sm:$0xff] %v2544_v62  ;;  %v2545_v1 = vadd.f32 %v2496_v0, %v2368_v61 }
 0x50a   : > { %2563 = vst [vmem:[%s4527_s19 + $0x38] sm:$0xff] %v2547_v63 }
 0x50b   : > { %2561 = vst [vmem:[%s4527_s19 + $0x28] sm:$0xff] %v2545_v1 }
 0x515   : > { %v3184_v30 = vpop.f32.mrb[32].mxu1 }
 0x516   : > { %v2550_v5 = vadd.f32 %v3184_v30, %v2373_v2  ;;  %v2509_v6 = vpop.f32.mrb[33].mxu1 }
 0x517   : > { %v2548_v35 = vadd.f32 %v2509_v6, %v2371_v3  ;;  %v3185_v7 = vpop.f32.mrb[34].mxu1 }
 0x518   : > { %2566 = vst [vmem:[%s4527_s19 + $0x50] sm:$0xff] %v2550_v5  ;;  %v2551_v8 = vadd.f32 %v3185_v7, %v2374_v4  ;;  %v2512_v9 = vpop.f32.mrb[35].mxu1 }
 0x519   : > { %2564 = vst [vmem:[%s4527_s19 + $0x40] sm:$0xff] %v2548_v35  ;;  %v2549_v10 = vadd.f32 %v2512_v9, %v2372_v32 }
 0x51a   : > { %2567 = vst [vmem:[%s4527_s19 + $0x58] sm:$0xff] %v2551_v8 }
 0x51b   : > { %2565 = vst [vmem:[%s4527_s19 + $0x48] sm:$0xff] %v2549_v10 }
 0x525   : > { %v3188_v13 = vpop.f32.mrb[36].mxu1 }
 0x526   : > { %v2554_v16 = vadd.f32 %v3188_v13, %v2377_v11  ;;  %v2525_v17 = vpop.f32.mrb[37].mxu1 }
 0x527   : > { %v2552_v19 = vadd.f32 %v2525_v17, %v2375_v12  ;;  %v3189_v20 = vpop.f32.mrb[38].mxu1 }
 0x528   : > { %2570 = vst [vmem:[%s4527_s19 + $0x70] sm:$0xff] %v2554_v16  ;;  %v2555_v21 = vadd.f32 %v3189_v20, %v2378_v14  ;;  %v2528_v22 = vpop.f32.mrb[39].mxu1 }
 0x529   : > { %2568 = vst [vmem:[%s4527_s19 + $0x60] sm:$0xff] %v2552_v19  ;;  %v2553_v23 = vadd.f32 %v2528_v22, %v2376_v18 }
 0x52a   : > { %2571 = vst [vmem:[%s4527_s19 + $0x78] sm:$0xff] %v2555_v21 }
 0x52b   : > { %2569 = vst [vmem:[%s4527_s19 + $0x68] sm:$0xff] %v2553_v23 }
 0x52c PF: > { %s5088_s28 = sld [smem:[#allocation30_spill]]  ;;  %s5090_s24 = sld [smem:[#allocation37_spill]] }
 0x52d   : > { %s5091_s1 = sld [smem:[#allocation51_spill]]  ;;  %s2586_s11 = sshll.u32 %s4527_s19, 4  ;;  %s4864_s11 = int_to_ptr.vmem [resolvable:$true] %s2586_s11 }
 0x52e   : > { %s4868_s25 = scalar_lea.sflag [#allocation6], %s543_s4  ;;  %s3772_s2 = scalar_lea.vmem %s4864_s11, 2048 }
 0x52f   : > { %p3773_p7 = scmp.ne.s32.totalorder %s4864_s11, %s3772_s2  ;;  %s3978_s29 = smov [#allocation16]  }
 0x530   : > { %s3776_s15 = sshll.u32 %s3978_s29, 4  ;;  %s3777_s15 = int_to_ptr.vmem [resolvable:$false] %s3776_s15 }
 0x531   : > { %s3778_s6 = scalar_lea.vmem %s3777_s15, 4096  ;;  %p3779_p12 = scmp.lt.s32.totalorder %s4864_s11, %s3777_s15 }
 0x532   : > { %s3013_s18 = sshll.u32 %s5088_s28, 11  ;;  %p5092_p3 = scmp.ne.s32.totalorder %s5090_s24, 0 }
 0x533   : > { %s4861_s16 = scalar_lea.hbm %s5091_s1, %s3013_s18  ;;  %p3780_p9 = scmp.lt.s32.totalorder %s3778_s6, %s3772_s2 }
 0x534   : > { %p3774_p0 = pnand %p3773_p7, %p5092_p3 }
 0x535   : > { %p3781_p6 = por %p3780_p9, %p3779_p12 }
 0x536   : > { %p3775_p5 = pneg %p3774_p0 }
 0x538   : > { %p3782_p2 = pnand %p3781_p6, %p3775_p5 }
 0x53a   : > { %3785 = shalt.err (!%p3782_p2)
}
 0x53b   : > { %s3786_s4 = scalar_lea.hbm %s4861_s16, 2048  ;;  %s3790_s3 = scalar_lea.hbm %s5091_s1, 4096 }
 0x53c   : > { %p3787_p8 = scmp.ne.s32.totalorder %s4861_s16, %s3786_s4  ;;  %p3791_p11 = scmp.lt.u32.totalorder %s4861_s16, %s5091_s1 }
 0x53d   : > { %p3792_p10 = scmp.lt.u32.totalorder %s3790_s3, %s3786_s4  ;;  %p3794_p7 = scmp.lt.u32.totalorder %s3786_s4, %s4861_s16 }
 0x53e   : > { %p3788_p4 = pnand %p3787_p8, %p5092_p3 }
 0x53f   : > { %p3793_p1 = por %p3792_p10, %p3791_p11 }
 0x540   : > { %p3789_p13 = pneg %p3788_p4 }
 0x541   : > { %p3795_p0 = por %p3794_p7, %p3793_p1 }
 0x543   : > { %p3796_p5 = pnand %p3795_p0, %p3789_p13 }
 0x545   : > { %3799 = shalt.err (!%p3796_p5)
}
 0x546   : > { %s3979_s0 = smov 128   ;;  %s3980_s28 = smov 8  }
 0x547   : > { %3224 = dma.vmem_to_hbm [thread:$0]  (%p5092_p3), %s4864_s11, 2048, %s4861_s16, %s4868_s25, %s3979_s0, %s3979_s0, %s3980_s28  }
 0x548 PF: > { %s5093_s10 = sld [smem:[#allocation24_spill]]  ;;  %p3258_p12 = scmp.ge.s32.totalorder %s3962_s17, 2 }
 0x549   : > { %s5094_s18 = sld [smem:[#allocation38_spill]] }
 0x54e   : > { %s2601_s23 = sand.u32 1, %s5093_s10  }
 0x54f   : > { %p5095_p9 = scmp.ne.s32.totalorder %s5094_s18, 0  ;;  %s2602_s20 = scalar_lea.sflag [#allocation6], %s2601_s23 }
 0x551   : > { %p3250_p6 = pnand %p3258_p12, %p5095_p9 }
 0x553   : > { %3893 = dma.done.wait (!%p3250_p6), %s2602_s20, 2048  }
 0x554   : > { %3895 = vsyncadd (!%p3250_p6), %s2602_s20, 4294965248  ;;  %s32_s17 = sadd.s32 1, %s3962_s17   ;;  %s5097_s24 = sld [smem:[#allocation25_spill]] }
 0x555   : > { %p4897_p2 = scmp.ge.s32.totalorder %s32_s17, 14   ;;  %s5098_s27 = sld [smem:[#allocation26_spill]] }
 0x556   : > { %s5099_s28 = sld [smem:[#allocation27_spill]]  ;;  %s5100_s29 = sld [smem:[#allocation41_spill]] }
 0x557   : > { %s5101_s10 = sld [smem:[#allocation28_spill]]  ;;  %s5102_s16 = sld [smem:[#allocation31_spill]] }
 0x558   : > { %s5103_s15 = sld [smem:[#allocation32_spill]]  ;;  %s5104_s6 = sld [smem:[#allocation40_spill]] }
 0x559   : > { %s5105_s4 = sld [smem:[#allocation43_spill]]  ;;  %s5106_s25 = smov %s3906_s26 }
 0x55a   : > { %s5107_s26 = smov %s4324_s13  ;;  %s5108_s30 = smov %s3926_s8 }
 0x55b   : > { %s5109_s8 = smov %s3930_s9  ;;  %s5110_s9 = smov %s4377_s14 }
 0x55c   : > { %s5111_s11 = smov %s3942_s12  ;;  %s5112_s12 = smov %s4319_s7 }
 0x55d   : > { %s5113_s13 = smov %s5102_s16  ;;  %31 = sbr.rel (!%p4897_p2) target bundleno = 27 (0x1b), region = 167 }
 0x55e   : > { %s5114_s14 = smov %s5103_s15  ;;  %s5115_s15 = smov %s5104_s6 }
 0x55f   : > { %s5116_s16 = smov %s5105_s4 }
 0x564   :  { %2607 = vsyncpa [#allocation5], 1 }
 0x565   :  { %2609 = vsyncpa [#allocation5 + $0x1], 1 }
 0x566   :  { %2610 = vsyncpa [#allocation8], 1 }
 0x567   :  { %2612 = vsyncpa [#allocation8 + $0x1], 1 }
 0x568   :  { %2613 = vsyncpa [#allocation11], 1 }
 0x569   :  { %2615 = vsyncpa [#allocation11 + $0x1], 1 }
 0x56a   :  { %2616 = vsyncpa [#allocation14], 1 }
 0x56b   :  { %2618 = vsyncpa [#allocation14 + $0x1], 1 }
 0x56c   :  { %2619 = vsyncpa [#allocation6], 1 }
 0x56d   :  { %2621 = vsyncpa [#allocation6 + $0x1], 1 }

</bundles_post_ra>
